<compile_context>
chip_gen: v5e
topology: v5e:2x2
jax: 0.10.0
libtpu: 0.0.40
codegen_flags: <defaults>
</compile_context>

<pallas_src>
import numpy as np
import jax
import jax.numpy as jnp
from jax.experimental import pallas as pl
from jax.experimental.pallas import tpu as pltpu

EPS = 1e-5                      # nn.LayerNorm default eps


def _round_up(n, m):
    return (n + m - 1) // m * m


def _tpu_vmem_capacity():
    """Generation-aware VMEM capacity (falls back to the smallest, v7x-safe value)."""
    try:
        info = pltpu.get_tpu_info()
        for attr in ("vmem_capacity_bytes", "vmem_bytes", "vmem_size_bytes"):
            v = getattr(info, attr, None)
            if v:
                return int(v)
    except Exception:
        pass
    return 64 * 1024 * 1024


def _layer_tiles(B, L, H, budget_bytes):
    """Pick (TB, TH): prefer the largest batch tile (conv MXU M-fill), then the
    largest channel tile, under an estimated per-step VMEM working set and the
    (8,128) block rules (a tile must be a multiple of 8 or equal the full dim)."""
    tb_cands = sorted({t for t in range(8, min(B, 64) + 1, 8) if B % t == 0}
                      | ({B} if B <= 64 else set()), reverse=True)
    if not tb_cands:
        tb_cands = [B]
    th_cands = sorted({t for t in range(8, H + 1, 8) if H % t == 0} | {H},
                      reverse=True)

    def est(tb, th):
        act = tb * L * H * (2 * 2 + 2 * 2 + 2 * 4)           # x, out (2 bufs bf16) + 2 f32 acc
        conv = 2 * th * tb * L * 2 + th * tb * L * (2 + 4)   # ucm (2 bufs) + pack scratch + y f32
        toep = 3 * th * L * L * 4 + 2 * th * L * 2 + L * L * 4   # f32 synthesis temporaries
        wts = 2 * 2 * th * H * 2 + 8 * H * 4
        return act + conv + toep + wts + (2 << 20)

    for tb in tb_cands:
        for th in th_cands:
            if est(tb, th) <= budget_bytes:
                return tb, th
    return tb_cands[-1], th_cands[-1]


# ----------------------------- linear (enc / dec) --------------------------- #

def _linear_kernel(x_ref, w_ref, b_ref, o_ref):
    o_ref[...] = (
        jnp.dot(x_ref[...], w_ref[...], preferred_element_type=jnp.float32)
        + b_ref[...]
    ).astype(o_ref.dtype)


def linear_pallas(x, w, b, *, out_dtype=jnp.float32, vmem_limit=48 * 1024 * 1024):
    M, K = x.shape
    N = w.shape[1]
    x = x.astype(jnp.bfloat16)
    w = w.astype(jnp.bfloat16)
    b = b.astype(jnp.float32)
    Np = _round_up(N, 128)                       # lane-dense output stores
    if Np != N:
        w = jnp.pad(w, ((0, 0), (0, Np - N)))
        b = jnp.pad(b, (0, Np - N))
    TM = M
    if M > 1024:                                 # largest multiple-of-8 divisor <= 1024
        for t in range(8, 1025, 8):
            if M % t == 0:
                TM = t
    out = pl.pallas_call(
        _linear_kernel,
        out_shape=jax.ShapeDtypeStruct((M, Np), out_dtype),
        grid=(M // TM,),
        in_specs=[
            pl.BlockSpec((TM, K), lambda i: (i, 0)),
            pl.BlockSpec((K, Np), lambda i: (0, 0)),   # weights resident
            pl.BlockSpec((1, Np), lambda i: (0, 0)),
        ],
        out_specs=pl.BlockSpec((TM, Np), lambda i: (i, 0)),
        compiler_params=pltpu.CompilerParams(
            dimension_semantics=("parallel",),
            vmem_limit_bytes=vmem_limit),
    )(x, w, b.reshape(1, Np))
    return out if Np == N else out[:, :N]


# ------------------------------ fused S4 layer ------------------------------ #

def _s4_layer_kernel(x_ref, ucm_ref, k_ref, d_ref, wa_ref, wb_ref,
                     ba_ref, bb_ref, g_ref, bt_ref,
                     o_ref, acca_ref, accb_ref, y2_ref):
    hi = pl.program_id(1)
    nh = pl.num_programs(1)
    TH, TB, L = ucm_ref.shape

    @pl.when(hi == 0)
    def _init():
        acca_ref[...] = jnp.zeros_like(acca_ref)
        accb_ref[...] = jnp.zeros_like(accb_ref)

    # ---- synthesize the (TH, L, L) causal Toeplitz tile in VMEM from k (TH, L) ----
    # T[h, s, l] = k[h, l - s] if l >= s else 0, built with log2(L) shift/select steps.
    t = jnp.broadcast_to(k_ref[...].astype(jnp.float32)[:, None, :], (TH, L, L))
    sidx = jax.lax.broadcasted_iota(jnp.int32, (L, L), 0)       # sidx[s, l] = s
    shift = 1
    while shift < L:
        shifted = jnp.concatenate(
            [jnp.zeros((TH, L, shift), t.dtype), t[:, :, :L - shift]], axis=2)
        bit = jnp.broadcast_to((sidx & shift)[None, :, :], (TH, L, L))
        t = jnp.where(bit != 0, shifted, t)
        shift *= 2
    t = t.astype(jnp.bfloat16)

    # ---- depthwise causal SSM conv: per-channel (TB, L) @ (L, L) on the MXU ----
    u = ucm_ref[...]                                            # (TH, TB, L) bf16
    y = jax.lax.dot_general(
        u, t, dimension_numbers=(((2,), (1,)), ((0,), (0,))),
        preferred_element_type=jnp.float32)                     # (TH, TB, L) f32
    y = y + u.astype(jnp.float32) * d_ref[...]                  # D skip connection
    y = jax.nn.gelu(y)                                          # f32 (tanh approx)

    # ---- pack (TH, TB, L) -> (TH, TB*L) so the channel mix is ONE MXU matmul ----
    for b in range(TB):                                         # static, TB <= 64
        y2_ref[:, b * L:(b + 1) * L] = y[:, b, :].astype(jnp.bfloat16)
    y2 = y2_ref[...]                                            # (TH, TB*L) bf16

    dn = (((0,), (0,)), ((), ()))                               # contract the channel dim
    acca_ref[...] += jax.lax.dot_general(y2, wa_ref[...], dn,
                                         preferred_element_type=jnp.float32)
    accb_ref[...] += jax.lax.dot_general(y2, wb_ref[...], dn,
                                         preferred_element_type=jnp.float32)

    # ---- finalize: GLU + residual + post-norm LayerNorm on all (TB*L, H) rows ----
    @pl.when(hi == nh - 1)
    def _fin():
        va = acca_ref[...] + ba_ref[...]                        # (TB*L, H) f32
        vb = accb_ref[...] + bb_ref[...]
        z = va * jax.nn.sigmoid(vb)                             # GLU over channels
        xr = z + x_ref[...].astype(jnp.float32)                 # residual (post-norm)
        mean = jnp.mean(xr, axis=-1, keepdims=True)
        var = jnp.mean((xr - mean) ** 2, axis=-1, keepdims=True)
        xn = (xr - mean) * jax.lax.rsqrt(var + EPS)
        o_ref[...] = (xn * g_ref[...] + bt_ref[...]).astype(o_ref.dtype)


def s4_layer_pallas(x2d, x_cm, lp, *, B, L, H, TB, TH, vmem_limit):
    nB, nH = B // TB, H // TH
    R = TB * L
    flops = int(2 * B * H * L * L + 4 * B * L * H * H)
    transcendentals = int(2 * B * L * H)
    bytes_accessed = int(2 * B * L * H * 2 + B * L * H * 2
                         + nB * (H * L * 2 + 2 * H * H * 2 + 6 * H * 4))
    return pl.pallas_call(
        _s4_layer_kernel,
        out_shape=jax.ShapeDtypeStruct((B * L, H), jnp.bfloat16),
        grid=(nB, nH),
        in_specs=[
            pl.BlockSpec((R, H), lambda bi, hi: (bi, 0)),          # x rows (residual), resident
            pl.BlockSpec((TH, TB, L), lambda bi, hi: (hi, bi, 0)), # channel-major conv input
            pl.BlockSpec((TH, L), lambda bi, hi: (hi, 0)),         # SSM kernel k (bf16)
            pl.BlockSpec((TH, 1, 1), lambda bi, hi: (hi, 0, 0)),   # D skip
            pl.BlockSpec((TH, H), lambda bi, hi: (hi, 0)),         # W_a (bf16)
            pl.BlockSpec((TH, H), lambda bi, hi: (hi, 0)),         # W_b (bf16)
            pl.BlockSpec((1, H), lambda bi, hi: (0, 0)),           # b_a   (resident)
            pl.BlockSpec((1, H), lambda bi, hi: (0, 0)),           # b_b   (resident)
            pl.BlockSpec((1, H), lambda bi, hi: (0, 0)),           # LN gamma
            pl.BlockSpec((1, H), lambda bi, hi: (0, 0)),           # LN beta
        ],
        out_specs=pl.BlockSpec((R, H), lambda bi, hi: (bi, 0)),
        scratch_shapes=[
            pltpu.VMEM((R, H), jnp.float32),      # GLU value accumulator
            pltpu.VMEM((R, H), jnp.float32),      # GLU gate accumulator
            pltpu.VMEM((TH, R), jnp.bfloat16),    # packed conv output (mix lhs)
        ],
        compiler_params=pltpu.CompilerParams(
            dimension_semantics=("parallel", "arbitrary"),
            vmem_limit_bytes=vmem_limit),
        cost_estimate=pl.CostEstimate(flops=flops,
                                      transcendentals=transcendentals,
                                      bytes_accessed=bytes_accessed),
    )(x2d, x_cm, lp["k"], lp["D"], lp["wa"], lp["wb"],
      lp["ba"], lp["bb"], lp["ln_g"], lp["ln_b"])


# -------------------------- parameter initialization ----------------------- #

def init_params(seed, vocab, emb_dim, d_model, d_output, n_layers, d_state, L):
    rng = np.random.RandomState(seed)
    H = d_model
    params = {
        "embedding": jnp.asarray((rng.randn(vocab, emb_dim) * 0.1).astype(np.float32)),
        "enc_w": jnp.asarray(rng.randn(emb_dim, H) / np.sqrt(emb_dim), dtype=jnp.bfloat16),
        "enc_b": jnp.zeros((H,), jnp.float32),
        "dec_w": jnp.asarray(rng.randn(H, d_output) / np.sqrt(H), dtype=jnp.bfloat16),
        "dec_b": jnp.zeros((d_output,), jnp.float32),
        "layers": [],
    }
    for _ in range(n_layers):
        # S4D-Lin parameterization; only the (H, L) conv kernel is materialized.
        log_dt = rng.uniform(np.log(1e-3), np.log(1e-1), size=(H,))
        C = rng.randn(H, d_state) + 1j * rng.randn(H, d_state)
        A = -0.5 + 1j * np.pi * np.arange(d_state)
        dt = np.exp(log_dt)
        dtA = dt[:, None] * A[None, :]                                   # (H, N)
        Ct = C * (np.exp(dtA) - 1.0) / A                                 # (H, N)
        Kexp = np.exp(dtA[:, :, None] * np.arange(L)[None, None, :])     # (H, N, L)
        k = 2.0 * np.einsum("hn,hnl->hl", Ct, Kexp).real                 # (H, L)
        w_out = (rng.randn(H, 2 * H) / np.sqrt(H)).astype(np.float32)
        b_out = (rng.randn(2 * H) * 0.01).astype(np.float32)
        params["layers"].append({
            "k": jnp.asarray(k.astype(np.float32), dtype=jnp.bfloat16),
            "D": jnp.asarray(rng.randn(H).astype(np.float32)).reshape(H, 1, 1),
            "wa": jnp.asarray(w_out[:, :H], dtype=jnp.bfloat16),
            "wb": jnp.asarray(w_out[:, H:], dtype=jnp.bfloat16),
            "ba": jnp.asarray(b_out[:H]).reshape(1, H),
            "bb": jnp.asarray(b_out[H:]).reshape(1, H),
            "ln_g": jnp.ones((1, H), jnp.float32),
            "ln_b": jnp.zeros((1, H), jnp.float32),
        })
    return params


# -------------------------------- forward ----------------------------------- #

def s4_model_forward(params, tokens):
    B, L = tokens.shape
    H = params["enc_w"].shape[1]

    vmem_cap = _tpu_vmem_capacity()                         # 128 MiB v5e/v6e, 64 MiB v7x
    vmem_limit = min(int(vmem_cap * 3 // 4), 100 * 1024 * 1024)

    # Embedding lookup (gather) -- plain-JAX glue.
    emb = params["embedding"][tokens]                       # (B, L, E) f32
    E = emb.shape[-1]

    # Encoder linear -> bf16 activations.
    x = linear_pallas(emb.reshape(B * L, E), params["enc_w"], params["enc_b"],
                      out_dtype=jnp.bfloat16, vmem_limit=vmem_limit)     # (B*L, H)

    TB, TH = _layer_tiles(B, L, H, int(vmem_limit * 0.7))

    for lp in params["layers"]:
        # Channel-major copy for the depthwise conv (bf16 halves the traffic).
        # TODO(synk): fuse as a second (H, B, L) output of the layer kernel.
        x_cm = jnp.transpose(x.reshape(B, L, H), (2, 0, 1))  # (H, B, L) bf16
        x = s4_layer_pallas(x, x_cm, lp, B=B, L=L, H=H, TB=TB, TH=TH,
                            vmem_limit=vmem_limit)           # (B*L, H) bf16

    # Decoder linear (f32 logits).
    logits = linear_pallas(x, params["dec_w"], params["dec_b"],
                           out_dtype=jnp.float32, vmem_limit=vmem_limit)
    return logits.reshape(B, L, -1)


# --------------------------------- main ------------------------------------ #

if __name__ == "__main__":
    B, L = 2, 16
    vocab, emb_dim = 20, 16
    d_model, d_output, n_layers, d_state = 32, 10, 2, 8

    params = init_params(0, vocab, emb_dim, d_model, d_output, n_layers, d_state, L)

    key = jax.random.PRNGKey(0)
    tokens = jax.random.randint(key, (B, L), 0, vocab, dtype=jnp.int32)

    fwd = jax.jit(s4_model_forward)
    out = jax.block_until_ready(fwd(params, tokens))

    assert out.shape == (B, L, d_output), out.shape
    assert bool(jnp.all(jnp.isfinite(out)))
    print("KERNEL_OK")
</pallas_src>

<mosaic_0001>
module attributes {stable_mosaic.version = 11 : i64} {
  func.func @_linear_kernel(%arg0: i32, %arg1: memref<32x16xbf16, #tpu.memory_space<vmem>>, %arg2: memref<16x128xbf16, #tpu.memory_space<vmem>>, %arg3: memref<1x128xf32, #tpu.memory_space<vmem>>, %arg4: memref<32x128xbf16, #tpu.memory_space<vmem>>) attributes {dimension_semantics = [#tpu.dimension_semantics<parallel>], iteration_bounds = array<i64: 1>, scalar_prefetch = 0 : i64, scratch_operands = 0 : i64, tpu.core_type = #tpu.core_type<tc>, window_params = [{transform_indices = @transform_0, window_bounds = array<i64: 32, 16>}, {pipeline_mode = #tpu.pipeline_mode<synchronous>, transform_indices = @transform_1, window_bounds = array<i64: 16, 128>}, {pipeline_mode = #tpu.pipeline_mode<synchronous>, transform_indices = @transform_2, window_bounds = array<i64: 1, 128>}, {transform_indices = @transform_3, window_bounds = array<i64: 32, 128>}]} {
    %c0 = arith.constant 0 : index
    %c0_0 = arith.constant 0 : index
    %0 = vector.load %arg1[%c0, %c0_0] : memref<32x16xbf16, #tpu.memory_space<vmem>>, vector<32x16xbf16>
    %c0_1 = arith.constant 0 : index
    %c0_2 = arith.constant 0 : index
    %1 = vector.load %arg2[%c0_1, %c0_2] : memref<16x128xbf16, #tpu.memory_space<vmem>>, vector<16x128xbf16>
    %cst = arith.constant dense<0.000000e+00> : vector<32x128xf32>
    %2 = tpu.matmul %0, %1, %cst {dimension_numbers = #tpu.dot_dimension_numbers<[1], [0], [0], [1], [0, 0, 1, 1], [], []>} : vector<32x16xbf16>, vector<16x128xbf16>, vector<32x128xf32> -> vector<32x128xf32>
    %c0_3 = arith.constant 0 : index
    %c0_4 = arith.constant 0 : index
    %3 = vector.load %arg3[%c0_3, %c0_4] : memref<1x128xf32, #tpu.memory_space<vmem>>, vector<1x128xf32>
    %4 = vector.broadcast %3 : vector<1x128xf32> to vector<32x128xf32>
    %5 = arith.addf %2, %4 : vector<32x128xf32>
    %6 = arith.truncf %5 : vector<32x128xf32> to vector<32x128xbf16>
    %c0_5 = arith.constant 0 : index
    %c0_6 = arith.constant 0 : index
    %7 = vector.load %arg4[%c0_5, %c0_6] : memref<32x128xbf16, #tpu.memory_space<vmem>>, vector<32x128xbf16>
    tpu.vector_store %arg4[%c0_5, %c0_6], %6 {strides = array<i32>} : memref<32x128xbf16, #tpu.memory_space<vmem>>, vector<32x128xbf16>,
    return
  }
  func.func @transform_0(%arg0: i32) -> (i32, i32) {
    %c0_i32 = arith.constant 0 : i32
    %c0_i32_0 = arith.constant 0 : i32
    return %arg0, %c0_i32 : i32, i32
  }
  func.func @transform_1(%arg0: i32) -> (i32, i32) {
    %c0_i32 = arith.constant 0 : i32
    %c0_i32_0 = arith.constant 0 : i32
    %c0_i32_1 = arith.constant 0 : i32
    return %c0_i32, %c0_i32_0 : i32, i32
  }
  func.func @transform_2(%arg0: i32) -> (i32, i32) {
    %c0_i32 = arith.constant 0 : i32
    %c0_i32_0 = arith.constant 0 : i32
    %c0_i32_1 = arith.constant 0 : i32
    return %c0_i32, %c0_i32_0 : i32, i32
  }
  func.func @transform_3(%arg0: i32) -> (i32, i32) {
    %c0_i32 = arith.constant 0 : i32
    %c0_i32_0 = arith.constant 0 : i32
    return %arg0, %c0_i32 : i32, i32
  }
}

module attributes {stable_mosaic.version = 11 : i64} {
  func.func @_s4_layer_kernel(%arg0: i32, %arg1: i32, %arg2: memref<32x32xbf16, #tpu.memory_space<vmem>>, %arg3: memref<32x2x16xbf16, #tpu.memory_space<vmem>>, %arg4: memref<32x16xbf16, #tpu.memory_space<vmem>>, %arg5: memref<32x1x1xf32, #tpu.memory_space<vmem>>, %arg6: memref<32x32xbf16, #tpu.memory_space<vmem>>, %arg7: memref<32x32xbf16, #tpu.memory_space<vmem>>, %arg8: memref<1x32xf32, #tpu.memory_space<vmem>>, %arg9: memref<1x32xf32, #tpu.memory_space<vmem>>, %arg10: memref<1x32xf32, #tpu.memory_space<vmem>>, %arg11: memref<1x32xf32, #tpu.memory_space<vmem>>, %arg12: memref<32x32xbf16, #tpu.memory_space<vmem>>, %arg13: memref<32x32xf32, #tpu.memory_space<vmem>>, %arg14: memref<32x32xf32, #tpu.memory_space<vmem>>, %arg15: memref<32x32xbf16, #tpu.memory_space<vmem>>) attributes {dimension_semantics = [#tpu.dimension_semantics<parallel>, #tpu.dimension_semantics<arbitrary>], iteration_bounds = array<i64: 1, 1>, scalar_prefetch = 0 : i64, scratch_operands = 3 : i64, tpu.core_type = #tpu.core_type<tc>, window_params = [{transform_indices = @transform_0, window_bounds = array<i64: 32, 32>}, {transform_indices = @transform_1, window_bounds = array<i64: 32, 2, 16>}, {transform_indices = @transform_2, window_bounds = array<i64: 32, 16>}, {transform_indices = @transform_3, window_bounds = array<i64: 32, 1, 1>}, {transform_indices = @transform_4, window_bounds = array<i64: 32, 32>}, {transform_indices = @transform_5, window_bounds = array<i64: 32, 32>}, {pipeline_mode = #tpu.pipeline_mode<synchronous>, transform_indices = @transform_6, window_bounds = array<i64: 1, 32>}, {pipeline_mode = #tpu.pipeline_mode<synchronous>, transform_indices = @transform_7, window_bounds = array<i64: 1, 32>}, {pipeline_mode = #tpu.pipeline_mode<synchronous>, transform_indices = @transform_8, window_bounds = array<i64: 1, 32>}, {pipeline_mode = #tpu.pipeline_mode<synchronous>, transform_indices = @transform_9, window_bounds = array<i64: 1, 32>}, {transform_indices = @transform_10, window_bounds = array<i64: 32, 32>}]} {
    %c0_i32 = arith.constant 0 : i32
    %0 = arith.cmpi eq, %arg1, %c0_i32 : i32
    %1 = arith.extui %0 : i1 to i32
    %c0_i32_0 = arith.constant 0 : i32
    %2 = arith.cmpi ne, %1, %c0_i32_0 : i32
    scf.if %2 {
      %cst_41 = arith.constant 0.000000e+00 : f32
      %96 = vector.broadcast %cst_41 : f32 to vector<32x32xf32>
      %c0_42 = arith.constant 0 : index
      %c0_43 = arith.constant 0 : index
      %97 = vector.load %arg13[%c0_42, %c0_43] : memref<32x32xf32, #tpu.memory_space<vmem>>, vector<32x32xf32>
      tpu.vector_store %arg13[%c0_42, %c0_43], %96 {strides = array<i32>} : memref<32x32xf32, #tpu.memory_space<vmem>>, vector<32x32xf32>,
      %cst_44 = arith.constant 0.000000e+00 : f32
      %98 = vector.broadcast %cst_44 : f32 to vector<32x32xf32>
      %c0_45 = arith.constant 0 : index
      %c0_46 = arith.constant 0 : index
      %99 = vector.load %arg14[%c0_45, %c0_46] : memref<32x32xf32, #tpu.memory_space<vmem>>, vector<32x32xf32>
      tpu.vector_store %arg14[%c0_45, %c0_46], %98 {strides = array<i32>} : memref<32x32xf32, #tpu.memory_space<vmem>>, vector<32x32xf32>,
    } else {
    }
    %c0 = arith.constant 0 : index
    %c0_1 = arith.constant 0 : index
    %3 = vector.load %arg4[%c0, %c0_1] : memref<32x16xbf16, #tpu.memory_space<vmem>>, vector<32x16xbf16>
    %4 = arith.extf %3 : vector<32x16xbf16> to vector<32x16xf32>
    %5 = vector.shape_cast %4 : vector<32x16xf32> to vector<32x1x16xf32>
    %6 = vector.shape_cast %5 : vector<32x1x16xf32> to vector<32x1x16xf32>
    %7 = vector.broadcast %6 : vector<32x1x16xf32> to vector<32x16x16xf32>
    %8 = tpu.iota {dimensions = array<i32: 0>} : vector<16x16xi32>
    %cst = arith.constant 0.000000e+00 : f32
    %9 = vector.broadcast %cst : f32 to vector<32x16x1xf32>
    %10 = vector.extract_strided_slice %7 {offsets = [0, 0, 0], sizes = [32, 16, 15], strides = [1, 1, 1]} : vector<32x16x16xf32> to vector<32x16x15xf32>
    %11 = tpu.concatenate %9, %10 in 2 : vector<32x16x1xf32>, vector<32x16x15xf32> -> vector<32x16x16xf32>
    %c1_i32 = arith.constant 1 : i32
    %12 = vector.broadcast %c1_i32 : i32 to vector<16x16xi32>
    %13 = arith.andi %8, %12 : vector<16x16xi32>
    %14 = vector.shape_cast %13 : vector<16x16xi32> to vector<1x16x16xi32>
    %15 = vector.shape_cast %14 : vector<1x16x16xi32> to vector<1x16x16xi32>
    %16 = vector.broadcast %15 : vector<1x16x16xi32> to vector<32x16x16xi32>
    %c0_i32_2 = arith.constant 0 : i32
    %17 = vector.broadcast %c0_i32_2 : i32 to vector<32x16x16xi32>
    %18 = arith.cmpi ne, %16, %17 : vector<32x16x16xi32>
    %19 = arith.select %18, %11, %7 : vector<32x16x16xi1>, vector<32x16x16xf32>
    %cst_3 = arith.constant 0.000000e+00 : f32
    %20 = vector.broadcast %cst_3 : f32 to vector<32x16x2xf32>
    %21 = vector.extract_strided_slice %19 {offsets = [0, 0, 0], sizes = [32, 16, 14], strides = [1, 1, 1]} : vector<32x16x16xf32> to vector<32x16x14xf32>
    %22 = tpu.concatenate %20, %21 in 2 : vector<32x16x2xf32>, vector<32x16x14xf32> -> vector<32x16x16xf32>
    %c2_i32 = arith.constant 2 : i32
    %23 = vector.broadcast %c2_i32 : i32 to vector<16x16xi32>
    %24 = arith.andi %8, %23 : vector<16x16xi32>
    %25 = vector.shape_cast %24 : vector<16x16xi32> to vector<1x16x16xi32>
    %26 = vector.shape_cast %25 : vector<1x16x16xi32> to vector<1x16x16xi32>
    %27 = vector.broadcast %26 : vector<1x16x16xi32> to vector<32x16x16xi32>
    %c0_i32_4 = arith.constant 0 : i32
    %28 = vector.broadcast %c0_i32_4 : i32 to vector<32x16x16xi32>
    %29 = arith.cmpi ne, %27, %28 : vector<32x16x16xi32>
    %30 = arith.select %29, %22, %19 : vector<32x16x16xi1>, vector<32x16x16xf32>
    %cst_5 = arith.constant 0.000000e+00 : f32
    %31 = vector.broadcast %cst_5 : f32 to vector<32x16x4xf32>
    %32 = vector.extract_strided_slice %30 {offsets = [0, 0, 0], sizes = [32, 16, 12], strides = [1, 1, 1]} : vector<32x16x16xf32> to vector<32x16x12xf32>
    %33 = tpu.concatenate %31, %32 in 2 : vector<32x16x4xf32>, vector<32x16x12xf32> -> vector<32x16x16xf32>
    %c4_i32 = arith.constant 4 : i32
    %34 = vector.broadcast %c4_i32 : i32 to vector<16x16xi32>
    %35 = arith.andi %8, %34 : vector<16x16xi32>
    %36 = vector.shape_cast %35 : vector<16x16xi32> to vector<1x16x16xi32>
    %37 = vector.shape_cast %36 : vector<1x16x16xi32> to vector<1x16x16xi32>
    %38 = vector.broadcast %37 : vector<1x16x16xi32> to vector<32x16x16xi32>
    %c0_i32_6 = arith.constant 0 : i32
    %39 = vector.broadcast %c0_i32_6 : i32 to vector<32x16x16xi32>
    %40 = arith.cmpi ne, %38, %39 : vector<32x16x16xi32>
    %41 = arith.select %40, %33, %30 : vector<32x16x16xi1>, vector<32x16x16xf32>
    %cst_7 = arith.constant 0.000000e+00 : f32
    %42 = vector.broadcast %cst_7 : f32 to vector<32x16x8xf32>
    %43 = vector.extract_strided_slice %41 {offsets = [0, 0, 0], sizes = [32, 16, 8], strides = [1, 1, 1]} : vector<32x16x16xf32> to vector<32x16x8xf32>
    %44 = tpu.concatenate %42, %43 in 2 : vector<32x16x8xf32>, vector<32x16x8xf32> -> vector<32x16x16xf32>
    %c8_i32 = arith.constant 8 : i32
    %45 = vector.broadcast %c8_i32 : i32 to vector<16x16xi32>
    %46 = arith.andi %8, %45 : vector<16x16xi32>
    %47 = vector.shape_cast %46 : vector<16x16xi32> to vector<1x16x16xi32>
    %48 = vector.shape_cast %47 : vector<1x16x16xi32> to vector<1x16x16xi32>
    %49 = vector.broadcast %48 : vector<1x16x16xi32> to vector<32x16x16xi32>
    %c0_i32_8 = arith.constant 0 : i32
    %50 = vector.broadcast %c0_i32_8 : i32 to vector<32x16x16xi32>
    %51 = arith.cmpi ne, %49, %50 : vector<32x16x16xi32>
    %52 = arith.select %51, %44, %41 : vector<32x16x16xi1>, vector<32x16x16xf32>
    %53 = arith.truncf %52 : vector<32x16x16xf32> to vector<32x16x16xbf16>
    %c0_9 = arith.constant 0 : index
    %c0_10 = arith.constant 0 : index
    %c0_11 = arith.constant 0 : index
    %54 = vector.load %arg3[%c0_9, %c0_10, %c0_11] : memref<32x2x16xbf16, #tpu.memory_space<vmem>>, vector<32x2x16xbf16>
    %cst_12 = arith.constant dense<0.000000e+00> : vector<32x2x16xf32>
    %55 = tpu.matmul %54, %53, %cst_12 {dimension_numbers = #tpu.dot_dimension_numbers<[2], [1], [1], [2], [0, 0, 0, 1, 1, 2], [0], [0]>} : vector<32x2x16xbf16>, vector<32x16x16xbf16>, vector<32x2x16xf32> -> vector<32x2x16xf32>
    %56 = arith.extf %54 : vector<32x2x16xbf16> to vector<32x2x16xf32>
    %c0_13 = arith.constant 0 : index
    %c0_14 = arith.constant 0 : index
    %c0_15 = arith.constant 0 : index
    %57 = vector.load %arg5[%c0_13, %c0_14, %c0_15] : memref<32x1x1xf32, #tpu.memory_space<vmem>>, vector<32x1x1xf32>
    %58 = vector.broadcast %57 : vector<32x1x1xf32> to vector<32x2x16xf32>
    %59 = arith.mulf %56, %58 : vector<32x2x16xf32>
    %60 = arith.addf %55, %59 : vector<32x2x16xf32>
    %61 = arith.mulf %60, %60 : vector<32x2x16xf32>
    %62 = arith.mulf %60, %61 : vector<32x2x16xf32>
    %cst_16 = arith.constant 4.471500e-02 : f32
    %63 = vector.broadcast %cst_16 : f32 to vector<32x2x16xf32>
    %64 = arith.mulf %63, %62 : vector<32x2x16xf32>
    %65 = arith.addf %60, %64 : vector<32x2x16xf32>
    %cst_17 = arith.constant 0.797884583 : f32
    %66 = vector.broadcast %cst_17 : f32 to vector<32x2x16xf32>
    %67 = arith.mulf %66, %65 : vector<32x2x16xf32>
    %68 = math.tanh %67 : vector<32x2x16xf32>
    %cst_18 = arith.constant 1.000000e+00 : f32
    %69 = vector.broadcast %cst_18 : f32 to vector<32x2x16xf32>
    %70 = arith.addf %69, %68 : vector<32x2x16xf32>
    %cst_19 = arith.constant 5.000000e-01 : f32
    %71 = vector.broadcast %cst_19 : f32 to vector<32x2x16xf32>
    %72 = arith.mulf %71, %70 : vector<32x2x16xf32>
    %73 = arith.mulf %60, %72 : vector<32x2x16xf32>
    %74 = vector.extract_strided_slice %73 {offsets = [0, 0, 0], sizes = [32, 1, 16], strides = [1, 1, 1]} : vector<32x2x16xf32> to vector<32x1x16xf32>
    %75 = vector.shape_cast %74 : vector<32x1x16xf32> to vector<32x16xf32>
    %76 = arith.truncf %75 : vector<32x16xf32> to vector<32x16xbf16>
    %c0_20 = arith.constant 0 : index
    %c0_21 = arith.constant 0 : index
    %77 = vector.load %arg15[%c0_20, %c0_21] : memref<32x32xbf16, #tpu.memory_space<vmem>>, vector<32x16xbf16>
    tpu.vector_store %arg15[%c0_20, %c0_21], %76 {strides = array<i32>} : memref<32x32xbf16, #tpu.memory_space<vmem>>, vector<32x16xbf16>,
    %78 = vector.extract_strided_slice %73 {offsets = [0, 1, 0], sizes = [32, 1, 16], strides = [1, 1, 1]} : vector<32x2x16xf32> to vector<32x1x16xf32>
    %79 = vector.shape_cast %78 : vector<32x1x16xf32> to vector<32x16xf32>
    %80 = arith.truncf %79 : vector<32x16xf32> to vector<32x16xbf16>
    %c0_22 = arith.constant 0 : index
    %c16 = arith.constant 16 : index
    %81 = vector.load %arg15[%c0_22, %c16] : memref<32x32xbf16, #tpu.memory_space<vmem>>, vector<32x16xbf16>
    tpu.vector_store %arg15[%c0_22, %c16], %80 {strides = array<i32>} : memref<32x32xbf16, #tpu.memory_space<vmem>>, vector<32x16xbf16>,
    %c0_23 = arith.constant 0 : index
    %c0_24 = arith.constant 0 : index
    %82 = vector.load %arg15[%c0_23, %c0_24] : memref<32x32xbf16, #tpu.memory_space<vmem>>, vector<32x32xbf16>
    %c0_25 = arith.constant 0 : index
    %c0_26 = arith.constant 0 : index
    %83 = vector.load %arg13[%c0_25, %c0_26] : memref<32x32xf32, #tpu.memory_space<vmem>>, vector<32x32xf32>
    %c0_27 = arith.constant 0 : index
    %c0_28 = arith.constant 0 : index
    %84 = vector.load %arg6[%c0_27, %c0_28] : memref<32x32xbf16, #tpu.memory_space<vmem>>, vector<32x32xbf16>
    %cst_29 = arith.constant dense<0.000000e+00> : vector<32x32xf32>
    %85 = tpu.matmul %82, %84, %cst_29 {dimension_numbers = #tpu.dot_dimension_numbers<[0], [0], [1], [1], [0, 1, 1, 1], [], []>} : vector<32x32xbf16>, vector<32x32xbf16>, vector<32x32xf32> -> vector<32x32xf32>
    %86 = arith.addf %83, %85 : vector<32x32xf32>
    %c0_30 = arith.constant 0 : index
    %c0_31 = arith.constant 0 : index
    %87 = vector.load %arg13[%c0_30, %c0_31] : memref<32x32xf32, #tpu.memory_space<vmem>>, vector<32x32xf32>
    tpu.vector_store %arg13[%c0_30, %c0_31], %86 {strides = array<i32>} : memref<32x32xf32, #tpu.memory_space<vmem>>, vector<32x32xf32>,
    %c0_32 = arith.constant 0 : index
    %c0_33 = arith.constant 0 : index
    %88 = vector.load %arg14[%c0_32, %c0_33] : memref<32x32xf32, #tpu.memory_space<vmem>>, vector<32x32xf32>
    %c0_34 = arith.constant 0 : index
    %c0_35 = arith.constant 0 : index
    %89 = vector.load %arg7[%c0_34, %c0_35] : memref<32x32xbf16, #tpu.memory_space<vmem>>, vector<32x32xbf16>
    %cst_36 = arith.constant dense<0.000000e+00> : vector<32x32xf32>
    %90 = tpu.matmul %82, %89, %cst_36 {dimension_numbers = #tpu.dot_dimension_numbers<[0], [0], [1], [1], [0, 1, 1, 1], [], []>} : vector<32x32xbf16>, vector<32x32xbf16>, vector<32x32xf32> -> vector<32x32xf32>
    %91 = arith.addf %88, %90 : vector<32x32xf32>
    %c0_37 = arith.constant 0 : index
    %c0_38 = arith.constant 0 : index
    %92 = vector.load %arg14[%c0_37, %c0_38] : memref<32x32xf32, #tpu.memory_space<vmem>>, vector<32x32xf32>
    tpu.vector_store %arg14[%c0_37, %c0_38], %91 {strides = array<i32>} : memref<32x32xf32, #tpu.memory_space<vmem>>, vector<32x32xf32>,
    %c0_i32_39 = arith.constant 0 : i32
    %93 = arith.cmpi eq, %arg1, %c0_i32_39 : i32
    %94 = arith.extui %93 : i1 to i32
    %c0_i32_40 = arith.constant 0 : i32
    %95 = arith.cmpi ne, %94, %c0_i32_40 : i32
    scf.if %95 {
      %c0_41 = arith.constant 0 : index
      %c0_42 = arith.constant 0 : index
      %96 = vector.load %arg13[%c0_41, %c0_42] : memref<32x32xf32, #tpu.memory_space<vmem>>, vector<32x32xf32>
      %c0_43 = arith.constant 0 : index
      %c0_44 = arith.constant 0 : index
      %97 = vector.load %arg8[%c0_43, %c0_44] : memref<1x32xf32, #tpu.memory_space<vmem>>, vector<1x32xf32>
      %98 = vector.broadcast %97 : vector<1x32xf32> to vector<32x32xf32>
      %99 = arith.addf %96, %98 : vector<32x32xf32>
      %c0_45 = arith.constant 0 : index
      %c0_46 = arith.constant 0 : index
      %100 = vector.load %arg14[%c0_45, %c0_46] : memref<32x32xf32, #tpu.memory_space<vmem>>, vector<32x32xf32>
      %c0_47 = arith.constant 0 : index
      %c0_48 = arith.constant 0 : index
      %101 = vector.load %arg9[%c0_47, %c0_48] : memref<1x32xf32, #tpu.memory_space<vmem>>, vector<1x32xf32>
      %102 = vector.broadcast %101 : vector<1x32xf32> to vector<32x32xf32>
      %103 = arith.addf %100, %102 : vector<32x32xf32>
      %104 = arith.negf %103 : vector<32x32xf32>
      %105 = math.exp %104 : vector<32x32xf32>
      %cst_49 = arith.constant 1.000000e+00 : f32
      %106 = vector.broadcast %cst_49 : f32 to vector<32x32xf32>
      %107 = arith.addf %106, %105 : vector<32x32xf32>
      %108 = arith.divf %106, %107 : vector<32x32xf32>
      %109 = arith.mulf %99, %108 : vector<32x32xf32>
      %c0_50 = arith.constant 0 : index
      %c0_51 = arith.constant 0 : index
      %110 = vector.load %arg2[%c0_50, %c0_51] : memref<32x32xbf16, #tpu.memory_space<vmem>>, vector<32x32xbf16>
      %111 = arith.extf %110 : vector<32x32xbf16> to vector<32x32xf32>
      %112 = arith.addf %109, %111 : vector<32x32xf32>
      %cst_52 = arith.constant dense<0.000000e+00> : vector<32xf32>
      %113 = vector.multi_reduction <add>, %112, %cst_52 [1] : vector<32x32xf32> to vector<32xf32>
      %114 = vector.shape_cast %113 : vector<32xf32> to vector<32x1xf32>
      %cst_53 = arith.constant 3.200000e+01 : f32
      %115 = vector.broadcast %cst_53 : f32 to vector<32x1xf32>
      %116 = arith.divf %114, %115 : vector<32x1xf32>
      %117 = vector.broadcast %116 : vector<32x1xf32> to vector<32x32xf32>
      %118 = arith.subf %112, %117 : vector<32x32xf32>
      %119 = arith.mulf %118, %118 : vector<32x32xf32>
      %cst_54 = arith.constant dense<0.000000e+00> : vector<32xf32>
      %120 = vector.multi_reduction <add>, %119, %cst_54 [1] : vector<32x32xf32> to vector<32xf32>
      %121 = vector.shape_cast %120 : vector<32xf32> to vector<32x1xf32>
      %cst_55 = arith.constant 3.200000e+01 : f32
      %122 = vector.broadcast %cst_55 : f32 to vector<32x1xf32>
      %123 = arith.divf %121, %122 : vector<32x1xf32>
      %124 = vector.broadcast %116 : vector<32x1xf32> to vector<32x32xf32>
      %125 = arith.subf %112, %124 : vector<32x32xf32>
      %cst_56 = arith.constant 9.99999974E-6 : f32
      %126 = vector.broadcast %cst_56 : f32 to vector<32x1xf32>
      %127 = arith.addf %123, %126 : vector<32x1xf32>
      %128 = math.rsqrt %127 : vector<32x1xf32>
      %129 = vector.broadcast %128 : vector<32x1xf32> to vector<32x32xf32>
      %130 = arith.mulf %125, %129 : vector<32x32xf32>
      %c0_57 = arith.constant 0 : index
      %c0_58 = arith.constant 0 : index
      %131 = vector.load %arg10[%c0_57, %c0_58] : memref<1x32xf32, #tpu.memory_space<vmem>>, vector<1x32xf32>
      %132 = vector.broadcast %131 : vector<1x32xf32> to vector<32x32xf32>
      %133 = arith.mulf %130, %132 : vector<32x32xf32>
      %c0_59 = arith.constant 0 : index
      %c0_60 = arith.constant 0 : index
      %134 = vector.load %arg11[%c0_59, %c0_60] : memref<1x32xf32, #tpu.memory_space<vmem>>, vector<1x32xf32>
      %135 = vector.broadcast %134 : vector<1x32xf32> to vector<32x32xf32>
      %136 = arith.addf %133, %135 : vector<32x32xf32>
      %137 = arith.truncf %136 : vector<32x32xf32> to vector<32x32xbf16>
      %c0_61 = arith.constant 0 : index
      %c0_62 = arith.constant 0 : index
      %138 = vector.load %arg12[%c0_61, %c0_62] : memref<32x32xbf16, #tpu.memory_space<vmem>>, vector<32x32xbf16>
      tpu.vector_store %arg12[%c0_61, %c0_62], %137 {strides = array<i32>} : memref<32x32xbf16, #tpu.memory_space<vmem>>, vector<32x32xbf16>,
    } else {
    }
    return
  }
  func.func @transform_0(%arg0: i32, %arg1: i32) -> (i32, i32) {
    %c0_i32 = arith.constant 0 : i32
    %c0_i32_0 = arith.constant 0 : i32
    return %arg0, %c0_i32 : i32, i32
  }
  func.func @transform_1(%arg0: i32, %arg1: i32) -> (i32, i32, i32) {
    %c0_i32 = arith.constant 0 : i32
    %c0_i32_0 = arith.constant 0 : i32
    return %arg1, %arg0, %c0_i32 : i32, i32, i32
  }
  func.func @transform_2(%arg0: i32, %arg1: i32) -> (i32, i32) {
    %c0_i32 = arith.constant 0 : i32
    %c0_i32_0 = arith.constant 0 : i32
    return %arg1, %c0_i32 : i32, i32
  }
  func.func @transform_3(%arg0: i32, %arg1: i32) -> (i32, i32, i32) {
    %c0_i32 = arith.constant 0 : i32
    %c0_i32_0 = arith.constant 0 : i32
    %c0_i32_1 = arith.constant 0 : i32
    return %arg1, %c0_i32, %c0_i32_0 : i32, i32, i32
  }
  func.func @transform_4(%arg0: i32, %arg1: i32) -> (i32, i32) {
    %c0_i32 = arith.constant 0 : i32
    %c0_i32_0 = arith.constant 0 : i32
    return %arg1, %c0_i32 : i32, i32
  }
  func.func @transform_5(%arg0: i32, %arg1: i32) -> (i32, i32) {
    %c0_i32 = arith.constant 0 : i32
    %c0_i32_0 = arith.constant 0 : i32
    return %arg1, %c0_i32 : i32, i32
  }
  func.func @transform_6(%arg0: i32, %arg1: i32) -> (i32, i32) {
    %c0_i32 = arith.constant 0 : i32
    %c0_i32_0 = arith.constant 0 : i32
    %c0_i32_1 = arith.constant 0 : i32
    return %c0_i32, %c0_i32_0 : i32, i32
  }
  func.func @transform_7(%arg0: i32, %arg1: i32) -> (i32, i32) {
    %c0_i32 = arith.constant 0 : i32
    %c0_i32_0 = arith.constant 0 : i32
    %c0_i32_1 = arith.constant 0 : i32
    return %c0_i32, %c0_i32_0 : i32, i32
  }
  func.func @transform_8(%arg0: i32, %arg1: i32) -> (i32, i32) {
    %c0_i32 = arith.constant 0 : i32
    %c0_i32_0 = arith.constant 0 : i32
    %c0_i32_1 = arith.constant 0 : i32
    return %c0_i32, %c0_i32_0 : i32, i32
  }
  func.func @transform_9(%arg0: i32, %arg1: i32) -> (i32, i32) {
    %c0_i32 = arith.constant 0 : i32
    %c0_i32_0 = arith.constant 0 : i32
    %c0_i32_1 = arith.constant 0 : i32
    return %c0_i32, %c0_i32_0 : i32, i32
  }
  func.func @transform_10(%arg0: i32, %arg1: i32) -> (i32, i32) {
    %c0_i32 = arith.constant 0 : i32
    %c0_i32_0 = arith.constant 0 : i32
    return %arg0, %c0_i32 : i32, i32
  }
}

module attributes {stable_mosaic.version = 11 : i64} {
  func.func @_linear_kernel(%arg0: i32, %arg1: memref<32x32xbf16, #tpu.memory_space<vmem>>, %arg2: memref<32x128xbf16, #tpu.memory_space<vmem>>, %arg3: memref<1x128xf32, #tpu.memory_space<vmem>>, %arg4: memref<32x128xf32, #tpu.memory_space<vmem>>) attributes {dimension_semantics = [#tpu.dimension_semantics<parallel>], iteration_bounds = array<i64: 1>, scalar_prefetch = 0 : i64, scratch_operands = 0 : i64, tpu.core_type = #tpu.core_type<tc>, window_params = [{transform_indices = @transform_0, window_bounds = array<i64: 32, 32>}, {pipeline_mode = #tpu.pipeline_mode<synchronous>, transform_indices = @transform_1, window_bounds = array<i64: 32, 128>}, {pipeline_mode = #tpu.pipeline_mode<synchronous>, transform_indices = @transform_2, window_bounds = array<i64: 1, 128>}, {transform_indices = @transform_3, window_bounds = array<i64: 32, 128>}]} {
    %c0 = arith.constant 0 : index
    %c0_0 = arith.constant 0 : index
    %0 = vector.load %arg1[%c0, %c0_0] : memref<32x32xbf16, #tpu.memory_space<vmem>>, vector<32x32xbf16>
    %c0_1 = arith.constant 0 : index
    %c0_2 = arith.constant 0 : index
    %1 = vector.load %arg2[%c0_1, %c0_2] : memref<32x128xbf16, #tpu.memory_space<vmem>>, vector<32x128xbf16>
    %cst = arith.constant dense<0.000000e+00> : vector<32x128xf32>
    %2 = tpu.matmul %0, %1, %cst {dimension_numbers = #tpu.dot_dimension_numbers<[1], [0], [0], [1], [0, 0, 1, 1], [], []>} : vector<32x32xbf16>, vector<32x128xbf16>, vector<32x128xf32> -> vector<32x128xf32>
    %c0_3 = arith.constant 0 : index
    %c0_4 = arith.constant 0 : index
    %3 = vector.load %arg3[%c0_3, %c0_4] : memref<1x128xf32, #tpu.memory_space<vmem>>, vector<1x128xf32>
    %4 = vector.broadcast %3 : vector<1x128xf32> to vector<32x128xf32>
    %5 = arith.addf %2, %4 : vector<32x128xf32>
    %c0_5 = arith.constant 0 : index
    %c0_6 = arith.constant 0 : index
    %6 = vector.load %arg4[%c0_5, %c0_6] : memref<32x128xf32, #tpu.memory_space<vmem>>, vector<32x128xf32>
    tpu.vector_store %arg4[%c0_5, %c0_6], %5 {strides = array<i32>} : memref<32x128xf32, #tpu.memory_space<vmem>>, vector<32x128xf32>,
    return
  }
  func.func @transform_0(%arg0: i32) -> (i32, i32) {
    %c0_i32 = arith.constant 0 : i32
    %c0_i32_0 = arith.constant 0 : i32
    return %arg0, %c0_i32 : i32, i32
  }
  func.func @transform_1(%arg0: i32) -> (i32, i32) {
    %c0_i32 = arith.constant 0 : i32
    %c0_i32_0 = arith.constant 0 : i32
    %c0_i32_1 = arith.constant 0 : i32
    return %c0_i32, %c0_i32_0 : i32, i32
  }
  func.func @transform_2(%arg0: i32) -> (i32, i32) {
    %c0_i32 = arith.constant 0 : i32
    %c0_i32_0 = arith.constant 0 : i32
    %c0_i32_1 = arith.constant 0 : i32
    return %c0_i32, %c0_i32_0 : i32, i32
  }
  func.func @transform_3(%arg0: i32) -> (i32, i32) {
    %c0_i32 = arith.constant 0 : i32
    %c0_i32_0 = arith.constant 0 : i32
    return %arg0, %c0_i32 : i32, i32
  }
}

</mosaic_0001>

<bundles_post_ra>
// kernel: s4_model_forward.7
= control target key start
LH: loop header
LB: loop body
LE: loop exit
PB: predicated region body
PF: predicated region fallthrough
CT: control target
= control target key end

     0   :  { %vm49_vm0 = vcmask 261120   ;;  %s155_s1 = inlined_call_operand.vmem [shape: bf16[32,128], index: 1, kind: input, shape index: {}]   ;;  %s156_s2 = inlined_call_operand.vmem [shape: f32[1,128], index: 2, kind: input, shape index: {}]   ;;  %s157_s0 = inlined_call_operand.vmem [shape: bf16[32,32], index: 0, kind: input, shape index: {}]   ;;  %s158_s3 = inlined_call_operand.vmem [shape: f32[32,128], index: 3, kind: output, shape index: {}]  }
   0x1   :  { %v104_v0 = vld [vmem:[%s155_s1 + $0x8] sm:$0xff]  ;;  %v103_v1 = vld [vmem:[%s155_s1] sm:$0xff] }
   0x2   :  { %62 = vmatpush.bf16.msra.mxu0 %v104_v0  ;;  %105 = vmatpush.bf16.msra.mxu1 %v104_v0  ;;  %v101_v2 = vld [vmem:[%s157_s0] sm:$0xff]  ;;  %v102_v3 = vld [vmem:[%s157_s0 + $0x8] sm:$0xff] }
   0x3   :  { %v107_v4 = vld [vmem:[%s156_s2] ss:$0 sm:$0xff] }
   0x6   :  { %63 = vmatpush.bf16.msra.mxu0 %v103_v1  ;;  %106 = vmatpush.bf16.msra.mxu1 %v103_v1 }
   0x9   :  { %99 = vmatmul.msk.bf16.vlgmr.msra.gmra.mxu0 %vm49_vm0, %v101_v2  ;;  %100 = vmatmul.msk.bf16.vlgmr.msra.gmra.mxu1 %vm49_vm0, %v102_v3 }
  0x86   :  { %v65_v5 = vpop.f32.mrf.mxu0  ;;  %v70_v6 = vpop.f32.mrf.mxu1 }
  0x87   :  { %v66_v7 = vadd.f32 %v107_v4, %v65_v5  ;;  %v71_v8 = vadd.f32 %v107_v4, %v70_v6 }
  0x89   :  { %75 = vst [vmem:[%s158_s3] sm:$0xff] %v66_v7 }
  0x8a   :  { %77 = vst [vmem:[%s158_s3 + $0x10] sm:$0xff] %v71_v8 }
  0x8e   :  { %v67_v9 = vpop.f32.mrf.mxu0  ;;  %v72_v10 = vpop.f32.mrf.mxu1 }
  0x8f   :  { %v68_v11 = vadd.f32 %v107_v4, %v67_v9  ;;  %v73_v12 = vadd.f32 %v107_v4, %v72_v10 }
  0x91   :  { %76 = vst [vmem:[%s158_s3 + $0x8] sm:$0xff] %v68_v11 }
  0x92   :  { %78 = vst [vmem:[%s158_s3 + $0x18] sm:$0xff] %v73_v12 }

// kernel: s4_model_forward.4
= control target key start
LH: loop header
LB: loop body
LE: loop exit
PB: predicated region body
PF: predicated region fallthrough
CT: control target
= control target key end

     0   :  { %vm41_vm0 = vcmask 130048   ;;  %s147_s1 = inlined_call_operand.vmem [shape: bf16[16,128], index: 1, kind: input, shape index: {}]   ;;  %s148_s0 = inlined_call_operand.vmem [shape: bf16[32,16], index: 0, kind: input, shape index: {}]   ;;  %s149_s2 = inlined_call_operand.vmem [shape: f32[1,128], index: 2, kind: input, shape index: {}]   ;;  %s150_s3 = inlined_call_operand.vmem [shape: bf16[32,128], index: 3, kind: output, shape index: {}]  }
   0x1   :  { %v95_v0 = vld [vmem:[%s147_s1] sm:$0xff]  ;;  %v94_v2 = vld [vmem:[%s148_s0 + $0x8] sm:$0xff] }
   0x2   :  { %v93_v1 = vld [vmem:[%s148_s0] sm:$0xff]  ;;  %55 = vmatpush.bf16.msra.mxu0 %v95_v0  ;;  %107 = vmatpush.bf16.msra.mxu1 %v95_v0 }
   0x3   :  { %v108_v5 = vld [vmem:[%s149_s2] ss:$0 sm:$0xff] }
   0x5   :  { %91 = vmatmul.msk.bf16.vlgmr.msra.gmra.mxu0 %vm41_vm0, %v93_v1  ;;  %92 = vmatmul.msk.bf16.vlgmr.msra.gmra.mxu1 %vm41_vm0, %v94_v2 }
  0x82   :  { %v57_v3 = vpop.f32.mrf.mxu0  ;;  %v62_v4 = vpop.f32.mrf.mxu1 }
  0x83   :  { %v58_v8 = vadd.f32 %v108_v5, %v57_v3  ;;  %v63_v9 = vadd.f32 %v108_v5, %v62_v4 }
  0x8a   :  { %v59_v6 = vpop.f32.mrf.mxu0  ;;  %v64_v7 = vpop.f32.mrf.mxu1 }
  0x8b   :  { %v60_v10 = vadd.f32 %v108_v5, %v59_v6  ;;  %v65_v11 = vadd.f32 %v108_v5, %v64_v7 }
  0x8d   :  { %v99_v12 = vpack.c.bf16 %v60_v10, %v58_v8  ;;  %v104_v13 = vpack.c.bf16 %v65_v11, %v63_v9 }
  0x8f   :  { %100 = vst [vmem:[%s150_s3] sm:$0xff] %v99_v12  }
  0x90   :  { %106 = vst [vmem:[%s150_s3 + $0x8] sm:$0xff] %v104_v13  }

// kernel: s4_model_forward.5
= control target key start
LH: loop header
LB: loop body
LE: loop exit
PB: predicated region body
PF: predicated region fallthrough
CT: control target
= control target key end

     0   :  { %s4241_s15 = smov 1   ;;  %vm252_vm0 = vcmask 7168   ;;  %vm609_vm3 = vcmask 15360   ;;  %s4243_s18 = smov 4   ;;  %vm998_vm6 = vcmask 31744   ;;  %vm1387_vm9 = vcmask 64512   ;;  %s6820_s2 = inlined_call_operand.vmem [shape: bf16[32,16], index: 2, kind: input, shape index: {}]   ;;  %s6821_s1 = inlined_call_operand.vmem [shape: bf16[32,2,16], index: 1, kind: input, shape index: {}]   ;;  %s6822_s3 = inlined_call_operand.vmem [shape: f32[32,1,1], index: 3, kind: input, shape index: {}]   ;;  %s6823_s5 = inlined_call_operand.vmem [shape: bf16[32,32], index: 5, kind: input, shape index: {}]   ;;  %s6824_s4 = inlined_call_operand.vmem [shape: bf16[32,32], index: 4, kind: input, shape index: {}]   ;;  %s6825_s6 = inlined_call_operand.vmem [shape: f32[1,32], index: 6, kind: input, shape index: {}]   ;;  %s6826_s7 = inlined_call_operand.vmem [shape: f32[1,32], index: 7, kind: input, shape index: {}]   ;;  %s6827_s0 = inlined_call_operand.vmem [shape: bf16[32,32], index: 0, kind: input, shape index: {}]   ;;  %s6828_s8 = inlined_call_operand.vmem [shape: f32[1,32], index: 8, kind: input, shape index: {}]   ;;  %s6829_s9 = inlined_call_operand.vmem [shape: f32[1,32], index: 9, kind: input, shape index: {}]   ;;  %s6830_s10 = inlined_call_operand.vmem [shape: bf16[32,32], index: 10, kind: output, shape index: {}]  }
   0x1   :  { %v3593_v0 = vld [vmem:[%s6820_s2] sm:$0xff]   ;;  %v3608_v28 = vld [vmem:[%s6820_s2 + $0x8] sm:$0xff]   ;;  %s4242_s2 = smov 2   ;;  %s4244_s19 = smov 8   ;;  %vm1910_vm10 = vcmask 130048   ;;  %vm2994_vm11 = vcmask 1041409  }
   0x2   :  { %v3594_v1 = vunpack.c.l.bf16 %v3593_v0  ;;  %v3595_v13 = vunpack.c.h.bf16 %v3593_v0  ;;  %v3598_v35 = vunpack.c.l.bf16 %v3608_v28  ;;  %v3599_v54 = vunpack.c.h.bf16 %v3608_v28  ;;  %s4246_s24 = smov 16  }
   0x3   :  { %v153_v28 = vlaneseq  ;;  %vm2997_vm12 = vcmask 1042434   ;;  %vm3000_vm13 = vcmask 1043459   ;;  %vm3003_vm14 = vcmask 1044484  }
   0x4   :  { %v64_v2 = vrot.slane %v3594_v1, 4  ;;  %v65_v3 = vrot.slane %v3594_v1, 5  ;;  %v61_v4 = vrot.slane %v3594_v1, 1  ;;  %v4307_v5 = vperm.slane %v3594_v1, 0 }
   0x5   :  { %v66_v6 = vrot.slane %v3594_v1, 6  ;;  %v67_v7 = vrot.slane %v3594_v1, 7  ;;  %v62_v8 = vrot.slane %v3594_v1, 2  ;;  %v63_v9 = vrot.slane %v3594_v1, 3 }
   0x6   :  { %v4309_v10 = vperm.slane %v64_v2, 0  ;;  %v4311_v11 = vperm.slane %v65_v3, 0  ;;  %v4313_v12 = vperm.slane %v61_v4, 0  ;;  %v68_v20 = vrot.slane %v3595_v13, 1 }
   0x7   :  { %v4319_v16 = vperm.slane %v66_v6, 0  ;;  %v4321_v17 = vperm.slane %v67_v7, 0  ;;  %v4323_v18 = vperm.slane %v62_v8, 0  ;;  %v4325_v19 = vperm.slane %v63_v9, 0 }
   0x8   :  { %v3628_v14 = vpack.i.bf16 %v4311_v11, %v4309_v10  ;;  %v3618_v15 = vpack.i.bf16 %v4313_v12, %v4307_v5  ;;  %v4329_v21 = vperm.slane %v3595_v13, 0  ;;  %v73_v22 = vrot.slane %v3595_v13, 6 }
   0x9   :  { %v4331_v23 = vperm.slane %v68_v20, 0  ;;  %v3633_v24 = vpack.i.bf16 %v4321_v17, %v4319_v16  ;;  %v3623_v25 = vpack.i.bf16 %v4325_v19, %v4323_v18  ;;  %v74_v26 = vrot.slane %v3595_v13, 7 }
   0xa   :  { %3629 = vrot.lane.b32.xlu1 %v3628_v14, %s4241_s15  ;;  %3619 = vrot.lane.b32.xlu0 %v3618_v15, %s4241_s15  ;;  %v69_v27 = vrot.slane %v3595_v13, 2  ;;  %v71_v29 = vrot.slane %v3595_v13, 4  ;;  %v72_v30 = vrot.slane %v3595_v13, 5  ;;  %v70_v32 = vrot.slane %v3595_v13, 3 }
   0xb   :  { %v3638_v31 = vpack.i.bf16 %v4331_v23, %v4329_v21  ;;  %v4349_v36 = vperm.slane %v73_v22, 0  ;;  %v4351_v37 = vperm.slane %v74_v26, 0  ;;  %v75_v41 = vrot.slane %v3598_v35, 1 }
   0xc   :  { %v4343_v33 = vperm.slane %v69_v27, 0  ;;  %v4345_v34 = vperm.slane %v70_v32, 0  ;;  %v4353_v38 = vperm.slane %v71_v29, 0  ;;  %v4355_v39 = vperm.slane %v72_v30, 0 }
   0xd   :  { %3639 = vrot.lane.b32.xlu2 %v3638_v31, %s4241_s15  ;;  %v76_v42 = vrot.slane %v3598_v35, 2  ;;  %v77_v43 = vrot.slane %v3598_v35, 3  ;;  %v3653_v44 = vpack.i.bf16 %v4351_v37, %v4349_v36  ;;  %v78_v46 = vrot.slane %v3598_v35, 4 }
   0xe   :  { %v3643_v40 = vpack.i.bf16 %v4345_v34, %v4343_v33  ;;  %v3648_v45 = vpack.i.bf16 %v4355_v39, %v4353_v38  ;;  %v79_v47 = vrot.slane %v3598_v35, 5  ;;  %v4364_v48 = vperm.slane %v3598_v35, 0 }
   0xf   :  { %v4366_v49 = vperm.slane %v75_v41, 0  ;;  %v4368_v50 = vperm.slane %v76_v42, 0  ;;  %v4370_v51 = vperm.slane %v77_v43, 0  ;;  %v4374_v52 = vperm.slane %v78_v46, 0 }
  0x10   :  { %6883 = vst [vmem:[#allocation5_spill] sm:$0xff] %v4364_v48  ;;  %v4376_v53 = vperm.slane %v79_v47, 0  ;;  %v80_v57 = vrot.slane %v3598_v35, 6  ;;  %v81_v59 = vrot.slane %v3598_v35, 7  ;;  %v83_v60 = vrot.slane %v3599_v54, 2 }
  0x11   :  { %6884 = vst [vmem:[#allocation6_spill] sm:$0xff] %v4366_v49  ;;  %v3658_v55 = vpack.i.bf16 %v4366_v49, %v4364_v48  ;;  %v3663_v56 = vpack.i.bf16 %v4370_v51, %v4368_v50  ;;  %v84_v61 = vrot.slane %v3599_v54, 3  ;;  %v82_v2 = vrot.slane %v3599_v54, 1 }
  0x12   :  { %3634 = vrot.lane.b32.xlu1 %v3633_v24, %s4241_s15  ;;  %3624 = vrot.lane.b32.xlu0 %v3623_v25, %s4241_s15  ;;  %v3668_v58 = vpack.i.bf16 %v4376_v53, %v4374_v52  ;;  %v4387_v62 = vperm.slane %v80_v57, 0  ;;  %v4389_v63 = vperm.slane %v81_v59, 0  ;;  %v4391_v0 = vperm.slane %v83_v60, 0 }
  0x13   :  { %v4393_v1 = vperm.slane %v84_v61, 0  ;;  %v87_v6 = vrot.slane %v3599_v54, 6  ;;  %v88_v7 = vrot.slane %v3599_v54, 7  ;;  %v4401_v8 = vperm.slane %v3599_v54, 0 }
  0x14   :  { %6885 = vst [vmem:[#allocation7_spill] sm:$0xff] %v4391_v0  ;;  %v3673_v3 = vpack.i.bf16 %v4389_v63, %v4387_v62  ;;  %v4403_v9 = vperm.slane %v82_v2, 0  ;;  %v85_v22 = vrot.slane %v3599_v54, 4  ;;  %v86_v24 = vrot.slane %v3599_v54, 5 }
  0x15   :  { %3644 = vrot.lane.b32.xlu2 %v3643_v40, %s4241_s15  ;;  %6886 = vst [vmem:[#allocation8_spill] sm:$0xff] %v4393_v1  ;;  %v3678_v4 = vpack.i.bf16 %v4393_v1, %v4391_v0  ;;  %v4405_v13 = vperm.slane %v87_v6, 0  ;;  %v4407_v14 = vperm.slane %v88_v7, 0  ;;  %v4422_v29 = vshrl.u32 %v153_v28, 7 }
  0x16   :  { %6887 = vst [vmem:[#allocation9_spill] sm:$0xff] %v4401_v8  ;;  %v3683_v15 = vpack.i.bf16 %v4403_v9, %v4401_v8  ;;  %v4415_v25 = vperm.slane %v85_v22, 0  ;;  %v4417_v26 = vperm.slane %v86_v24, 0  ;;  %vm3006_vm15 = vcmask 1045509  }
  0x17   :  { %6888 = vst [vmem:[#allocation10_spill] sm:$0xff] %v4403_v9  ;;  %v3688_v20 = vpack.i.bf16 %v4407_v14, %v4405_v13  ;;  %v4425_v30 = vadd.s32 8, %v4422_v29  ;;  %v285_v35 = vand.u32 1, %v4422_v29 }
  0x18   :  { %6889 = vst [vmem:[#allocation11_spill] sm:$0xff] %v4405_v13  ;;  %v3693_v27 = vpack.i.bf16 %v4417_v26, %v4415_v25 }
  0x19   :  { %6890 = vst [vmem:[#allocation12_spill] sm:$0xff] %v4407_v14  ;;  %v286_v32 = vand.u32 1, %v4425_v30  ;;  %vm4433_vm2 = vcmp.ne.s32.totalorder %v285_v35, 0 }
  0x1a   :  { %3654 = vrot.lane.b32.xlu1 %v3653_v44, %s4241_s15  ;;  %3649 = vrot.lane.b32.xlu0 %v3648_v45, %s4241_s15  ;;  %6891 = vst [vmem:[#allocation13_spill] sm:$0xff] %v4415_v25 }
  0x1b   :  { %6892 = vst [vmem:[#allocation14_spill] sm:$0xff] %v4417_v26  ;;  %vm4429_vm1 = vcmp.ne.s32.totalorder %v286_v32, 0 }
  0x1c   :  { %6893 = vst [vmem:[#allocation15_spill] sm:$0xff] %v4422_v29 }
  0x1d   :  { %3659 = vrot.lane.b32.xlu2 %v3658_v55, %s4241_s15 }
  0x22   :  { %3664 = vrot.lane.b32.xlu1 %v3663_v56, %s4241_s15  ;;  %3669 = vrot.lane.b32.xlu0 %v3668_v58, %s4241_s15 }
  0x2a   :  { %3674 = vrot.lane.b32.xlu1 %v3673_v3, %s4241_s15  ;;  %3679 = vrot.lane.b32.xlu0 %v3678_v4, %s4241_s15 }
  0x32   :  { %3684 = vrot.lane.b32.xlu0 %v3683_v15, %s4241_s15  ;;  %3689 = vrot.lane.b32.xlu1 %v3688_v20, %s4241_s15 }
  0x3a   :  { %3694 = vrot.lane.b32.xlu1 %v3693_v27, %s4241_s15 }
  0x67   :  { %v3640_v31 = vpop.permute.xlu2 %3639 }
  0x68   :  { %v3642_v40 = vunpack.i.h.bf16 %v3640_v31  ;;  %v3641_v41 = vunpack.i.l.bf16 %v3640_v31 }
  0x6a   :  { %v4440_v58 = vsel %vm252_vm0, 0.0, %v3642_v40  ;;  %v4443_v59 = vsel %vm252_vm0, 0.0, %v3641_v41 }
  0x6f   :  { %v3645_v20 = vpop.permute.xlu2 %3644 }
  0x70   :  { %v3647_v31 = vunpack.i.h.bf16 %v3645_v20  ;;  %v3646_v32 = vunpack.i.l.bf16 %v3645_v20 }
  0x7c   :  { %v3630_v42 = vpop.permute.xlu1 %3629  ;;  %v3620_v43 = vpop.permute.xlu0 %3619 }
  0x7d   :  { %v3632_v46 = vunpack.i.h.bf16 %v3630_v42  ;;  %v3631_v47 = vunpack.i.l.bf16 %v3630_v42  ;;  %v3622_v54 = vunpack.i.h.bf16 %v3620_v43  ;;  %v3621_v55 = vunpack.i.l.bf16 %v3620_v43 }
  0x7f   :  { %v254_v56 = vsel %vm252_vm0, 0.0, %v3622_v54  ;;  %v253_v57 = vsel %vm252_vm0, 0.0, %v3621_v55  ;;  %v4466_v4 = vsel %vm252_vm0, 0.0, %v3632_v46  ;;  %v4469_v6 = vsel %vm252_vm0, 0.0, %v3631_v47 }
  0x80   :  { %v4448_v60 = vsel %vm4429_vm1, %v253_v57, %v4307_v5  ;;  %v4453_v61 = vsel %vm4429_vm1, %v254_v56, %v4313_v12  ;;  %v4458_v2 = vsel %vm4433_vm2, %v253_v57, %v4307_v5  ;;  %v4463_v3 = vsel %vm4433_vm2, %v254_v56, %v4313_v12 }
  0x81   :  { %v3698_v7 = vpack.i.bf16 %v4453_v61, %v4448_v60  ;;  %v3718_v15 = vpack.i.bf16 %v4463_v3, %v4458_v2  ;;  %v4481_v5 = vsel %vm4429_vm1, %v4443_v59, %v4329_v21  ;;  %v4487_v12 = vsel %vm4429_vm1, %v4440_v58, %v4331_v23 }
  0x82   :  { %6898 = vst [vmem:[#allocation16_spill] sm:$0xff] %v4481_v5  ;;  %v4493_v27 = vsel %vm4429_vm1, %v4469_v6, %v4309_v10  ;;  %v4499_v28 = vsel %vm4429_vm1, %v4466_v4, %v4311_v11  ;;  %v3728_v56 = vpack.i.bf16 %v4487_v12, %v4481_v5  ;;  %v4518_v57 = vsel %vm252_vm0, 0.0, %v3647_v31 }
  0x83   :  { %3699 = vrot.lane.b32.xlu0 %v3698_v7, %s4242_s2  ;;  %3719 = vrot.lane.b32.xlu1 %v3718_v15, %s4242_s2  ;;  %6899 = vst [vmem:[#allocation17_spill] sm:$0xff] %v4487_v12  ;;  %v3713_v47 = vpack.i.bf16 %v4499_v28, %v4493_v27 }
  0x84   :  { %v3635_v22 = vpop.permute.xlu1 %3634  ;;  %v3625_v24 = vpop.permute.xlu0 %3624  ;;  %6900 = vst [vmem:[#allocation18_spill] sm:$0xff] %v4499_v28 }
  0x85   :  { %v3637_v35 = vunpack.i.h.bf16 %v3635_v22  ;;  %v3636_v40 = vunpack.i.l.bf16 %v3635_v22  ;;  %v3627_v41 = vunpack.i.h.bf16 %v3625_v24  ;;  %v3626_v42 = vunpack.i.l.bf16 %v3625_v24 }
  0x86   :  { %v4525_v22 = vsel %vm252_vm0, 0.0, %v3646_v32 }
  0x87   :  { %v256_v43 = vsel %vm252_vm0, 0.0, %v3627_v41  ;;  %v255_v46 = vsel %vm252_vm0, 0.0, %v3626_v42  ;;  %v260_v7 = vsel %vm252_vm0, 0.0, %v3637_v35  ;;  %v259_v15 = vsel %vm252_vm0, 0.0, %v3636_v40 }
  0x88   :  { %v4508_v54 = vsel %vm4429_vm1, %v255_v46, %v4323_v18  ;;  %v4513_v55 = vsel %vm4429_vm1, %v256_v43, %v4325_v19  ;;  %v4533_v31 = vsel %vm4429_vm1, %v259_v15, %v4319_v16  ;;  %v4538_v35 = vsel %vm4429_vm1, %v260_v7, %v4321_v17 }
  0x89   :  { %v3703_v20 = vpack.i.bf16 %v4513_v55, %v4508_v54  ;;  %v4544_v32 = vsel %vm4429_vm1, %v4525_v22, %v4343_v33  ;;  %v4550_v40 = vsel %vm4429_vm1, %v4518_v57, %v4345_v34  ;;  %v3708_v26 = vpack.i.bf16 %v4538_v35, %v4533_v31 }
  0x8a   :  { %6901 = vst [vmem:[#allocation19_spill] sm:$0xff] %v4544_v32  ;;  %v3723_v25 = vpack.i.bf16 %v4550_v40, %v4544_v32  ;;  %v4582_v5 = vsel %vm4433_vm2, %v259_v15, %v4319_v16  ;;  %v4597_v16 = vsel %vm4433_vm2, %v256_v43, %v4325_v19 }
  0x8b   :  { %3704 = vrot.lane.b32.xlu2 %v3703_v20, %s4242_s2  ;;  %3714 = vrot.lane.b32.xlu0 %v3713_v47, %s4242_s2  ;;  %6902 = vst [vmem:[#allocation20_spill] sm:$0xff] %v4550_v40  ;;  %v4587_v40 = vsel %vm4433_vm2, %v260_v7, %v4321_v17 }
  0x8c   :  { %3729 = vrot.lane.b32.xlu1 %v3728_v56, %s4242_s2  ;;  %v3655_v24 = vpop.permute.xlu1 %3654  ;;  %v3650_v41 = vpop.permute.xlu0 %3649  ;;  %6905 = vst [vmem:[#allocation23_spill] sm:$0xff] %v4587_v40 }
  0x8d   :  { %v3657_v42 = vunpack.i.h.bf16 %v3655_v24  ;;  %v3656_v47 = vunpack.i.l.bf16 %v3655_v24  ;;  %v3652_v28 = vunpack.i.h.bf16 %v3650_v41 }
  0x8f   :  { %v4553_v56 = vsel %vm252_vm0, 0.0, %v3657_v42  ;;  %v4556_v20 = vsel %vm252_vm0, 0.0, %v3656_v47  ;;  %v3660_v42 = vpop.permute.xlu2 %3659 }
  0x90   :  { %v4566_v14 = vsel %vm4429_vm1, %v4556_v20, %v4349_v36  ;;  %v4572_v24 = vsel %vm4429_vm1, %v4553_v56, %v4351_v37  ;;  %v3662_v13 = vunpack.i.h.bf16 %v3660_v42  ;;  %v3661_v32 = vunpack.i.l.bf16 %v3660_v42 }
  0x91   :  { %6903 = vst [vmem:[#allocation21_spill] sm:$0xff] %v4566_v14  ;;  %v3738_v47 = vpack.i.bf16 %v4572_v24, %v4566_v14 }
  0x92   :  { %6904 = vst [vmem:[#allocation22_spill] sm:$0xff] %v4572_v24  ;;  %v4623_v43 = vsel %vm252_vm0, 0.0, %v3661_v32 }
  0x93   :  { %3709 = vrot.lane.b32.xlu2 %v3708_v26, %s4242_s2  ;;  %3724 = vrot.lane.b32.xlu0 %v3723_v25, %s4242_s2  ;;  %v3651_v25 = vunpack.i.l.bf16 %v3650_v41  ;;  %6909 = vst [vmem:[#allocation27_spill] sm:$0xff] %v4623_v43  ;;  %v4654_v42 = vsel %vm4429_vm1, %v4623_v43, %v4364_v48 }
  0x94   :  { %3739 = vrot.lane.b32.xlu1 %v3738_v47, %s4242_s2  ;;  %v3665_v12 = vpop.permute.xlu1 %3664  ;;  %v3670_v24 = vpop.permute.xlu0 %3669  ;;  %v4592_v47 = vsel %vm4433_vm2, %v255_v46, %v4323_v18 }
  0x95   :  { %v3667_v14 = vunpack.i.h.bf16 %v3665_v12  ;;  %v3666_v26 = vunpack.i.l.bf16 %v3665_v12  ;;  %v4606_v12 = vsel %vm252_vm0, 0.0, %v3662_v13  ;;  %v4626_v13 = vsel %vm252_vm0, 0.0, %v3652_v28 }
  0x96   :  { %6906 = vst [vmem:[#allocation24_spill] sm:$0xff] %v4606_v12  ;;  %v4629_v46 = vsel %vm252_vm0, 0.0, %v3651_v25  ;;  %v3733_v7 = vpack.i.bf16 %v4597_v16, %v4592_v47  ;;  %v4648_v32 = vsel %vm4429_vm1, %v4626_v13, %v4355_v39 }
  0x97   :  { %v4600_v15 = vsel %vm252_vm0, 0.0, %v3667_v14  ;;  %v4603_v17 = vsel %vm252_vm0, 0.0, %v3666_v26  ;;  %v3748_v14 = vpack.i.bf16 %v4587_v40, %v4582_v5  ;;  %v4642_v28 = vsel %vm4429_vm1, %v4629_v46, %v4353_v38 }
  0x98   :  { %v4612_v18 = vsel %vm4429_vm1, %v4603_v17, %v4368_v50  ;;  %v4618_v19 = vsel %vm4429_vm1, %v4600_v15, %v4370_v51  ;;  %v4660_v26 = vsel %vm4429_vm1, %v4606_v12, %v4366_v49  ;;  %v3743_v12 = vpack.i.bf16 %v4648_v32, %v4642_v28 }
  0x99   :  { %6907 = vst [vmem:[#allocation25_spill] sm:$0xff] %v4612_v18  ;;  %v3758_v41 = vpack.i.bf16 %v4618_v19, %v4612_v18  ;;  %v3763_v49 = vpack.i.bf16 %v4660_v26, %v4654_v42 }
  0x9a   :  { %6908 = vst [vmem:[#allocation26_spill] sm:$0xff] %v4618_v19 }
  0x9b   :  { %3734 = vrot.lane.b32.xlu2 %v3733_v7, %s4242_s2  ;;  %3759 = vrot.lane.b32.xlu0 %v3758_v41, %s4242_s2  ;;  %v4666_v7 = vsel %vm4433_vm2, %v4469_v6, %v4309_v10  ;;  %v4672_v41 = vsel %vm4433_vm2, %v4466_v4, %v4311_v11 }
  0x9c   :  { %3749 = vrot.lane.b32.xlu1 %v3748_v14, %s4242_s2  ;;  %v3675_v25 = vpop.permute.xlu1 %3674  ;;  %v3680_v14 = vpop.permute.xlu0 %3679  ;;  %v3753_v10 = vpack.i.bf16 %v4672_v41, %v4666_v7 }
  0x9d   :  { %v3682_v43 = vunpack.i.h.bf16 %v3680_v14  ;;  %v3681_v48 = vunpack.i.l.bf16 %v3680_v14  ;;  %v3677_v19 = vunpack.i.h.bf16 %v3675_v25  ;;  %v3676_v18 = vunpack.i.l.bf16 %v3675_v25 }
  0x9e   :  { %v3671_v25 = vunpack.i.l.bf16 %v3670_v24 }
  0x9f   :  { %v4681_v6 = vsel %vm252_vm0, 0.0, %v3682_v43  ;;  %v4684_v40 = vsel %vm252_vm0, 0.0, %v3681_v48  ;;  %v4687_v11 = vsel %vm252_vm0, 0.0, %v3677_v19  ;;  %v4690_v4 = vsel %vm252_vm0, 0.0, %v3676_v18 }
  0xa0   :  { %6910 = vst [vmem:[#allocation28_spill] sm:$0xff] %v4681_v6  ;;  %v4699_v43 = vsel %vm4433_vm2, %v4525_v22, %v4343_v33  ;;  %v4705_v48 = vsel %vm4433_vm2, %v4518_v57, %v4345_v34  ;;  %v4723_v22 = vsel %vm4429_vm1, %v4690_v4, %v4387_v62  ;;  %v4729_v34 = vsel %vm4429_vm1, %v4687_v11, %v4389_v63 }
  0xa1   :  { %6911 = vst [vmem:[#allocation29_spill] sm:$0xff] %v4684_v40  ;;  %v3672_v19 = vunpack.i.h.bf16 %v3670_v24  ;;  %v3768_v14 = vpack.i.bf16 %v4705_v48, %v4699_v43  ;;  %v4747_v24 = vsel %vm252_vm0, 0.0, %v3671_v25  ;;  %v4801_v25 = vsel %vm4433_vm2, %v4556_v20, %v4349_v36 }
  0xa2   :  { %6912 = vst [vmem:[#allocation30_spill] sm:$0xff] %v4723_v22 }
  0xa3   :  { %3744 = vrot.lane.b32.xlu2 %v3743_v12, %s4242_s2  ;;  %3764 = vrot.lane.b32.xlu0 %v3763_v49, %s4242_s2  ;;  %v4711_v12 = vsel %vm4429_vm1, %v4684_v40, %v4391_v0  ;;  %v4717_v49 = vsel %vm4429_vm1, %v4681_v6, %v4393_v1  ;;  %6913 = vst [vmem:[#allocation31_spill] sm:$0xff] %v4729_v34  ;;  %v4744_v0 = vsel %vm252_vm0, 0.0, %v3672_v19 }
  0xa4   :  { %3754 = vrot.lane.b32.xlu1 %v3753_v10, %s4242_s2  ;;  %v3685_v33 = vpop.permute.xlu0 %3684  ;;  %v3798_v10 = vpack.i.bf16 %v4717_v49, %v4711_v12  ;;  %v3778_v6 = vpack.i.bf16 %v4729_v34, %v4723_v22  ;;  %6918 = vst [vmem:[#allocation36_spill] sm:$0xff] %v4801_v25 }
  0xa5   :  { %v3687_v57 = vunpack.i.h.bf16 %v3685_v33  ;;  %v3686_v18 = vunpack.i.l.bf16 %v3685_v33  ;;  %v4756_v33 = vsel %vm4433_vm2, %v4443_v59, %v4329_v21  ;;  %v4780_v21 = vsel %vm4429_vm1, %v4747_v24, %v4374_v52 }
  0xa7   :  { %v4738_v1 = vsel %vm252_vm0, 0.0, %v3687_v57  ;;  %v4741_v40 = vsel %vm252_vm0, 0.0, %v3686_v18  ;;  %v4762_v57 = vsel %vm4433_vm2, %v4440_v58, %v4331_v23  ;;  %v4786_v23 = vsel %vm4429_vm1, %v4744_v0, %v4376_v53 }
  0xa8   :  { %6914 = vst [vmem:[#allocation32_spill] sm:$0xff] %v4738_v1  ;;  %v4768_v18 = vsel %vm4429_vm1, %v4741_v40, %v4401_v8  ;;  %v3773_v58 = vpack.i.bf16 %v4762_v57, %v4756_v33  ;;  %v3783_v19 = vpack.i.bf16 %v4786_v23, %v4780_v21 }
  0xa9   :  { %6915 = vst [vmem:[#allocation33_spill] sm:$0xff] %v4741_v40 }
  0xaa   :  { %6916 = vst [vmem:[#allocation34_spill] sm:$0xff] %v4768_v18 }
  0xab   :  { %3769 = vrot.lane.b32.xlu2 %v3768_v14, %s4242_s2  ;;  %3799 = vrot.lane.b32.xlu0 %v3798_v10, %s4242_s2  ;;  %v4807_v14 = vsel %vm4433_vm2, %v4553_v56, %v4351_v37  ;;  %v4813_v10 = vsel %vm4433_vm2, %v4629_v46, %v4353_v38  ;;  %v4827_v37 = vpop.permute.xlu1 %3689  ;;  %v675_v38 = vand.u32 2, %v4425_v30 }
  0xac   :  { %3779 = vrot.lane.b32.xlu1 %v3778_v6, %s4242_s2  ;;  %v4774_v6 = vsel %vm4429_vm1, %v4738_v1, %v4403_v9  ;;  %6919 = vst [vmem:[#allocation37_spill] sm:$0xff] %v4807_v14  ;;  %v3788_v36 = vpack.i.bf16 %v4807_v14, %v4801_v25  ;;  %v6928_v14 = vld [vmem:[#allocation20_spill] sm:$0xff] }
  0xad   :  { %6917 = vst [vmem:[#allocation35_spill] sm:$0xff] %v4774_v6  ;;  %v3803_v59 = vpack.i.bf16 %v4774_v6, %v4768_v18  ;;  %vm4830_vm4 = vcmp.ne.s32.totalorder %v675_v38, 0 }
  0xb3   :  { %3774 = vrot.lane.b32.xlu2 %v3773_v58, %s4242_s2  ;;  %3804 = vrot.lane.b32.xlu0 %v3803_v59, %s4242_s2  ;;  %v4819_v58 = vsel %vm4433_vm2, %v4626_v13, %v4355_v39 }
  0xb4   :  { %3784 = vrot.lane.b32.xlu1 %v3783_v19, %s4242_s2  ;;  %v3793_v20 = vpack.i.bf16 %v4819_v58, %v4813_v10 }
  0xbb   :  { %3789 = vrot.lane.b32.xlu2 %v3788_v36, %s4242_s2 }
  0xbc   :  { %3794 = vrot.lane.b32.xlu1 %v3793_v20, %s4242_s2 }
  0xe5   :  { %v3705_v56 = vpop.permute.xlu2 %3704 }
  0xe6   :  { %v3707_v46 = vunpack.i.h.bf16 %v3705_v56  ;;  %v3706_v59 = vunpack.i.l.bf16 %v3705_v56  ;;  %v4849_v56 = vpop.permute.xlu1 %3694 }
  0xe8   :  { %v617_v13 = vsel %vm609_vm3, 0.0, %v3707_v46  ;;  %v615_v19 = vsel %vm609_vm3, 0.0, %v3706_v59  ;;  %v4855_v46 = vsel %vm4433_vm2, %v4603_v17, %v4368_v50  ;;  %v674_v59 = vand.u32 2, %v4422_v29 }
  0xe9   :  { %v4839_v36 = vsel %vm4830_vm4, %v615_v19, %v4508_v54  ;;  %v4844_v20 = vsel %vm4830_vm4, %v617_v13, %v4513_v55  ;;  %v4861_v54 = vsel %vm4433_vm2, %v4600_v15, %v4370_v51 }
  0xea   :  { %v3813_v38 = vpack.i.bf16 %v4844_v20, %v4839_v36  ;;  %v3818_v55 = vpack.i.bf16 %v4861_v54, %v4855_v46  ;;  %vm4867_vm5 = vcmp.ne.s32.totalorder %v674_v59, 0 }
  0xec   :  { %3814 = vrot.lane.b32.xlu0 %v3813_v38, %s4243_s18 }
  0xed   :  { %v3710_v13 = vpop.permute.xlu2 %3709 }
  0xee   :  { %v3712_v51 = vunpack.i.h.bf16 %v3710_v13  ;;  %v3711_v15 = vunpack.i.l.bf16 %v3710_v13 }
  0xf4   :  { %3819 = vrot.lane.b32.xlu0 %v3818_v55, %s4242_s2 }
  0xf5   :  { %v3700_v19 = vpop.permute.xlu0 %3699  ;;  %v3720_v18 = vpop.permute.xlu1 %3719 }
  0xf6   :  { %v3702_v38 = vunpack.i.h.bf16 %v3700_v19  ;;  %v3701_v6 = vunpack.i.l.bf16 %v3700_v19  ;;  %v3722_v50 = vunpack.i.h.bf16 %v3720_v18  ;;  %v3721_v17 = vunpack.i.l.bf16 %v3720_v18 }
  0xf8   :  { %v613_v9 = vsel %vm609_vm3, 0.0, %v3702_v38  ;;  %v611_v40 = vsel %vm609_vm3, 0.0, %v3701_v6  ;;  %v612_v29 = vsel %vm609_vm3, 0.0, %v3722_v50  ;;  %v610_v55 = vsel %vm609_vm3, 0.0, %v3721_v17  ;;  %v3735_v17 = vpop.permute.xlu2 %3734 }
  0xf9   :  { %v4878_v19 = vsel %vm4830_vm4, %v611_v40, %v4448_v60  ;;  %v4883_v18 = vsel %vm4830_vm4, %v613_v9, %v4453_v61  ;;  %v4890_v6 = vsel %vm4867_vm5, %v610_v55, %v4458_v2  ;;  %v4895_v13 = vsel %vm4867_vm5, %v612_v29, %v4463_v3 }
  0xfa   :  { %v3808_v59 = vpack.i.bf16 %v4883_v18, %v4878_v19  ;;  %6924 = vst [vmem:[#allocation38_spill] sm:$0xff] %v4890_v6  ;;  %v3833_v60 = vpack.i.bf16 %v4895_v13, %v4890_v6  ;;  %v625_v40 = vsel %vm609_vm3, 0.0, %v3712_v51  ;;  %v623_v9 = vsel %vm609_vm3, 0.0, %v3711_v15 }
  0xfb   :  { %6925 = vst [vmem:[#allocation39_spill] sm:$0xff] %v4895_v13  ;;  %v4906_v2 = vsel %vm4830_vm4, %v623_v9, %v4533_v31  ;;  %v4911_v29 = vsel %vm4830_vm4, %v625_v40, %v4538_v35  ;;  %v3737_v13 = vunpack.i.h.bf16 %v3735_v17  ;;  %v3736_v6 = vunpack.i.l.bf16 %v3735_v17  ;;  %v6926_v40 = vld [vmem:[#allocation18_spill] sm:$0xff] }
  0xfc   :  { %3809 = vrot.lane.b32.xlu2 %v3808_v59, %s4243_s18  ;;  %3834 = vrot.lane.b32.xlu1 %v3833_v60, %s4243_s18  ;;  %v3823_v51 = vpack.i.bf16 %v4911_v29, %v4906_v2 }
  0xfd   :  { %v3715_v61 = vpop.permute.xlu0 %3714 }
  0xfe   :  { %v3730_v38 = vpop.permute.xlu1 %3729  ;;  %v3717_v3 = vunpack.i.h.bf16 %v3715_v61  ;;  %v3716_v50 = vunpack.i.l.bf16 %v3715_v61 }
 0x100   :  { %v621_v15 = vsel %vm609_vm3, 0.0, %v3717_v3  ;;  %v619_v55 = vsel %vm609_vm3, 0.0, %v3716_v50  ;;  %v3732_v3 = vunpack.i.h.bf16 %v3730_v38  ;;  %v3731_v50 = vunpack.i.l.bf16 %v3730_v38 }
 0x101   :  { %v4921_v35 = vsel %vm4830_vm4, %v619_v55, %v4493_v27  ;;  %v4926_v61 = vsel %vm4830_vm4, %v621_v15, %v6926_v40  ;;  %v616_v55 = vsel %vm609_vm3, 0.0, %v3737_v13 }
 0x102   :  { %v3828_v38 = vpack.i.bf16 %v4926_v61, %v4921_v35  ;;  %v629_v40 = vsel %vm609_vm3, 0.0, %v3732_v3 }
 0x104   :  { %3824 = vrot.lane.b32.xlu2 %v3823_v51, %s4243_s18 }
 0x105   :  { %v3725_v59 = vpop.permute.xlu0 %3724 }
 0x106   :  { %v3727_v31 = vunpack.i.h.bf16 %v3725_v59  ;;  %v3726_v60 = vunpack.i.l.bf16 %v3725_v59  ;;  %v3740_v9 = vpop.permute.xlu1 %3739  ;;  %v6927_v59 = vld [vmem:[#allocation19_spill] sm:$0xff] }
 0x107   :  { %v3742_v34 = vunpack.i.h.bf16 %v3740_v9 }
 0x108   :  { %v633_v51 = vsel %vm609_vm3, 0.0, %v3727_v31  ;;  %v631_v8 = vsel %vm609_vm3, 0.0, %v3726_v60  ;;  %v614_v31 = vsel %vm609_vm3, 0.0, %v3736_v6  ;;  %v3745_v60 = vpop.permute.xlu2 %3744  ;;  %v4958_v6 = vsel %vm4867_vm5, %v616_v55, %v4597_v16 }
 0x109   :  { %v4933_v17 = vsel %vm4830_vm4, %v631_v8, %v6927_v59  ;;  %v4938_v27 = vsel %vm4830_vm4, %v633_v51, %v6928_v14  ;;  %v627_v8 = vsel %vm609_vm3, 0.0, %v3731_v50  ;;  %v3747_v14 = vunpack.i.h.bf16 %v3745_v60  ;;  %6929 = vst [vmem:[#allocation18_spill] sm:$0xff] %v4958_v6  ;;  %v6930_v50 = vld [vmem:[#allocation16_spill] sm:$0xff] }
 0x10a   :  { %v3838_v15 = vpack.i.bf16 %v4938_v27, %v4933_v17  ;;  %v3746_v51 = vunpack.i.l.bf16 %v3745_v60  ;;  %v4953_v25 = vsel %vm4867_vm5, %v614_v31, %v4592_v47  ;;  %v3741_v47 = vunpack.i.l.bf16 %v3740_v9 }
 0x10b   :  { %v3848_v16 = vpack.i.bf16 %v4958_v6, %v4953_v25  ;;  %v637_v9 = vsel %vm609_vm3, 0.0, %v3747_v14 }
 0x10c   :  { %3839 = vrot.lane.b32.xlu0 %v3838_v15, %s4243_s18  ;;  %3829 = vrot.lane.b32.xlu2 %v3828_v38, %s4243_s18  ;;  %v4963_v15 = vsel %vm4830_vm4, %v627_v8, %v6930_v50  ;;  %v6931_v38 = vld [vmem:[#allocation17_spill] sm:$0xff]  ;;  %v641_v50 = vsel %vm609_vm3, 0.0, %v3742_v34 }
 0x10d   :  { %v4968_v60 = vsel %vm4830_vm4, %v629_v40, %v6931_v38  ;;  %v639_v38 = vsel %vm609_vm3, 0.0, %v3741_v47 }
 0x10e   :  { %v3750_v59 = vpop.permute.xlu1 %3749  ;;  %v3843_v55 = vpack.i.bf16 %v4968_v60, %v4963_v15 }
 0x10f   :  { %v3752_v13 = vunpack.i.h.bf16 %v3750_v59  ;;  %v3751_v3 = vunpack.i.l.bf16 %v3750_v59  ;;  %v6933_v59 = vld [vmem:[#allocation23_spill] sm:$0xff] }
 0x111   :  { %v624_v31 = vsel %vm609_vm3, 0.0, %v3752_v13  ;;  %v622_v22 = vsel %vm609_vm3, 0.0, %v3751_v3  ;;  %v635_v13 = vsel %vm609_vm3, 0.0, %v3746_v51  ;;  %v5003_v51 = vsel %vm4830_vm4, %v637_v9, %v4648_v32 }
 0x112   :  { %v4979_v8 = vsel %vm4867_vm5, %v622_v22, %v4582_v5  ;;  %v4984_v40 = vsel %vm4867_vm5, %v624_v31, %v6933_v59  ;;  %v3760_v5 = vpop.permute.xlu0 %3759  ;;  %v4998_v14 = vsel %vm4830_vm4, %v635_v13, %v4642_v28  ;;  %v6935_v31 = vld [vmem:[#allocation21_spill] sm:$0xff] }
 0x113   :  { %6932 = vst [vmem:[#allocation19_spill] sm:$0xff] %v4979_v8  ;;  %v3863_v3 = vpack.i.bf16 %v4984_v40, %v4979_v8  ;;  %v3761_v28 = vunpack.i.l.bf16 %v3760_v5  ;;  %v3858_v32 = vpack.i.bf16 %v5003_v51, %v4998_v14 }
 0x114   :  { %6934 = vst [vmem:[#allocation20_spill] sm:$0xff] %v4984_v40  ;;  %3849 = vrot.lane.b32.xlu2 %v3848_v16, %s4243_s18  ;;  %3844 = vrot.lane.b32.xlu0 %v3843_v55, %s4243_s18  ;;  %v5008_v16 = vsel %vm4830_vm4, %v639_v38, %v6935_v31  ;;  %v6936_v55 = vld [vmem:[#allocation22_spill] sm:$0xff] }
 0x115   :  { %3864 = vrot.lane.b32.xlu1 %v3863_v3, %s4243_s18  ;;  %v5013_v59 = vsel %vm4830_vm4, %v641_v50, %v6936_v55  ;;  %v3762_v3 = vunpack.i.h.bf16 %v3760_v5  ;;  %v6940_v31 = vld [vmem:[#allocation26_spill] sm:$0xff] }
 0x116   :  { %v3755_v22 = vpop.permute.xlu1 %3754  ;;  %v3853_v9 = vpack.i.bf16 %v5013_v59, %v5008_v16 }
 0x117   :  { %v3757_v34 = vunpack.i.h.bf16 %v3755_v22  ;;  %v3756_v47 = vunpack.i.l.bf16 %v3755_v22  ;;  %v649_v22 = vsel %vm609_vm3, 0.0, %v3762_v3 }
 0x118   :  { %v5048_v55 = vsel %vm4830_vm4, %v649_v22, %v6940_v31  ;;  %v3697_v22 = vunpack.i.h.bf16 %v4849_v56 }
 0x119   :  { %v620_v13 = vsel %vm609_vm3, 0.0, %v3757_v34  ;;  %v618_v6 = vsel %vm609_vm3, 0.0, %v3756_v47  ;;  %v647_v34 = vsel %vm609_vm3, 0.0, %v3761_v28  ;;  %v6939_v47 = vld [vmem:[#allocation25_spill] sm:$0xff] }
 0x11a   :  { %v5024_v38 = vsel %vm4867_vm5, %v618_v6, %v4666_v7  ;;  %v5029_v50 = vsel %vm4867_vm5, %v620_v13, %v4672_v41  ;;  %v3692_v7 = vunpack.i.h.bf16 %v4827_v37  ;;  %v3691_v6 = vunpack.i.l.bf16 %v4827_v37  ;;  %v6941_v37 = vld [vmem:[#allocation11_spill] sm:$0xff] }
 0x11b   :  { %6937 = vst [vmem:[#allocation16_spill] sm:$0xff] %v5024_v38  ;;  %v3868_v5 = vpack.i.bf16 %v5029_v50, %v5024_v38  ;;  %v5043_v41 = vsel %vm4830_vm4, %v647_v34, %v6939_v47  ;;  %v3696_v34 = vunpack.i.l.bf16 %v4849_v56  ;;  %v5078_v47 = vsel %vm252_vm0, 0.0, %v3697_v22  ;;  %v6946_v56 = vld [vmem:[#allocation14_spill] sm:$0xff] }
 0x11c   :  { %6938 = vst [vmem:[#allocation17_spill] sm:$0xff] %v5029_v50  ;;  %3859 = vrot.lane.b32.xlu2 %v3858_v32, %s4243_s18  ;;  %3854 = vrot.lane.b32.xlu0 %v3853_v9, %s4243_s18  ;;  %v5051_v3 = vsel %vm252_vm0, 0.0, %v3692_v7  ;;  %v5054_v28 = vsel %vm252_vm0, 0.0, %v3691_v6  ;;  %v3873_v13 = vpack.i.bf16 %v5048_v55, %v5043_v41  ;;  %v6942_v9 = vld [vmem:[#allocation12_spill] sm:$0xff]  ;;  %v5094_v38 = vsel %vm4429_vm1, %v5078_v47, %v6946_v56  ;;  %v3770_v56 = vpop.permute.xlu2 %3769 }
 0x11d   :  { %3869 = vrot.lane.b32.xlu1 %v3868_v5, %s4243_s18  ;;  %v5063_v32 = vsel %vm4429_vm1, %v5054_v28, %v6941_v37  ;;  %v5069_v5 = vsel %vm4429_vm1, %v5051_v3, %v6942_v9  ;;  %6943 = vst [vmem:[#allocation23_spill] sm:$0xff] %v5078_v47  ;;  %v5081_v31 = vsel %vm252_vm0, 0.0, %v3696_v34  ;;  %v5103_v34 = vsel %vm4433_vm2, %v4690_v4, %v4387_v62 }
 0x11e   :  { %v3898_v7 = vpack.i.bf16 %v5069_v5, %v5063_v32  ;;  %v5075_v6 = vpop.permute.xlu1 %3779  ;;  %6944 = vst [vmem:[#allocation21_spill] sm:$0xff] %v5081_v31  ;;  %vm3009_vm0 = vcmask 1046534  }
 0x125   :  { %3874 = vrot.lane.b32.xlu1 %v3873_v13, %s4243_s18  ;;  %v6945_v13 = vld [vmem:[#allocation13_spill] sm:$0xff] }
 0x126   :  { %v5088_v50 = vsel %vm4429_vm1, %v5081_v31, %v6945_v13  ;;  %v3785_v8 = vpop.permute.xlu1 %3784  ;;  %v3765_v13 = vpop.permute.xlu0 %3764  ;;  %vm3012_vm1 = vcmask 1047559  }
 0x127   :  { %v3908_v22 = vpack.i.bf16 %v5094_v38, %v5088_v50  ;;  %v3787_v44 = vunpack.i.h.bf16 %v3785_v8  ;;  %v3786_v47 = vunpack.i.l.bf16 %v3785_v8 }
 0x129   :  { %v651_v40 = vsel %vm609_vm3, 0.0, %v3786_v47 }
 0x12a   :  { %v5119_v4 = vsel %vm4830_vm4, %v651_v40, %v4780_v21 }
 0x12d   :  { %3899 = vrot.lane.b32.xlu1 %v3898_v7, %s4242_s2  ;;  %v5109_v7 = vsel %vm4433_vm2, %v4687_v11, %v4389_v63 }
 0x12e   :  { %6947 = vst [vmem:[#allocation22_spill] sm:$0xff] %v5109_v7  ;;  %v3918_v31 = vpack.i.bf16 %v5109_v7, %v5103_v34  ;;  %v3795_v62 = vpop.permute.xlu1 %3794  ;;  %v5128_v7 = vpop.permute.xlu2 %3774 }
 0x12f   :  { %v3797_v11 = vunpack.i.h.bf16 %v3795_v62  ;;  %v3796_v8 = vunpack.i.l.bf16 %v3795_v62  ;;  %v3800_v21 = vpop.permute.xlu0 %3799 }
 0x130   :  { %v3801_v62 = vunpack.i.l.bf16 %v3800_v21 }
 0x131   :  { %v636_v47 = vsel %vm609_vm3, 0.0, %v3797_v11 }
 0x135   :  { %3909 = vrot.lane.b32.xlu1 %v3908_v22, %s4242_s2  ;;  %v653_v22 = vsel %vm609_vm3, 0.0, %v3787_v44 }
 0x136   :  { %v5124_v63 = vsel %vm4830_vm4, %v653_v22, %v4786_v23  ;;  %v5141_v23 = vsel %vm4867_vm5, %v636_v47, %v4819_v58  ;;  %v3802_v22 = vunpack.i.h.bf16 %v3800_v21 }
 0x137   :  { %6948 = vst [vmem:[#allocation25_spill] sm:$0xff] %v5124_v63  ;;  %v3943_v44 = vpack.i.bf16 %v5124_v63, %v5119_v4  ;;  %v5148_v63 = vpop.permute.xlu2 %3789  ;;  %v5164_v21 = vpop.permute.xlu0 %3804 }
 0x138   :  { %6950 = vst [vmem:[#allocation11_spill] sm:$0xff] %v5141_v23 }
 0x13d   :  { %3919 = vrot.lane.b32.xlu1 %v3918_v31, %s4242_s2  ;;  %v634_v31 = vsel %vm609_vm3, 0.0, %v3796_v8  ;;  %v665_v8 = vsel %vm609_vm3, 0.0, %v3802_v22 }
 0x13e   :  { %v5136_v40 = vsel %vm4867_vm5, %v634_v31, %v4813_v10  ;;  %v5158_v58 = vsel %vm4830_vm4, %v665_v8, %v4717_v49  ;;  %v1064_v31 = vand.u32 4, %v4425_v30 }
 0x13f   :  { %6949 = vst [vmem:[#allocation26_spill] sm:$0xff] %v5136_v40  ;;  %v3953_v11 = vpack.i.bf16 %v5141_v23, %v5136_v40  ;;  %v3772_v23 = vunpack.i.h.bf16 %v3770_v56 }
 0x140   :  { %6952 = vst [vmem:[#allocation40_spill] sm:$0xff] %v5158_v58  ;;  %vm5166_vm7 = vcmp.ne.s32.totalorder %v1064_v31, 0 }
 0x145   :  { %3944 = vrot.lane.b32.xlu1 %v3943_v44, %s4243_s18  ;;  %v663_v44 = vsel %vm609_vm3, 0.0, %v3801_v62 }
 0x146   :  { %v5153_v10 = vsel %vm4830_vm4, %v663_v44, %v4711_v12  ;;  %v1602_v12 = vld [vmem:[%s6821_s1 + $0x12] sm:$0x1] }
 0x147   :  { %6951 = vst [vmem:[#allocation12_spill] sm:$0xff] %v5153_v10  ;;  %v3963_v47 = vpack.i.bf16 %v5158_v58, %v5153_v10  ;;  %v3771_v58 = vunpack.i.l.bf16 %v3770_v56  ;;  %v6956_v10 = vld [vmem:[#allocation27_spill] sm:$0xff] }
 0x14d   :  { %3954 = vrot.lane.b32.xlu1 %v3953_v11, %s4243_s18 }
 0x155   :  { %3964 = vrot.lane.b32.xlu1 %v3963_v47, %s4243_s18 }
 0x156   :  { %v3810_v22 = vpop.permute.xlu2 %3809 }
 0x157   :  { %v3812_v62 = vunpack.i.h.bf16 %v3810_v22  ;;  %v3811_v11 = vunpack.i.l.bf16 %v3810_v22 }
 0x159   :  { %v1002_v49 = vsel %vm998_vm6, 0.0, %v3812_v62  ;;  %v1000_v8 = vsel %vm998_vm6, 0.0, %v3811_v11  ;;  %v6955_v62 = vld [vmem:[#allocation5_spill] sm:$0xff] }
 0x15a   :  { %v1068_v30 = vsel %vm5166_vm7, %v1000_v8, %v4878_v19  ;;  %v1070_v44 = vsel %vm5166_vm7, %v1002_v49, %v4883_v18  ;;  %v5183_v11 = vsel %vm4433_vm2, %v6956_v10, %v6955_v62  ;;  %v6957_v19 = vld [vmem:[#allocation6_spill] sm:$0xff]  ;;  %v6958_v8 = vld [vmem:[#allocation24_spill] sm:$0xff]  ;;  %v3767_v49 = vunpack.i.h.bf16 %v3765_v13 }
 0x15b   :  { %v3878_v47 = vpack.i.bf16 %v1070_v44, %v1068_v30  ;;  %v5189_v18 = vsel %vm4433_vm2, %v6958_v8, %v6957_v19  ;;  %v3766_v30 = vunpack.i.l.bf16 %v3765_v13  ;;  %v632_v19 = vsel %vm609_vm3, 0.0, %v3772_v23 }
 0x15c   :  { %v630_v13 = vsel %vm609_vm3, 0.0, %v3771_v58  ;;  %v5215_v23 = vsel %vm4867_vm5, %v632_v19, %v4705_v48 }
 0x15d   :  { %3879 = vrot.lane.b32.xlu2 %v3878_v47, %s4244_s19 }
 0x15e   :  { %v3815_v31 = vpop.permute.xlu0 %3814 }
 0x15f   :  { %v3817_v22 = vunpack.i.h.bf16 %v3815_v31  ;;  %v3816_v40 = vunpack.i.l.bf16 %v3815_v31  ;;  %v3883_v31 = vpack.i.bf16 %v5189_v18, %v5183_v11 }
 0x161   :  { %v1006_v44 = vsel %vm998_vm6, 0.0, %v3817_v22  ;;  %v1004_v47 = vsel %vm998_vm6, 0.0, %v3816_v40  ;;  %v645_v22 = vsel %vm609_vm3, 0.0, %v3767_v49  ;;  %v643_v40 = vsel %vm609_vm3, 0.0, %v3766_v30 }
 0x162   :  { %v1072_v56 = vsel %vm5166_vm7, %v1004_v47, %v4839_v36  ;;  %v1074_v10 = vsel %vm5166_vm7, %v1006_v44, %v4844_v20  ;;  %v5210_v20 = vsel %vm4867_vm5, %v630_v13, %v4699_v43  ;;  %v5220_v58 = vsel %vm4830_vm4, %v643_v40, %v4654_v42 }
 0x163   :  { %v3888_v62 = vpack.i.bf16 %v1074_v10, %v1072_v56  ;;  %v5225_v49 = vsel %vm4830_vm4, %v645_v22, %v4660_v26  ;;  %v3777_v30 = vunpack.i.h.bf16 %v5128_v7  ;;  %v3776_v43 = vunpack.i.l.bf16 %v5128_v7 }
 0x164   :  { %v3903_v26 = vpack.i.bf16 %v5215_v23, %v5210_v20  ;;  %v3893_v7 = vpack.i.bf16 %v5225_v49, %v5220_v58  ;;  %v5266_v13 = vsel %vm4433_vm2, %v4747_v24, %v4374_v52  ;;  %v5272_v22 = vsel %vm4433_vm2, %v4744_v0, %v4376_v53  ;;  %v6959_v24 = vld [vmem:[#allocation7_spill] sm:$0xff] }
 0x165   :  { %3884 = vrot.lane.b32.xlu2 %v3883_v31, %s4242_s2  ;;  %3889 = vrot.lane.b32.xlu0 %v3888_v62, %s4244_s19  ;;  %v3825_v31 = vpop.permute.xlu2 %3824  ;;  %v628_v62 = vsel %vm609_vm3, 0.0, %v3777_v30  ;;  %v6960_v30 = vld [vmem:[#allocation29_spill] sm:$0xff] }
 0x166   :  { %v3820_v36 = vpop.permute.xlu0 %3819  ;;  %v5260_v19 = vsel %vm4867_vm5, %v628_v62, %v4762_v57  ;;  %v3827_v40 = vunpack.i.h.bf16 %v3825_v31  ;;  %v3938_v57 = vpack.i.bf16 %v5272_v22, %v5266_v13 }
 0x167   :  { %v3822_v8 = vunpack.i.h.bf16 %v3820_v36  ;;  %v3821_v47 = vunpack.i.l.bf16 %v3820_v36 }
 0x169   :  { %v648_v44 = vsel %vm609_vm3, 0.0, %v3822_v8  ;;  %v646_v56 = vsel %vm609_vm3, 0.0, %v3821_v47  ;;  %v1014_v8 = vsel %vm998_vm6, 0.0, %v3827_v40 }
 0x16a   :  { %v5234_v48 = vsel %vm4867_vm5, %v646_v56, %v4855_v46  ;;  %v5239_v42 = vsel %vm4867_vm5, %v648_v44, %v4861_v54  ;;  %v626_v46 = vsel %vm609_vm3, 0.0, %v3776_v43  ;;  %v1082_v0 = vsel %vm5166_vm7, %v1014_v8, %v4911_v29  ;;  %v6961_v44 = vld [vmem:[#allocation8_spill] sm:$0xff] }
 0x16b   :  { %v3993_v10 = vpack.i.bf16 %v5239_v42, %v5234_v48  ;;  %v5255_v54 = vsel %vm4867_vm5, %v626_v46, %v4756_v33  ;;  %v3826_v33 = vunpack.i.l.bf16 %v3825_v31  ;;  %v5292_v43 = vsel %vm4433_vm2, %v6960_v30, %v6959_v24  ;;  %v6962_v56 = vld [vmem:[#allocation28_spill] sm:$0xff] }
 0x16c   :  { %v3913_v36 = vpack.i.bf16 %v5260_v19, %v5255_v54 }
 0x16d   :  { %3904 = vrot.lane.b32.xlu2 %v3903_v26, %s4243_s18  ;;  %3894 = vrot.lane.b32.xlu0 %v3893_v7, %s4243_s18  ;;  %v1012_v47 = vsel %vm998_vm6, 0.0, %v3826_v33  ;;  %v3830_v52 = vpop.permute.xlu2 %3829  ;;  %v5298_v26 = vsel %vm4433_vm2, %v6962_v56, %v6961_v44 }
 0x16e   :  { %3994 = vrot.lane.b32.xlu1 %v3993_v10, %s4243_s18  ;;  %v1080_v53 = vsel %vm5166_vm7, %v1012_v47, %v4906_v2  ;;  %v3832_v7 = vunpack.i.h.bf16 %v3830_v52  ;;  %v3831_v10 = vunpack.i.l.bf16 %v3830_v52  ;;  %v3958_v2 = vpack.i.bf16 %v5298_v26, %v5292_v43  ;;  %v5306_v40 = vpop.permute.xlu1 %3834 }
 0x16f   :  { %v3923_v31 = vpack.i.bf16 %v1082_v0, %v1080_v53  ;;  %v3782_v47 = vunpack.i.h.bf16 %v5075_v6  ;;  %v3781_v52 = vunpack.i.l.bf16 %v5075_v6 }
 0x170   :  { %v1010_v29 = vsel %vm998_vm6, 0.0, %v3832_v7  ;;  %v1008_v62 = vsel %vm998_vm6, 0.0, %v3831_v10 }
 0x171   :  { %v1078_v8 = vsel %vm5166_vm7, %v1010_v29, %v4926_v61  ;;  %v657_v61 = vsel %vm609_vm3, 0.0, %v3782_v47  ;;  %v655_v56 = vsel %vm609_vm3, 0.0, %v3781_v52 }
 0x175   :  { %3914 = vrot.lane.b32.xlu2 %v3913_v36, %s4243_s18  ;;  %3939 = vrot.lane.b32.xlu0 %v3938_v57, %s4242_s2  ;;  %v1076_v57 = vsel %vm5166_vm7, %v1008_v62, %v4921_v35  ;;  %v3792_v62 = vunpack.i.h.bf16 %v5148_v63 }
 0x176   :  { %v3928_v30 = vpack.i.bf16 %v1078_v8, %v1076_v57 }
 0x17d   :  { %3924 = vrot.lane.b32.xlu2 %v3923_v31, %s4244_s19  ;;  %3959 = vrot.lane.b32.xlu0 %v3958_v2, %s4242_s2 }
 0x17e   :  { %v3840_v46 = vpop.permute.xlu0 %3839 }
 0x17f   :  { %v3842_v33 = vunpack.i.h.bf16 %v3840_v46  ;;  %v3841_v36 = vunpack.i.l.bf16 %v3840_v46  ;;  %v3791_v46 = vunpack.i.l.bf16 %v5148_v63  ;;  %v640_v63 = vsel %vm609_vm3, 0.0, %v3792_v62 }
 0x181   :  { %v1022_v53 = vsel %vm998_vm6, 0.0, %v3842_v33  ;;  %v1020_v0 = vsel %vm998_vm6, 0.0, %v3841_v36 }
 0x182   :  { %v1088_v24 = vsel %vm5166_vm7, %v1020_v0, %v4933_v17  ;;  %v1090_v35 = vsel %vm5166_vm7, %v1022_v53, %v4938_v27  ;;  %v6963_v17 = vld [vmem:[#allocation30_spill] sm:$0xff]  ;;  %v6964_v27 = vld [vmem:[#allocation31_spill] sm:$0xff]  ;;  %v5352_v53 = vpop.permute.xlu2 %3849  ;;  %v638_v0 = vsel %vm609_vm3, 0.0, %v3791_v46 }
 0x183   :  { %v3973_v44 = vpack.i.bf16 %v1090_v35, %v1088_v24  ;;  %v5333_v2 = vsel %vm4830_vm4, %v655_v56, %v6963_v17  ;;  %v5338_v29 = vsel %vm4830_vm4, %v657_v61, %v6964_v27  ;;  %v6966_v61 = vld [vmem:[#allocation37_spill] sm:$0xff] }
 0x184   :  { %v3933_v47 = vpack.i.bf16 %v5338_v29, %v5333_v2  ;;  %v5368_v56 = vsel %vm4867_vm5, %v640_v63, %v6966_v61 }
 0x185   :  { %3929 = vrot.lane.b32.xlu2 %v3928_v30, %s4244_s19  ;;  %3974 = vrot.lane.b32.xlu0 %v3973_v44, %s4244_s19 }
 0x186   :  { %v3845_v6 = vpop.permute.xlu0 %3844 }
 0x187   :  { %v3847_v7 = vunpack.i.h.bf16 %v3845_v6  ;;  %v3846_v10 = vunpack.i.l.bf16 %v3845_v6  ;;  %v5328_v31 = vpop.permute.xlu1 %3864  ;;  %v3807_v6 = vunpack.i.h.bf16 %v5164_v21 }
 0x189   :  { %v1018_v33 = vsel %vm998_vm6, 0.0, %v3847_v7  ;;  %v1016_v36 = vsel %vm998_vm6, 0.0, %v3846_v10  ;;  %v3806_v7 = vunpack.i.l.bf16 %v5164_v21 }
 0x18a   :  { %v1084_v57 = vsel %vm5166_vm7, %v1016_v36, %v4963_v15  ;;  %v1086_v8 = vsel %vm5166_vm7, %v1018_v33, %v4968_v60  ;;  %v6965_v60 = vld [vmem:[#allocation36_spill] sm:$0xff]  ;;  %v661_v36 = vsel %vm609_vm3, 0.0, %v3807_v6 }
 0x18b   :  { %v3978_v52 = vpack.i.bf16 %v1086_v8, %v1084_v57  ;;  %v5363_v44 = vsel %vm4867_vm5, %v638_v0, %v6965_v60  ;;  %v659_v21 = vsel %vm609_vm3, 0.0, %v3806_v7  ;;  %v3860_v57 = vpop.permute.xlu2 %3859  ;;  %v6967_v8 = vld [vmem:[#allocation9_spill] sm:$0xff]  ;;  %v6971_v0 = vld [vmem:[#allocation34_spill] sm:$0xff] }
 0x18c   :  { %v3948_v46 = vpack.i.bf16 %v5368_v56, %v5363_v44  ;;  %v3862_v60 = vunpack.i.h.bf16 %v3860_v57  ;;  %v3861_v61 = vunpack.i.l.bf16 %v3860_v57 }
 0x18d   :  { %3934 = vrot.lane.b32.xlu2 %v3933_v47, %s4243_s18  ;;  %3979 = vrot.lane.b32.xlu0 %v3978_v52, %s4244_s19  ;;  %v6968_v47 = vld [vmem:[#allocation33_spill] sm:$0xff]  ;;  %v6970_v52 = vld [vmem:[#allocation32_spill] sm:$0xff] }
 0x18e   :  { %v3855_v24 = vpop.permute.xlu0 %3854 }
 0x18f   :  { %v3857_v15 = vunpack.i.h.bf16 %v3855_v24  ;;  %v3856_v35 = vunpack.i.l.bf16 %v3855_v24  ;;  %v5358_v30 = vpop.permute.xlu1 %3869  ;;  %v5401_v24 = vsel %vm4830_vm4, %v659_v21, %v6971_v0  ;;  %v3837_v0 = vunpack.i.h.bf16 %v5306_v40 }
 0x191   :  { %v1030_v10 = vsel %vm998_vm6, 0.0, %v3857_v15  ;;  %v1028_v17 = vsel %vm998_vm6, 0.0, %v3856_v35  ;;  %v6972_v15 = vld [vmem:[#allocation35_spill] sm:$0xff] }
 0x192   :  { %v1096_v27 = vsel %vm5166_vm7, %v1028_v17, %v5008_v16  ;;  %v1098_v62 = vsel %vm5166_vm7, %v1030_v10, %v5013_v59  ;;  %v5390_v16 = vsel %vm4433_vm2, %v6968_v47, %v6967_v8  ;;  %v6969_v59 = vld [vmem:[#allocation10_spill] sm:$0xff]  ;;  %v5406_v35 = vsel %vm4830_vm4, %v661_v36, %v6972_v15 }
 0x193   :  { %v3983_v33 = vpack.i.bf16 %v1098_v62, %v1096_v27  ;;  %v5396_v63 = vsel %vm4433_vm2, %v6970_v52, %v6969_v59  ;;  %v3988_v10 = vpack.i.bf16 %v5406_v35, %v5401_v24  ;;  %v1026_v17 = vsel %vm998_vm6, 0.0, %v3862_v60  ;;  %v6973_v60 = vld [vmem:[#allocation15_spill] sm:$0xff] }
 0x194   :  { %v3968_v7 = vpack.i.bf16 %v5396_v63, %v5390_v16  ;;  %v1024_v27 = vsel %vm998_vm6, 0.0, %v3861_v61  ;;  %v3836_v15 = vunpack.i.l.bf16 %v5306_v40  ;;  %v1063_v61 = vand.u32 4, %v6973_v60 }
 0x195   :  { %3949 = vrot.lane.b32.xlu2 %v3948_v46, %s4243_s18  ;;  %3984 = vrot.lane.b32.xlu0 %v3983_v33, %s4244_s19  ;;  %v1092_v62 = vsel %vm5166_vm7, %v1024_v27, %v4998_v14  ;;  %v1094_v46 = vsel %vm5166_vm7, %v1026_v17, %v5003_v51 }
 0x196   :  { %v4003_v21 = vpack.i.bf16 %v1094_v46, %v1092_v62  ;;  %v999_v40 = vsel %vm998_vm6, 0.0, %v3836_v15  ;;  %vm5449_vm8 = vcmp.ne.s32.totalorder %v1063_v61, 0  ;;  %v6977_v62 = vld [vmem:[#allocation39_spill] sm:$0xff] }
 0x197   :  { %v3875_v6 = vpop.permute.xlu1 %3874 }
 0x198   :  { %v3877_v33 = vunpack.i.h.bf16 %v3875_v6  ;;  %v3876_v36 = vunpack.i.l.bf16 %v3875_v6  ;;  %v5439_v6 = vsel %vm4433_vm2, %v5054_v28, %v6941_v37 }
 0x19a   :  { %v1038_v8 = vsel %vm998_vm6, 0.0, %v3877_v33  ;;  %v1036_v47 = vsel %vm998_vm6, 0.0, %v3876_v36 }
 0x19b   :  { %v1104_v59 = vsel %vm5166_vm7, %v1036_v47, %v5043_v41  ;;  %v1106_v14 = vsel %vm5166_vm7, %v1038_v8, %v5048_v55  ;;  %v5445_v41 = vsel %vm4433_vm2, %v5051_v3, %v6942_v9  ;;  %v6976_v3 = vld [vmem:[#allocation38_spill] sm:$0xff] }
 0x19c   :  { %v4008_v52 = vpack.i.bf16 %v1106_v14, %v1104_v59  ;;  %v4013_v28 = vpack.i.bf16 %v5445_v41, %v5439_v6  ;;  %v1067_v9 = vsel %vm5449_vm8, %v999_v40, %v6976_v3 }
 0x19d   :  { %3969 = vrot.lane.b32.xlu2 %v3968_v7, %s4242_s2  ;;  %3989 = vrot.lane.b32.xlu0 %v3988_v10, %s4243_s18  ;;  %v1001_v10 = vsel %vm998_vm6, 0.0, %v3837_v0  ;;  %v1520_v59 = vpack.c.bf16 %v1067_v9, %v1067_v9 }
 0x19e   :  { %v1069_v46 = vsel %vm5449_vm8, %v1001_v10, %v6977_v62 }
 0x19f   :  { %v3900_v57 = vpop.permute.xlu1 %3899  ;;  %v1522_v14 = vpack.c.bf16 %v1069_v46, %v1069_v46 }
 0x1a0   :  { %v3901_v3 = vunpack.i.l.bf16 %v3900_v57 }
 0x1a5   :  { %4004 = vrot.lane.b32.xlu2 %v4003_v21, %s4244_s19 }
 0x1a7   :  { %v3910_v51 = vpop.permute.xlu1 %3909 }
 0x1a8   :  { %v3912_v55 = vunpack.i.h.bf16 %v3910_v51  ;;  %v3911_v7 = vunpack.i.l.bf16 %v3910_v51 }
 0x1aa   :  { %v669_v37 = vsel %vm609_vm3, 0.0, %v3912_v55  ;;  %v667_v27 = vsel %vm609_vm3, 0.0, %v3911_v7  ;;  %v1929_v55 = vunpack.c.l.b16 %v1522_v14 }
 0x1ab   :  { %v5467_v8 = vsel %vm4830_vm4, %v667_v27, %v5088_v50  ;;  %v5472_v47 = vsel %vm4830_vm4, %v669_v37, %v5094_v38  ;;  %v1906_v50 = vunpack.c.l.b16 %v1520_v59  ;;  %v3902_v27 = vunpack.i.h.bf16 %v3900_v57 }
 0x1ac   :  { %v4033_v0 = vpack.i.bf16 %v5472_v47, %v5467_v8  ;;  %v671_v59 = vsel %vm609_vm3, 0.0, %v3901_v3 }
 0x1ad   :  { %4009 = vrot.lane.b32.xlu2 %v4008_v52, %s4244_s19 }
 0x1af   :  { %v3920_v57 = vpop.permute.xlu1 %3919 }
 0x1b5   :  { %4014 = vrot.lane.b32.xlu2 %v4013_v28, %s4242_s2 }
 0x1b7   :  { %v3880_v33 = vpop.permute.xlu2 %3879  ;;  %v3945_v39 = vpop.permute.xlu1 %3944 }
 0x1b8   :  { %v3882_v36 = vunpack.i.h.bf16 %v3880_v33  ;;  %v3881_v21 = vunpack.i.l.bf16 %v3880_v33 }
 0x1ba   :  { %v1389_v52 = vsel %vm1387_vm9, 0.0, %v3881_v21  ;;  %v1391_v51 = vsel %vm1387_vm9, 0.0, %v3882_v36  ;;  %v673_v21 = vsel %vm609_vm3, 0.0, %v3902_v27  ;;  %v6978_v27 = vld [vmem:[#allocation22_spill] sm:$0xff] }
 0x1bb   :  { %v1521_v15 = vpack.c.bf16 %v1389_v52, %v1389_v52  ;;  %v1523_v60 = vpack.c.bf16 %v1391_v51, %v1391_v51  ;;  %v3851_v52 = vunpack.i.l.bf16 %v5352_v53  ;;  %v5510_v51 = vsel %vm4830_vm4, %v671_v59, %v5063_v32  ;;  %v6980_v59 = vld [vmem:[#allocation19_spill] sm:$0xff] }
 0x1bd   :  { %4034 = vrot.lane.b32.xlu2 %v4033_v0, %s4243_s18  ;;  %v1907_v61 = vunpack.c.l.b16 %v1521_v15  ;;  %v1930_v7 = vunpack.c.l.b16 %v1523_v60  ;;  %v5515_v0 = vsel %vm4830_vm4, %v673_v21, %v5069_v5  ;;  %v3922_v15 = vunpack.i.h.bf16 %v3920_v57  ;;  %v6979_v21 = vld [vmem:[#allocation20_spill] sm:$0xff] }
 0x1be   :  { %v3921_v60 = vunpack.i.l.bf16 %v3920_v57  ;;  %vm40_vm4 = vcmask 261120  }
 0x1bf   :  { %v3885_v10 = vpop.permute.xlu2 %3884  ;;  %v1908_v38 = vpack.c.b16 %v1907_v61, %v1906_v50  ;;  %v1931_v40 = vpack.c.b16 %v1930_v7, %v1929_v55  ;;  %v3852_v50 = vunpack.i.h.bf16 %v5352_v53  ;;  %v4018_v61 = vpack.i.bf16 %v5515_v0, %v5510_v51 }
 0x1c0   :  { %v3887_v28 = vunpack.i.h.bf16 %v3885_v10  ;;  %v3886_v37 = vunpack.i.l.bf16 %v3885_v10  ;;  %v1003_v55 = vsel %vm998_vm6, 0.0, %v3851_v52  ;;  %v3867_v7 = vunpack.i.h.bf16 %v5328_v31 }
 0x1c1   :  { %1921 = vmatpush.bf16.msra.mxu2 %v1908_v38  ;;  %1943 = vmatpush.bf16.msra.mxu3 %v1931_v40  ;;  %v3866_v10 = vunpack.i.l.bf16 %v5328_v31  ;;  %v656_v32 = vsel %vm609_vm3, 0.0, %v3922_v15  ;;  %v654_v38 = vsel %vm609_vm3, 0.0, %v3921_v60  ;;  %v1005_v53 = vsel %vm998_vm6, 0.0, %v3852_v50 }
 0x1c2   :  { %v644_v9 = vsel %vm609_vm3, 0.0, %v3887_v28  ;;  %v642_v62 = vsel %vm609_vm3, 0.0, %v3886_v37  ;;  %v1071_v40 = vsel %vm5449_vm8, %v1003_v55, %v4953_v25  ;;  %v1013_v28 = vsel %vm998_vm6, 0.0, %v3867_v7 }
 0x1c3   :  { %v5484_v46 = vsel %vm4867_vm5, %v642_v62, %v5183_v11  ;;  %v5489_v33 = vsel %vm4867_vm5, %v644_v9, %v5189_v18  ;;  %v1584_v11 = vld [vmem:[%s6821_s1] sm:$0x1]  ;;  %v1585_v18 = vld [vmem:[%s6821_s1 + $0x1] sm:$0x1]  ;;  %v1011_v37 = vsel %vm998_vm6, 0.0, %v3866_v10  ;;  %v5537_v31 = vsel %vm4867_vm5, %v654_v38, %v5103_v34 }
 0x1c4   :  { %v3998_v36 = vpack.i.bf16 %v5489_v33, %v5484_v46  ;;  %3522 = vmatmul.msk.bf16.vlgmr.msra.gmra.mxu2 %vm1910_vm10, %v1584_v11  ;;  %3523 = vmatmul.msk.bf16.vlgmr.msra.gmra.mxu3 %vm1910_vm10, %v1585_v18  ;;  %v5542_v3 = vsel %vm4867_vm5, %v656_v32, %v6978_v27  ;;  %v3872_v9 = vunpack.i.h.bf16 %v5358_v30  ;;  %v3871_v62 = vunpack.i.l.bf16 %v5358_v30  ;;  %v6981_v18 = vld [vmem:[#allocation18_spill] sm:$0xff]  ;;  %v6982_v27 = vld [vmem:[#allocation25_spill] sm:$0xff] }
 0x1c5   :  { %v3946_v25 = vunpack.i.l.bf16 %v3945_v39  ;;  %v1081_v57 = vsel %vm5449_vm8, %v1013_v28, %v6979_v21  ;;  %v1079_v34 = vsel %vm5449_vm8, %v1011_v37, %v6980_v59  ;;  %v4038_v11 = vpack.i.bf16 %v5542_v3, %v5537_v31 }
 0x1c6   :  { %3999 = vrot.lane.b32.xlu0 %v3998_v36, %s4243_s18  ;;  %v3947_v36 = vunpack.i.h.bf16 %v3945_v39  ;;  %v1073_v52 = vsel %vm5449_vm8, %v1005_v53, %v6981_v18  ;;  %v1524_v15 = vpack.c.bf16 %v1071_v40, %v1071_v40  ;;  %v1009_v30 = vsel %vm998_vm6, 0.0, %v3872_v9 }
 0x1c7   :  { %v5502_v14 = vpop.permute.xlu2 %3904  ;;  %v1007_v60 = vsel %vm998_vm6, 0.0, %v3871_v62  ;;  %v1534_v55 = vpack.c.bf16 %v1081_v57, %v1081_v57  ;;  %v1532_v7 = vpack.c.bf16 %v1079_v34, %v1079_v34  ;;  %v1526_v38 = vpack.c.bf16 %v1073_v52, %v1073_v52 }
 0x1c8   :  { %v1042_v50 = vsel %vm998_vm6, 0.0, %v3947_v36  ;;  %v1951_v62 = vunpack.c.l.b16 %v1524_v15 }
 0x1c9   :  { %v1110_v9 = vsel %vm5166_vm7, %v1042_v50, %v6982_v27  ;;  %v2061_v52 = vunpack.c.l.b16 %v1534_v55 }
 0x1ce   :  { %4019 = vrot.lane.b32.xlu0 %v4018_v61, %s4243_s18  ;;  %v1040_v61 = vsel %vm998_vm6, 0.0, %v3946_v25 }
 0x1cf   :  { %v5526_v5 = vpop.permute.xlu2 %3914  ;;  %v1108_v40 = vsel %vm5166_vm7, %v1040_v61, %v5119_v4  ;;  %v5572_v4 = vpop.permute.xlu1 %3954 }
 0x1d0   :  { %v4053_v61 = vpack.i.bf16 %v1110_v9, %v1108_v40 }
 0x1d6   :  { %4039 = vrot.lane.b32.xlu0 %v4038_v11, %s4243_s18 }
 0x1d7   :  { %v3925_v10 = vpop.permute.xlu2 %3924  ;;  %v3890_v32 = vpop.permute.xlu0 %3889 }
 0x1d8   :  { %v3927_v39 = vunpack.i.h.bf16 %v3925_v10  ;;  %v3926_v28 = vunpack.i.l.bf16 %v3925_v10  ;;  %v3892_v37 = vunpack.i.h.bf16 %v3890_v32  ;;  %v3891_v53 = vunpack.i.l.bf16 %v3890_v32 }
 0x1d9   :  { %v2039_v10 = vunpack.c.l.b16 %v1532_v7  ;;  %v1973_v32 = vunpack.c.l.b16 %v1526_v38 }
 0x1da   :  { %v1403_v36 = vsel %vm1387_vm9, 0.0, %v3927_v39  ;;  %v1401_v25 = vsel %vm1387_vm9, 0.0, %v3926_v28  ;;  %v1395_v21 = vsel %vm1387_vm9, 0.0, %v3892_v37  ;;  %v1393_v57 = vsel %vm1387_vm9, 0.0, %v3891_v53  ;;  %v6983_v28 = vld [vmem:[#allocation16_spill] sm:$0xff]  ;;  %v6984_v53 = vld [vmem:[#allocation17_spill] sm:$0xff] }
 0x1db   :  { %v1535_v59 = vpack.c.bf16 %v1403_v36, %v1403_v36  ;;  %v1533_v34 = vpack.c.bf16 %v1401_v25, %v1401_v25  ;;  %v1525_v11 = vpack.c.bf16 %v1393_v57, %v1393_v57  ;;  %v1527_v18 = vpack.c.bf16 %v1395_v21, %v1395_v21 }
 0x1dc   :  { %v1075_v37 = vsel %vm5449_vm8, %v1007_v60, %v6983_v28  ;;  %v1077_v36 = vsel %vm5449_vm8, %v1009_v30, %v6984_v53  ;;  %v5584_v60 = vld [vmem:[%s6821_s1 + $0x2] sm:$0x1]  ;;  %v3965_v28 = vpop.permute.xlu1 %3964 }
 0x1dd   :  { %v2062_v50 = vunpack.c.l.b16 %v1535_v59  ;;  %v2040_v15 = vunpack.c.l.b16 %v1533_v34  ;;  %v1952_v27 = vunpack.c.l.b16 %v1525_v11  ;;  %v1974_v39 = vunpack.c.l.b16 %v1527_v18 }
 0x1de   :  { %4054 = vrot.lane.b32.xlu0 %v4053_v61, %s4244_s19 }
 0x1df   :  { %v2041_v55 = vpack.c.b16 %v2040_v15, %v2039_v10  ;;  %v2063_v7 = vpack.c.b16 %v2062_v50, %v2061_v52  ;;  %v3930_v25 = vpop.permute.xlu2 %3929  ;;  %v3895_v21 = vpop.permute.xlu0 %3894  ;;  %v1953_v40 = vpack.c.b16 %v1952_v27, %v1951_v62  ;;  %v1975_v38 = vpack.c.b16 %v1974_v39, %v1973_v32  ;;  %v1587_v52 = vld [vmem:[%s6821_s1 + $0x3] sm:$0x1] }
 0x1e0   :  { %v3932_v9 = vunpack.i.h.bf16 %v3930_v25  ;;  %v3931_v57 = vunpack.i.l.bf16 %v3930_v25  ;;  %v3897_v59 = vunpack.i.h.bf16 %v3895_v21  ;;  %v3896_v34 = vunpack.i.l.bf16 %v3895_v21 }
 0x1e1   :  { %1965 = vmatpush.bf16.msrb.mxu2 %v1953_v40  ;;  %1987 = vmatpush.bf16.msrb.mxu3 %v1975_v38  ;;  %v1528_v32 = vpack.c.bf16 %v1075_v37, %v1075_v37  ;;  %v1530_v50 = vpack.c.bf16 %v1077_v36, %v1077_v36  ;;  %v6985_v36 = vld [vmem:[#allocation13_spill] sm:$0xff] }
 0x1e2   :  { %v1034_v11 = vsel %vm998_vm6, 0.0, %v3897_v59  ;;  %v1032_v30 = vsel %vm998_vm6, 0.0, %v3896_v34  ;;  %v1397_v62 = vsel %vm1387_vm9, 0.0, %v3931_v57  ;;  %v1399_v18 = vsel %vm1387_vm9, 0.0, %v3932_v9  ;;  %v6986_v40 = vld [vmem:[#allocation21_spill] sm:$0xff]  ;;  %v6987_v9 = vld [vmem:[#allocation14_spill] sm:$0xff] }
 0x1e3   :  { %v1100_v10 = vsel %vm5166_vm7, %v1032_v30, %v5220_v58  ;;  %v1102_v61 = vsel %vm5166_vm7, %v1034_v11, %v5225_v49  ;;  %v1529_v27 = vpack.c.bf16 %v1397_v62, %v1397_v62  ;;  %v1531_v39 = vpack.c.bf16 %v1399_v18, %v1399_v18  ;;  %v6988_v57 = vld [vmem:[#allocation23_spill] sm:$0xff] }
 0x1e4   :  { %v4023_v15 = vpack.i.bf16 %v1102_v61, %v1100_v10  ;;  %3524 = vmatmul.msk.bf16.vlgmr.msrb.gmra.mxu2 %vm1910_vm10, %v5584_v60  ;;  %3525 = vmatmul.msk.bf16.vlgmr.msrb.gmra.mxu3 %vm1910_vm10, %v1587_v52  ;;  %v2017_v25 = vunpack.c.l.b16 %v1530_v50  ;;  %v5607_v38 = vsel %vm4433_vm2, %v6986_v40, %v6985_v36  ;;  %v5613_v59 = vsel %vm4433_vm2, %v6988_v57, %v6987_v9 }
 0x1e5   :  { %2053 = vmatpush.bf16.msra.mxu2 %v2041_v55  ;;  %2075 = vmatpush.bf16.msra.mxu3 %v2063_v7  ;;  %v1996_v53 = vunpack.c.l.b16 %v1529_v27  ;;  %v1995_v7 = vunpack.c.l.b16 %v1528_v32  ;;  %v2018_v21 = vunpack.c.l.b16 %v1531_v39  ;;  %v3967_v34 = vunpack.i.h.bf16 %v3965_v28 }
 0x1e6   :  { %4024 = vrot.lane.b32.xlu1 %v4023_v15, %s4244_s19  ;;  %v3966_v11 = vunpack.i.l.bf16 %v3965_v28  ;;  %v3957_v32 = vunpack.i.h.bf16 %v5572_v4  ;;  %v3956_v50 = vunpack.i.l.bf16 %v5572_v4  ;;  %v3907_v27 = vunpack.i.h.bf16 %v5502_v14 }
 0x1e7   :  { %v3935_v55 = vpop.permute.xlu2 %3934  ;;  %v3940_v58 = vpop.permute.xlu0 %3939  ;;  %v1997_v30 = vpack.c.b16 %v1996_v53, %v1995_v7  ;;  %v2019_v62 = vpack.c.b16 %v2018_v21, %v2017_v25  ;;  %v3906_v39 = vunpack.i.l.bf16 %v5502_v14  ;;  %v4028_v28 = vpack.i.bf16 %v5613_v59, %v5607_v38  ;;  %v5647_v14 = vld [vmem:[%s6821_s1 + $0x5] sm:$0x1] }
 0x1e8   :  { %v3942_v49 = vunpack.i.h.bf16 %v3940_v58  ;;  %v3941_v37 = vunpack.i.l.bf16 %v3940_v58  ;;  %v3937_v18 = vunpack.i.h.bf16 %v3935_v55  ;;  %v3936_v52 = vunpack.i.l.bf16 %v3935_v55 }
 0x1e9   :  { %2009 = vmatpush.bf16.msra.mxu0 %v1997_v30  ;;  %2031 = vmatpush.bf16.msra.mxu1 %v2019_v62  ;;  %v1054_v53 = vsel %vm998_vm6, 0.0, %v3967_v34  ;;  %v1025_v7 = vsel %vm998_vm6, 0.0, %v3957_v32  ;;  %v1023_v25 = vsel %vm998_vm6, 0.0, %v3956_v50  ;;  %v1019_v36 = vsel %vm998_vm6, 0.0, %v3906_v39  ;;  %v6989_v34 = vld [vmem:[#allocation12_spill] sm:$0xff] }
 0x1ea   :  { %v652_v10 = vsel %vm609_vm3, 0.0, %v3942_v49  ;;  %v650_v61 = vsel %vm609_vm3, 0.0, %v3941_v37  ;;  %v1046_v55 = vsel %vm998_vm6, 0.0, %v3937_v18  ;;  %v1044_v58 = vsel %vm998_vm6, 0.0, %v3936_v52  ;;  %v6990_v30 = vld [vmem:[#allocation40_spill] sm:$0xff]  ;;  %v6991_v52 = vld [vmem:[#allocation11_spill] sm:$0xff] }
 0x1eb   :  { %v5622_v45 = vsel %vm4867_vm5, %v650_v61, %v5266_v13  ;;  %v5627_v15 = vsel %vm4867_vm5, %v652_v10, %v5272_v22  ;;  %v1052_v13 = vsel %vm998_vm6, 0.0, %v3966_v11  ;;  %v1588_v22 = vld [vmem:[%s6821_s1 + $0x4] sm:$0x1]  ;;  %v1021_v37 = vsel %vm998_vm6, 0.0, %v3907_v27  ;;  %v1590_v18 = vld [vmem:[%s6821_s1 + $0x6] sm:$0x1] }
 0x1ec   :  { %v4048_v4 = vpack.i.bf16 %v5627_v15, %v5622_v45  ;;  %3526 = vmatmul.msk.bf16.vlgmr.msra.gmra.mxu0 %vm1910_vm10, %v1588_v22  ;;  %3527 = vmatmul.msk.bf16.vlgmr.msra.gmra.mxu1 %vm1910_vm10, %v5647_v14  ;;  %v3916_v40 = vunpack.i.l.bf16 %v5526_v5  ;;  %v1112_v9 = vsel %vm5166_vm7, %v1044_v58, %v5333_v2  ;;  %v1114_v57 = vsel %vm5166_vm7, %v1046_v55, %v5338_v29  ;;  %v6992_v10 = vld [vmem:[#allocation26_spill] sm:$0xff]  ;;  %v1591_v50 = vld [vmem:[%s6821_s1 + $0x7] sm:$0x1] }
 0x1ed   :  { %v1120_v11 = vsel %vm5166_vm7, %v1052_v13, %v6989_v34  ;;  %v1122_v62 = vsel %vm5166_vm7, %v1054_v53, %v6990_v30  ;;  %v5677_v2 = vsel %vm5449_vm8, %v1025_v7, %v6991_v52  ;;  %v5682_v29 = vsel %vm5449_vm8, %v1023_v25, %v6992_v10  ;;  %v3995_v53 = vpop.permute.xlu1 %3994 }
 0x1ee   :  { %4029 = vrot.lane.b32.xlu1 %v4028_v28, %s4242_s2  ;;  %4049 = vrot.lane.b32.xlu2 %v4048_v4, %s4243_s18  ;;  %v1089_v27 = vsel %vm5449_vm8, %v1021_v37, %v5215_v23  ;;  %v1087_v39 = vsel %vm5449_vm8, %v1019_v36, %v5210_v20  ;;  %v3917_v28 = vunpack.i.h.bf16 %v5526_v5  ;;  %v1015_v4 = vsel %vm998_vm6, 0.0, %v3916_v40 }
 0x1ef   :  { %v5651_v21 = vpop.permute.xlu2 %3949  ;;  %v3960_v49 = vpop.permute.xlu0 %3959  ;;  %v4043_v13 = vpack.i.bf16 %v1114_v57, %v1112_v9  ;;  %v4063_v55 = vpack.i.bf16 %v1122_v62, %v1120_v11  ;;  %v1546_v58 = vpack.c.bf16 %v5677_v2, %v5677_v2  ;;  %v1544_v22 = vpack.c.bf16 %v5682_v29, %v5682_v29 }
 0x1f0   :  { %v3962_v61 = vunpack.i.h.bf16 %v3960_v49  ;;  %v3961_v32 = vunpack.i.l.bf16 %v3960_v49  ;;  %v1542_v23 = vpack.c.bf16 %v1089_v27, %v1089_v27  ;;  %v1540_v7 = vpack.c.bf16 %v1087_v39, %v1087_v39 }
 0x1f1   :  { %v1017_v25 = vsel %vm998_vm6, 0.0, %v3917_v28  ;;  %v3997_v49 = vunpack.i.h.bf16 %v3995_v53  ;;  %v3996_v37 = vunpack.i.l.bf16 %v3995_v53  ;;  %v1083_v9 = vsel %vm5449_vm8, %v1015_v4, %v5255_v54 }
 0x1f2   :  { %v664_v20 = vsel %vm609_vm3, 0.0, %v3962_v61  ;;  %v662_v5 = vsel %vm609_vm3, 0.0, %v3961_v32  ;;  %v3952_v62 = vunpack.i.h.bf16 %v5651_v21  ;;  %v1085_v53 = vsel %vm5449_vm8, %v1017_v25, %v5260_v19 }
 0x1f3   :  { %v5714_v52 = vsel %vm4867_vm5, %v662_v5, %v5292_v43  ;;  %v5719_v10 = vsel %vm4867_vm5, %v664_v20, %v5298_v26  ;;  %v1037_v39 = vsel %vm998_vm6, 0.0, %v3997_v49  ;;  %v1035_v5 = vsel %vm998_vm6, 0.0, %v3996_v37 }
 0x1f4   :  { %3528 = vmatmul.msk.bf16.vlgmr.msra.gmra.mxu2 %vm1910_vm10, %v1590_v18  ;;  %3529 = vmatmul.msk.bf16.vlgmr.msra.gmra.mxu3 %vm1910_vm10, %v1591_v50  ;;  %v3951_v18 = vunpack.i.l.bf16 %v5651_v21  ;;  %v4058_v28 = vpack.i.bf16 %v5719_v10, %v5714_v52  ;;  %vm3064_vm2 = vcmask 125952  }
 0x1f6   :  { %4044 = vrot.lane.b32.xlu1 %v4043_v13, %s4244_s19  ;;  %4064 = vrot.lane.b32.xlu2 %v4063_v55, %s4244_s19  ;;  %v2149_v13 = vunpack.c.l.b16 %v1542_v23  ;;  %v1027_v49 = vsel %vm998_vm6, 0.0, %v3951_v18  ;;  %v1594_v18 = vld [vmem:[%s6821_s1 + $0xa] sm:$0x1] }
 0x1f7   :  { %v3970_v36 = vpop.permute.xlu2 %3969  ;;  %v3975_v40 = vpop.permute.xlu0 %3974 }
 0x1f8   :  { %v3972_v57 = vunpack.i.h.bf16 %v3970_v36  ;;  %v3971_v34 = vunpack.i.l.bf16 %v3970_v36  ;;  %v3977_v11 = vunpack.i.h.bf16 %v3975_v40  ;;  %v3976_v30 = vunpack.i.l.bf16 %v3975_v40 }
 0x1f9   :  { %v1536_v36 = vpack.c.bf16 %v1083_v9, %v1083_v9  ;;  %v1105_v40 = vsel %vm5449_vm8, %v1037_v39, %v5239_v42  ;;  %v1095_v42 = vsel %vm5449_vm8, %v1027_v49, %v5363_v44  ;;  %v2193_v39 = vunpack.c.l.b16 %v1546_v58 }
 0x1fa   :  { %v660_v54 = vsel %vm609_vm3, 0.0, %v3972_v57  ;;  %v658_v61 = vsel %vm609_vm3, 0.0, %v3971_v34  ;;  %v1411_v32 = vsel %vm1387_vm9, 0.0, %v3977_v11  ;;  %v1409_v50 = vsel %vm1387_vm9, 0.0, %v3976_v30 }
 0x1fb   :  { %v1543_v27 = vpack.c.bf16 %v1411_v32, %v1411_v32  ;;  %v1541_v21 = vpack.c.bf16 %v1409_v50, %v1409_v50  ;;  %v5728_v43 = vsel %vm4867_vm5, %v658_v61, %v5390_v16  ;;  %v5733_v26 = vsel %vm4867_vm5, %v660_v54, %v5396_v63 }
 0x1fc   :  { %v4068_v4 = vpack.i.bf16 %v5733_v26, %v5728_v43  ;;  %v2127_v16 = vunpack.c.l.b16 %v1540_v7  ;;  %v1029_v63 = vsel %vm998_vm6, 0.0, %v3952_v62  ;;  %v1538_v57 = vpack.c.bf16 %v1085_v53, %v1085_v53 }
 0x1fd   :  { %v2150_v55 = vunpack.c.l.b16 %v1543_v27  ;;  %v2128_v20 = vunpack.c.l.b16 %v1541_v21  ;;  %v1103_v62 = vsel %vm5449_vm8, %v1035_v5, %v5234_v48  ;;  %v1097_v9 = vsel %vm5449_vm8, %v1029_v63, %v5368_v56  ;;  %v5770_v56 = vld [vmem:[%s6821_s1 + $0xb] sm:$0x1] }
 0x1fe   :  { %4059 = vrot.lane.b32.xlu1 %v4058_v28, %s4243_s18  ;;  %4069 = vrot.lane.b32.xlu0 %v4068_v4, %s4243_s18  ;;  %v2171_v28 = vunpack.c.l.b16 %v1544_v22  ;;  %v2083_v4 = vunpack.c.l.b16 %v1536_v36  ;;  %v2105_v53 = vunpack.c.l.b16 %v1538_v57  ;;  %v1558_v5 = vpack.c.bf16 %v1105_v40, %v1105_v40 }
 0x1ff   :  { %v2151_v19 = vpack.c.b16 %v2150_v55, %v2149_v13  ;;  %v2129_v23 = vpack.c.b16 %v2128_v20, %v2127_v16  ;;  %v4005_v7 = vpop.permute.xlu2 %4004  ;;  %v3980_v25 = vpop.permute.xlu0 %3979  ;;  %v1556_v63 = vpack.c.bf16 %v1103_v62, %v1103_v62  ;;  %v1550_v49 = vpack.c.bf16 %v1097_v9, %v1097_v9 }
 0x200   :  { %v4007_v34 = vunpack.i.h.bf16 %v4005_v7  ;;  %v4006_v37 = vunpack.i.l.bf16 %v4005_v7  ;;  %v3982_v11 = vunpack.i.h.bf16 %v3980_v25  ;;  %v3981_v30 = vunpack.i.l.bf16 %v3980_v25 }
 0x201   :  { %2141 = vmatpush.bf16.msrb.mxu2 %v2129_v23  ;;  %2163 = vmatpush.bf16.msrb.mxu3 %v2151_v19  ;;  %v1548_v2 = vpack.c.bf16 %v1095_v42, %v1095_v42 }
 0x202   :  { %v1415_v54 = vsel %vm1387_vm9, 0.0, %v4007_v34  ;;  %v1413_v61 = vsel %vm1387_vm9, 0.0, %v4006_v37  ;;  %v1407_v48 = vsel %vm1387_vm9, 0.0, %v3982_v11  ;;  %v1405_v32 = vsel %vm1387_vm9, 0.0, %v3981_v30 }
 0x203   :  { %v1547_v44 = vpack.c.bf16 %v1415_v54, %v1415_v54  ;;  %v1545_v50 = vpack.c.bf16 %v1413_v61, %v1413_v61  ;;  %v1537_v27 = vpack.c.bf16 %v1405_v32, %v1405_v32  ;;  %v1539_v21 = vpack.c.bf16 %v1407_v48, %v1407_v48 }
 0x204   :  { %3532 = vmatmul.msk.bf16.vlgmr.msrb.gmra.mxu2 %vm1910_vm10, %v1594_v18  ;;  %3533 = vmatmul.msk.bf16.vlgmr.msrb.gmra.mxu3 %vm1910_vm10, %v5770_v56  ;;  %v2325_v54 = vunpack.c.l.b16 %v1558_v5  ;;  %v2303_v61 = vunpack.c.l.b16 %v1556_v63  ;;  %v2237_v48 = vunpack.c.l.b16 %v1550_v49  ;;  %v2215_v32 = vunpack.c.l.b16 %v1548_v2 }
 0x205   :  { %v2194_v13 = vunpack.c.l.b16 %v1547_v44  ;;  %v2172_v16 = vunpack.c.l.b16 %v1545_v50  ;;  %v2084_v55 = vunpack.c.l.b16 %v1537_v27  ;;  %v2106_v20 = vunpack.c.l.b16 %v1539_v21 }
 0x207   :  { %v2173_v58 = vpack.c.b16 %v2172_v16, %v2171_v28  ;;  %v2195_v19 = vpack.c.b16 %v2194_v13, %v2193_v39  ;;  %v3985_v23 = vpop.permute.xlu0 %3984  ;;  %v4010_v29 = vpop.permute.xlu2 %4009  ;;  %v2085_v22 = vpack.c.b16 %v2084_v55, %v2083_v4  ;;  %v2107_v36 = vpack.c.b16 %v2106_v20, %v2105_v53 }
 0x208   :  { %v3987_v7 = vunpack.i.h.bf16 %v3985_v23  ;;  %v3986_v25 = vunpack.i.l.bf16 %v3985_v23  ;;  %v4012_v57 = vunpack.i.h.bf16 %v4010_v29  ;;  %v4011_v34 = vunpack.i.l.bf16 %v4010_v29 }
 0x209   :  { %2097 = vmatpush.bf16.msrb.mxu0 %v2085_v22  ;;  %2119 = vmatpush.bf16.msrb.mxu1 %v2107_v36 }
 0x20a   :  { %v1419_v37 = vsel %vm1387_vm9, 0.0, %v3987_v7  ;;  %v1417_v11 = vsel %vm1387_vm9, 0.0, %v3986_v25  ;;  %v1427_v40 = vsel %vm1387_vm9, 0.0, %v4012_v57  ;;  %v1425_v30 = vsel %vm1387_vm9, 0.0, %v4011_v34 }
 0x20b   :  { %v1551_v62 = vpack.c.bf16 %v1419_v37, %v1419_v37  ;;  %v1549_v9 = vpack.c.bf16 %v1417_v11, %v1417_v11  ;;  %v1559_v42 = vpack.c.bf16 %v1427_v40, %v1427_v40  ;;  %v1557_v18 = vpack.c.bf16 %v1425_v30, %v1425_v30  ;;  %v5821_v30 = vld [vmem:[%s6821_s1 + $0x8] sm:$0x1] }
 0x20c   :  { %v4245_v40 = vmov 0   ;;  %3530 = vmatmul.msk.bf16.vlgmr.msrb.gmra.mxu0 %vm1910_vm10, %v5821_v30 }
 0x20d   :  { %2185 = vmatpush.bf16.msra.mxu0 %v2173_v58  ;;  %2207 = vmatpush.bf16.msra.mxu1 %v2195_v19  ;;  %v2238_v44 = vunpack.c.l.b16 %v1551_v62  ;;  %v2216_v50 = vunpack.c.l.b16 %v1549_v9  ;;  %v2326_v27 = vunpack.c.l.b16 %v1559_v42  ;;  %v2304_v21 = vunpack.c.l.b16 %v1557_v18  ;;  %v1599_v9 = vld [vmem:[%s6821_s1 + $0xf] sm:$0x1] }
 0x20e   :  { %4098 = vset.pattern.permute.xlu0 %v4245_v40  ;;  %4100 = vset.pattern.permute.xlu2 %v4245_v40 }
 0x20f   :  { %v2239_v39 = vpack.c.b16 %v2238_v44, %v2237_v48  ;;  %v2217_v28 = vpack.c.b16 %v2216_v50, %v2215_v32  ;;  %v2327_v4 = vpack.c.b16 %v2326_v27, %v2325_v54  ;;  %v2305_v53 = vpack.c.b16 %v2304_v21, %v2303_v61  ;;  %v3990_v13 = vpop.permute.xlu0 %3989  ;;  %v4015_v16 = vpop.permute.xlu2 %4014  ;;  %4099 = vset.pattern.permute.xlu1 %v4245_v40  ;;  %v4104_v61 = vld [vmem:[%s6822_s3 + $0x2] ss:$0 sm:$0xff]  ;;  %v5857_v21 = vld [vmem:[%s6821_s1 + $0xc] sm:$0x1] }
 0x210   :  { %v3992_v55 = vunpack.i.h.bf16 %v3990_v13  ;;  %v3991_v20 = vunpack.i.l.bf16 %v3990_v13  ;;  %v4017_v58 = vunpack.i.h.bf16 %v4015_v16  ;;  %v4016_v19 = vunpack.i.l.bf16 %v4015_v16 }
 0x211   :  { %2229 = vmatpush.bf16.msra.mxu2 %v2217_v28  ;;  %2251 = vmatpush.bf16.msra.mxu3 %v2239_v39  ;;  %v5862_v39 = vld [vmem:[%s6821_s1 + $0xd] sm:$0x1] }
 0x212   :  { %v1050_v5 = vsel %vm998_vm6, 0.0, %v3992_v55  ;;  %v1048_v63 = vsel %vm998_vm6, 0.0, %v3991_v20  ;;  %v672_v49 = vsel %vm609_vm3, 0.0, %v4017_v58  ;;  %v670_v2 = vsel %vm609_vm3, 0.0, %v4016_v19  ;;  %v4109_v19 = vld [vmem:[%s6822_s3 + $0xb] ss:$0 sm:$0xff] }
 0x213   :  { %v1116_v23 = vsel %vm5166_vm7, %v1048_v63, %v5401_v24  ;;  %v1118_v29 = vsel %vm5166_vm7, %v1050_v5, %v5406_v35  ;;  %v5798_v22 = vsel %vm4867_vm5, %v670_v2, %v5439_v6  ;;  %v5803_v36 = vsel %vm4867_vm5, %v672_v49, %v5445_v41  ;;  %v4102_v49 = vld [vmem:[%s6822_s3 + $0x3] ss:$0 sm:$0xff] }
 0x214   :  { %v4073_v7 = vpack.i.bf16 %v1118_v29, %v1116_v23  ;;  %v4078_v25 = vpack.i.bf16 %v5803_v36, %v5798_v22  ;;  %3537 = vmatmul.msk.bf16.vlgmr.msra.gmra.mxu3 %vm1910_vm10, %v1599_v9 }
 0x215   :  { %2317 = vmatpush.bf16.msrb.mxu2 %v2305_v53  ;;  %2339 = vmatpush.bf16.msrb.mxu3 %v2327_v4  ;;  %v4101_v4 = vld [vmem:[%s6822_s3] ss:$0 sm:$0xff] }
 0x216   :  { %4074 = vrot.lane.b32.xlu1 %v4073_v7, %s4244_s19  ;;  %4079 = vrot.lane.b32.xlu2 %v4078_v25, %s4243_s18 }
 0x217   :  { %v4035_v24 = vpop.permute.xlu2 %4034 }
 0x218   :  { %v4037_v35 = vunpack.i.h.bf16 %v4035_v24  ;;  %v4036_v57 = vunpack.i.l.bf16 %v4035_v24 }
 0x21a   :  { %v1058_v34 = vsel %vm998_vm6, 0.0, %v4037_v35  ;;  %v1056_v6 = vsel %vm998_vm6, 0.0, %v4036_v57 }
 0x21b   :  { %v1124_v41 = vsel %vm5166_vm7, %v1056_v6, %v5467_v8  ;;  %v1126_v37 = vsel %vm5166_vm7, %v1058_v34, %v5472_v47  ;;  %v5826_v8 = vld [vmem:[%s6821_s1 + $0x9] sm:$0x1]  ;;  %v5835_v47 = vld [vmem:[%s6821_s1 + $0xe] sm:$0x1] }
 0x21c   :  { %v4093_v11 = vpack.i.bf16 %v1126_v37, %v1124_v41  ;;  %3531 = vmatmul.msk.bf16.vlgmr.msrb.gmra.mxu1 %vm1910_vm10, %v5826_v8  ;;  %3536 = vmatmul.msk.bf16.vlgmr.msra.gmra.mxu2 %vm1910_vm10, %v5835_v47 }
 0x21d   :  { %3534 = vmatmul.msk.bf16.vlgmr.msra.gmra.mxu0 %vm1910_vm10, %v5857_v21 }
 0x21e   :  { %4094 = vrot.lane.b32.xlu2 %v4093_v11, %s4244_s19 }
 0x226   :  { %1753 = vperm.xlu2 %4100, %v4104_v61  }
 0x22c   :  { %3535 = vmatmul.msk.bf16.vlgmr.msra.gmra.mxu1 %vm1910_vm10, %v5862_v39  ;;  %3540 = vmatmul.msk.bf16.vlgmr.msrb.gmra.mxu2 %vm1910_vm10, %v1602_v12 }
 0x238   :  { %v4000_v62 = vpop.permute.xlu0 %3999 }
 0x239   :  { %v4002_v13 = vunpack.i.h.bf16 %v4000_v62  ;;  %v4001_v16 = vunpack.i.l.bf16 %v4000_v62 }
 0x23b   :  { %v1033_v2 = vsel %vm998_vm6, 0.0, %v4002_v13  ;;  %v1031_v23 = vsel %vm998_vm6, 0.0, %v4001_v16 }
 0x23c   :  { %v1101_v35 = vsel %vm5449_vm8, %v1033_v2, %v5489_v33  ;;  %v1099_v57 = vsel %vm5449_vm8, %v1031_v23, %v5484_v46  ;;  %v4112_v46 = vld [vmem:[%s6822_s3 + $0x5] ss:$0 sm:$0xff]  ;;  %v5925_v2 = vld [vmem:[%s6821_s1 + $0x10] sm:$0x1] }
 0x23d   :  { %v1554_v9 = vpack.c.bf16 %v1101_v35, %v1101_v35  ;;  %v1552_v33 = vpack.c.bf16 %v1099_v57, %v1099_v57 }
 0x240   :  { %v4020_v42 = vpop.permute.xlu0 %4019 }
 0x241   :  { %v4022_v18 = vunpack.i.h.bf16 %v4020_v42  ;;  %v4021_v54 = vunpack.i.l.bf16 %v4020_v42 }
 0x243   :  { %v1062_v48 = vsel %vm998_vm6, 0.0, %v4022_v18  ;;  %v1060_v32 = vsel %vm998_vm6, 0.0, %v4021_v54 }
 0x244   :  { %v1128_v44 = vsel %vm5166_vm7, %v1060_v32, %v5510_v51  ;;  %v1130_v50 = vsel %vm5166_vm7, %v1062_v48, %v5515_v0  ;;  %v4106_v51 = vld [vmem:[%s6822_s3 + $0x1] ss:$0 sm:$0xff]  ;;  %v1603_v0 = vld [vmem:[%s6821_s1 + $0x13] sm:$0x1] }
 0x245   :  { %v4083_v27 = vpack.i.bf16 %v1130_v50, %v1128_v44  ;;  %3541 = vmatmul.msk.bf16.vlgmr.msrb.gmra.mxu3 %vm1910_vm10, %v1603_v0  ;;  %1749 = vperm.xlu2 %4100, %v4106_v51   ;;  %v2281_v50 = vunpack.c.l.b16 %v1554_v9 }
 0x247   :  { %4084 = vrot.lane.b32.xlu0 %v4083_v27, %s4244_s19  ;;  %v2259_v27 = vunpack.c.l.b16 %v1552_v33  ;;  %v4111_v33 = vld [vmem:[%s6822_s3 + $0x7] ss:$0 sm:$0xff] }
 0x248   :  { %v5865_v28 = vpop.permute.xlu0 %4039  ;;  %v4050_v53 = vpop.permute.xlu2 %4049 }
 0x249   :  { %v4052_v20 = vunpack.i.h.bf16 %v4050_v53  ;;  %v4051_v58 = vunpack.i.l.bf16 %v4050_v53  ;;  %v4042_v53 = vunpack.i.h.bf16 %v5865_v28  ;;  %v4041_v13 = vunpack.i.l.bf16 %v5865_v28  ;;  %v5930_v28 = vld [vmem:[%s6821_s1 + $0x11] sm:$0x1] }
 0x24b   :  { %v1041_v29 = vsel %vm998_vm6, 0.0, %v4052_v20  ;;  %v1039_v7 = vsel %vm998_vm6, 0.0, %v4051_v58 }
 0x24c   :  { %v1109_v34 = vsel %vm5449_vm8, %v1041_v29, %v5627_v15  ;;  %v1107_v6 = vsel %vm5449_vm8, %v1039_v7, %v5622_v45  ;;  %v4103_v45 = vld [vmem:[%s6822_s3 + $0x4] ss:$0 sm:$0xff]  ;;  %v4108_v7 = vld [vmem:[%s6822_s3 + $0xd] ss:$0 sm:$0xff] }
 0x24d   :  { %1789 = vperm.xlu2 %4100, %v4109_v19   ;;  %v1562_v42 = vpack.c.bf16 %v1109_v34, %v1109_v34  ;;  %v1560_v18 = vpack.c.bf16 %v1107_v6, %v1107_v6 }
 0x24f   :  { %1745 = vperm.xlu0 %4098, %v4101_v4   ;;  %v2369_v0 = vunpack.c.l.b16 %v1562_v42  ;;  %v2347_v4 = vunpack.c.l.b16 %v1560_v18 }
 0x250   :  { %v4055_v55 = vpop.permute.xlu0 %4054  ;;  %v4065_v6 = vpop.permute.xlu2 %4064 }
 0x251   :  { %v4057_v5 = vunpack.i.h.bf16 %v4055_v55  ;;  %v4056_v63 = vunpack.i.l.bf16 %v4055_v55  ;;  %v4066_v42 = vunpack.i.l.bf16 %v4065_v6 }
 0x253   :  { %v1431_v25 = vsel %vm1387_vm9, 0.0, %v4057_v5  ;;  %v1429_v24 = vsel %vm1387_vm9, 0.0, %v4056_v63 }
 0x254   :  { %v1563_v37 = vpack.c.bf16 %v1431_v25, %v1431_v25  ;;  %v1561_v11 = vpack.c.bf16 %v1429_v24, %v1429_v24  ;;  %v1045_v25 = vsel %vm998_vm6, 0.0, %v4042_v53  ;;  %v1043_v24 = vsel %vm998_vm6, 0.0, %v4041_v13  ;;  %v4107_v53 = vld [vmem:[%s6822_s3 + $0xa] ss:$0 sm:$0xff]  ;;  %v5984_v13 = vld [vmem:[%s6821_s1 + $0x16] sm:$0x1] }
 0x255   :  { %1765 = vperm.xlu2 %4100, %v4112_v46   ;;  %v1111_v1 = vsel %vm5449_vm8, %v1043_v24, %v5537_v31  ;;  %v4105_v31 = vld [vmem:[%s6822_s3 + $0x8] ss:$0 sm:$0xff]  ;;  %v4067_v46 = vunpack.i.h.bf16 %v4065_v6  ;;  %v4110_v6 = vld [vmem:[%s6822_s3 + $0x9] ss:$0 sm:$0xff] }
 0x256   :  { %v2370_v32 = vunpack.c.l.b16 %v1563_v37  ;;  %v2348_v44 = vunpack.c.l.b16 %v1561_v11  ;;  %v4118_v11 = vld [vmem:[%s6822_s3 + $0x10] ss:$0 sm:$0xff] }
 0x257   :  { %1757 = vperm.xlu0 %4098, %v4102_v49   ;;  %v4115_v49 = vld [vmem:[%s6822_s3 + $0xe] ss:$0 sm:$0xff] }
 0x258   :  { %v4025_v41 = vpop.permute.xlu1 %4024  ;;  %v2349_v58 = vpack.c.b16 %v2348_v44, %v2347_v4  ;;  %v2371_v19 = vpack.c.b16 %v2370_v32, %v2369_v0  ;;  %v1443_v32 = vsel %vm1387_vm9, 0.0, %v4067_v46  ;;  %v1441_v44 = vsel %vm1387_vm9, 0.0, %v4066_v42  ;;  %v4121_v4 = vld [vmem:[%s6822_s3 + $0x1a] ss:$0 sm:$0xff]  ;;  %v6041_v46 = vld [vmem:[%s6821_s1 + $0x1b] sm:$0x1] }
 0x259   :  { %v4027_v40 = vunpack.i.h.bf16 %v4025_v41  ;;  %v4026_v62 = vunpack.i.l.bf16 %v4025_v41 }
 0x25b   :  { %v1423_v54 = vsel %vm1387_vm9, 0.0, %v4027_v40  ;;  %v1421_v15 = vsel %vm1387_vm9, 0.0, %v4026_v62  ;;  %v1564_v62 = vpack.c.bf16 %v1111_v1, %v1111_v1 }
 0x25c   :  { %v1555_v61 = vpack.c.bf16 %v1423_v54, %v1423_v54  ;;  %v1553_v48 = vpack.c.bf16 %v1421_v15, %v1421_v15 }
 0x25d   :  { %1801 = vperm.xlu2 %4100, %v4115_v49  }
 0x25e   :  { %v2282_v12 = vunpack.c.l.b16 %v1555_v61  ;;  %v2260_v51 = vunpack.c.l.b16 %v1553_v48 }
 0x25f   :  { %1761 = vperm.xlu0 %4098, %v4103_v45   ;;  %v2391_v45 = vunpack.c.l.b16 %v1564_v62 }
 0x260   :  { %v2283_v16 = vpack.c.b16 %v2282_v12, %v2281_v50  ;;  %v2261_v55 = vpack.c.b16 %v2260_v51, %v2259_v27  ;;  %v4030_v20 = vpop.permute.xlu1 %4029 }
 0x261   :  { %v4032_v5 = vunpack.i.h.bf16 %v4030_v20  ;;  %v4031_v63 = vunpack.i.l.bf16 %v4030_v20 }
 0x262   :  { %2273 = vmatpush.bf16.msrb.mxu0 %v2261_v55  ;;  %2295 = vmatpush.bf16.msrb.mxu1 %v2283_v16  ;;  %v1575_v16 = vpack.c.bf16 %v1443_v32, %v1443_v32  ;;  %v1573_v55 = vpack.c.bf16 %v1441_v44, %v1441_v44 }
 0x263   :  { %v668_v23 = vsel %vm609_vm3, 0.0, %v4032_v5  ;;  %v666_v29 = vsel %vm609_vm3, 0.0, %v4031_v63  ;;  %v1604_v5 = vld [vmem:[%s6821_s1 + $0x14] sm:$0x1]  ;;  %vm3141_vm3 = vcmask 257152  }
 0x264   :  { %v5942_v35 = vsel %vm4867_vm5, %v666_v29, %v5607_v38  ;;  %v5947_v57 = vsel %vm4867_vm5, %v668_v23, %v5613_v59  ;;  %v1113_v38 = vsel %vm5449_vm8, %v1045_v25, %v5542_v3  ;;  %v6003_v23 = vld [vmem:[%s6821_s1 + $0x15] sm:$0x1]  ;;  %v4114_v29 = vld [vmem:[%s6822_s3 + $0x18] ss:$0 sm:$0xff] }
 0x265   :  { %v4088_v34 = vpack.i.bf16 %v5947_v57, %v5942_v35  ;;  %3538 = vmatmul.msk.bf16.vlgmr.msrb.gmra.mxu0 %vm1910_vm10, %v5925_v2  ;;  %3539 = vmatmul.msk.bf16.vlgmr.msrb.gmra.mxu1 %vm1910_vm10, %v5930_v28  ;;  %v1566_v40 = vpack.c.bf16 %v1113_v38, %v1113_v38 }
 0x266   :  { %2361 = vmatpush.bf16.msra.mxu0 %v2349_v58  ;;  %2383 = vmatpush.bf16.msra.mxu1 %v2371_v19  ;;  %v1607_v19 = vld [vmem:[%s6821_s1 + $0x17] sm:$0x1] }
 0x267   :  { %4089 = vrot.lane.b32.xlu1 %v4088_v34, %s4243_s18  ;;  %1797 = vperm.xlu0 %4098, %v4108_v7   ;;  %v2413_v15 = vunpack.c.l.b16 %v1566_v40  ;;  %v6025_v40 = vpop.f32.mrf.mxu3 }
 0x268   :  { %v4045_v59 = vpop.permute.xlu1 %4044  ;;  %1809 = vperm.xlu2 %4100, %v4118_v11   ;;  %v6023_v11 = vpop.f32.mrf.mxu2 }
 0x269   :  { %v4047_v41 = vunpack.i.h.bf16 %v4045_v59  ;;  %v4046_v37 = vunpack.i.l.bf16 %v4045_v59  ;;  %v4124_v59 = vld [vmem:[%s6822_s3 + $0x19] ss:$0 sm:$0xff] }
 0x26b   :  { %v1435_v9 = vsel %vm1387_vm9, 0.0, %v4047_v41  ;;  %v1433_v3 = vsel %vm1387_vm9, 0.0, %v4046_v37  ;;  %v4117_v41 = vld [vmem:[%s6822_s3 + $0x11] ss:$0 sm:$0xff] }
 0x26c   :  { %v1567_v18 = vpack.c.bf16 %v1435_v9, %v1435_v9  ;;  %v1565_v54 = vpack.c.bf16 %v1433_v3, %v1433_v3  ;;  %v4126_v3 = vld [vmem:[%s6822_s3 + $0x1c] ss:$0 sm:$0xff] }
 0x26e   :  { %v2414_v61 = vunpack.c.l.b16 %v1567_v18  ;;  %v2392_v48 = vunpack.c.l.b16 %v1565_v54  ;;  %v4120_v54 = vld [vmem:[%s6822_s3 + $0x1b] ss:$0 sm:$0xff] }
 0x26f   :  { %1777 = vperm.xlu1 %4099, %v4105_v31   ;;  %1773 = vperm.xlu0 %4098, %v4111_v33   ;;  %v6033_v31 = vld [vmem:[%s6821_s1 + $0x1a] sm:$0x1]  ;;  %v4113_v33 = vld [vmem:[%s6822_s3 + $0xc] ss:$0 sm:$0xff] }
 0x270   :  { %v2393_v50 = vpack.c.b16 %v2392_v48, %v2391_v45  ;;  %v2415_v27 = vpack.c.b16 %v2414_v61, %v2413_v15  ;;  %v4060_v12 = vpop.permute.xlu1 %4059  ;;  %1849 = vperm.xlu2 %4100, %v4121_v4   ;;  %v4070_v37 = vpop.permute.xlu0 %4069 }
 0x271   :  { %v4062_v51 = vunpack.i.h.bf16 %v4060_v12  ;;  %v4061_v0 = vunpack.i.l.bf16 %v4060_v12  ;;  %v4072_v62 = vunpack.i.h.bf16 %v4070_v37  ;;  %v4071_v9 = vunpack.i.l.bf16 %v4070_v37  ;;  %v1925_v15 = vpop.f32.mrf.mxu2  ;;  %v1947_v45 = vpop.f32.mrf.mxu3  ;;  %v4132_v37 = vld [vmem:[%s6822_s3 + $0x1f] ss:$0 sm:$0xff] }
 0x272   :  { %2405 = vmatpush.bf16.msra.mxu2 %v2393_v50  ;;  %2427 = vmatpush.bf16.msra.mxu3 %v2415_v27  ;;  %v4128_v27 = vld [vmem:[%s6822_s3 + $0x16] ss:$0 sm:$0xff]  ;;  %v4127_v45 = vld [vmem:[%s6822_s3 + $0x14] ss:$0 sm:$0xff] }
 0x273   :  { %v1053_v20 = vsel %vm998_vm6, 0.0, %v4062_v51  ;;  %v1051_v58 = vsel %vm998_vm6, 0.0, %v4061_v0  ;;  %v1049_v42 = vsel %vm998_vm6, 0.0, %v4072_v62  ;;  %v1047_v18 = vsel %vm998_vm6, 0.0, %v4071_v9  ;;  %v6105_v62 = vpop.f32.mrf.mxu0  ;;  %v6107_v9 = vpop.f32.mrf.mxu1 }
 0x274   :  { %v1121_v63 = vsel %vm5449_vm8, %v1053_v20, %v5719_v10  ;;  %v1119_v49 = vsel %vm5449_vm8, %v1051_v58, %v5714_v52  ;;  %v2502_v52 = vunpack.c.l.b16 %v1575_v16  ;;  %v2480_v10 = vunpack.c.l.b16 %v1573_v55  ;;  %v4123_v16 = vld [vmem:[%s6822_s3 + $0x15] ss:$0 sm:$0xff] }
 0x275   :  { %v1574_v7 = vpack.c.bf16 %v1121_v63, %v1121_v63  ;;  %v1572_v25 = vpack.c.bf16 %v1119_v49, %v1119_v49  ;;  %3544 = vmatmul.msk.bf16.vlgmr.msra.gmra.mxu2 %vm1910_vm10, %v5984_v13  ;;  %3545 = vmatmul.msk.bf16.vlgmr.msra.gmra.mxu3 %vm1910_vm10, %v1607_v19  ;;  %v1117_v61 = vsel %vm5449_vm8, %v1049_v42, %v5733_v26  ;;  %v4116_v26 = vld [vmem:[%s6822_s3 + $0x6] ss:$0 sm:$0xff] }
 0x276   :  { %3542 = vmatmul.msk.bf16.vlgmr.msra.gmra.mxu0 %vm1910_vm10, %v1604_v5  ;;  %3543 = vmatmul.msk.bf16.vlgmr.msra.gmra.mxu1 %vm1910_vm10, %v6003_v23  ;;  %v1115_v48 = vsel %vm5449_vm8, %v1047_v18, %v5728_v43  ;;  %v1570_v12 = vpack.c.bf16 %v1117_v61, %v1117_v61 }
 0x277   :  { %v2501_v24 = vunpack.c.l.b16 %v1574_v7  ;;  %v2479_v34 = vunpack.c.l.b16 %v1572_v25  ;;  %1785 = vperm.xlu1 %4099, %v4107_v53   ;;  %1841 = vperm.xlu0 %4098, %v4114_v29   ;;  %v1568_v51 = vpack.c.bf16 %v1115_v48, %v1115_v48  ;;  %v4080_v7 = vpop.permute.xlu2 %4079  ;;  %v6076_v25 = vld [vmem:[%s6821_s1 + $0x18] sm:$0x1] }
 0x278   :  { %1845 = vperm.xlu2 %4100, %v4124_v59   ;;  %v2457_v20 = vunpack.c.l.b16 %v1570_v12 }
 0x279   :  { %v2481_v38 = vpack.c.b16 %v2480_v10, %v2479_v34  ;;  %v2503_v1 = vpack.c.b16 %v2502_v52, %v2501_v24  ;;  %v6069_v55 = vpop.f32.mrf.mxu2  ;;  %v2435_v58 = vunpack.c.l.b16 %v1568_v51  ;;  %v6071_v63 = vpop.f32.mrf.mxu3  ;;  %v6081_v52 = vld [vmem:[%s6821_s1 + $0x19] sm:$0x1]  ;;  %v4119_v10 = vld [vmem:[%s6822_s3 + $0xf] ss:$0 sm:$0xff]  ;;  %v4130_v24 = vld [vmem:[%s6822_s3 + $0x1e] ss:$0 sm:$0xff] }
 0x27a   :  { %v4129_v51 = vld [vmem:[%s6822_s3 + $0x1d] ss:$0 sm:$0xff] }
 0x27b   :  { %2493 = vmatpush.bf16.msrb.mxu2 %v2481_v38  ;;  %2515 = vmatpush.bf16.msrb.mxu3 %v2503_v1  ;;  %v4122_v1 = vld [vmem:[%s6822_s3 + $0x12] ss:$0 sm:$0xff]  ;;  %v2035_v15 = vpop.f32.mrf.mxu1 }
 0x27f   :  { %1781 = vperm.xlu1 %4099, %v4110_v6   ;;  %1813 = vperm.xlu0 %4098, %v4117_v41   ;;  %v6096_v59 = vpop.permute.xlu2 %4094 }
 0x280   :  { %1857 = vperm.xlu2 %4100, %v4126_v3   ;;  %v4125_v3 = vld [vmem:[%s6822_s3 + $0x13] ss:$0 sm:$0xff] }
 0x281   :  { %v1969_v34 = vpop.f32.mrf.mxu2  ;;  %v1991_v38 = vpop.f32.mrf.mxu3 }
 0x285   :  { %3548 = vmatmul.msk.bf16.vlgmr.msrb.gmra.mxu2 %vm1910_vm10, %v6033_v31  ;;  %3549 = vmatmul.msk.bf16.vlgmr.msrb.gmra.mxu3 %vm1910_vm10, %v6041_v46 }
 0x287   :  { %1793 = vperm.xlu1 %4099, %v4113_v33   ;;  %1853 = vperm.xlu0 %4098, %v4120_v54   ;;  %v1754_v33 = vpop.permute.xlu2 %1753  ;;  %v2013_v54 = vpop.f32.mrf.mxu0 }
 0x288   :  { %v4075_v32 = vpop.permute.xlu1 %4074  ;;  %1833 = vperm.xlu2 %4100, %v4128_v27   ;;  %v4227_v27 = vld [vmem:[%s6821_s1 + $0x1] sm:$0x1] }
 0x289   :  { %v4077_v44 = vunpack.i.h.bf16 %v4075_v32  ;;  %v4076_v50 = vunpack.i.l.bf16 %v4075_v32  ;;  %v6098_v6 = vpop.f32.mrf.mxu2  ;;  %v6100_v41 = vpop.f32.mrf.mxu3  ;;  %v1617_v12 = vunpack.c.l.bf16 %v4227_v27 }
 0x28b   :  { %v1439_v0 = vsel %vm1387_vm9, 0.0, %v4077_v44  ;;  %v1437_v4 = vsel %vm1387_vm9, 0.0, %v4076_v50  ;;  %v4082_v44 = vunpack.i.h.bf16 %v4080_v7  ;;  %v4081_v50 = vunpack.i.l.bf16 %v4080_v7 }
 0x28c   :  { %v1571_v43 = vpack.c.bf16 %v1439_v0, %v1439_v0  ;;  %v1569_v53 = vpack.c.bf16 %v1437_v4, %v1437_v4  ;;  %v1618_v7 = vunpack.c.l.bf16 %v5584_v60 }
 0x28d   :  { %v1061_v4 = vsel %vm998_vm6, 0.0, %v4082_v44  ;;  %v4228_v44 = vld [vmem:[%s6821_s1] sm:$0x1] }
 0x28e   :  { %v2458_v19 = vunpack.c.l.b16 %v1571_v43  ;;  %v2436_v5 = vunpack.c.l.b16 %v1569_v53  ;;  %v1874_v54 = vmul.f32 %v1754_v33, %v1618_v7  ;;  %v1621_v33 = vunpack.c.l.bf16 %v5647_v14  ;;  %v1614_v7 = vld [vmem:[%s6821_s1 + $0x1e] sm:$0x1] }
 0x28f   :  { %1769 = vperm.xlu1 %4099, %v4116_v26   ;;  %1829 = vperm.xlu0 %4098, %v4123_v16   ;;  %v1059_v26 = vsel %vm998_vm6, 0.0, %v4081_v50  ;;  %v1616_v50 = vunpack.c.l.bf16 %v4228_v44 }
 0x290   :  { %v2437_v49 = vpack.c.b16 %v2436_v5, %v2435_v58  ;;  %v2459_v29 = vpack.c.b16 %v2458_v19, %v2457_v20  ;;  %1869 = vperm.xlu2 %4100, %v4132_v37   ;;  %v1129_v20 = vsel %vm5449_vm8, %v1061_v4, %v5803_v36  ;;  %v1127_v58 = vsel %vm5449_vm8, %v1059_v26, %v5798_v22  ;;  %v6138_v5 = vpop.f32.mrf.mxu0  ;;  %v4131_v22 = vld [vmem:[%s6822_s3 + $0x17] ss:$0 sm:$0xff] }
 0x291   :  { %v2057_v42 = vpop.f32.mrf.mxu2  ;;  %v2079_v18 = vpop.f32.mrf.mxu3  ;;  %v1580_v36 = vpack.c.bf16 %v1127_v58, %v1127_v58 }
 0x292   :  { %2449 = vmatpush.bf16.msrb.mxu0 %v2437_v49  ;;  %2471 = vmatpush.bf16.msrb.mxu1 %v2459_v29 }
 0x295   :  { %3546 = vmatmul.msk.bf16.vlgmr.msrb.gmra.mxu0 %vm1910_vm10, %v6076_v25  ;;  %3547 = vmatmul.msk.bf16.vlgmr.msrb.gmra.mxu1 %vm1910_vm10, %v6081_v52 }
 0x297   :  { %1805 = vperm.xlu1 %4099, %v4119_v10   ;;  %1865 = vperm.xlu0 %4098, %v4130_v24   ;;  %v1582_v24 = vpack.c.bf16 %v1129_v20, %v1129_v20  ;;  %v6159_v20 = vadd.f32 %v6069_v55, %v1874_v54 }
 0x298   :  { %v2101_v4 = vpop.f32.mrf.mxu0 }
 0x299   :  { %v6115_v61 = vpop.f32.mrf.mxu2  ;;  %v6117_v32 = vpop.f32.mrf.mxu3  ;;  %v2611_v55 = vmul.f32 %v6159_v20, %v6159_v20 }
 0x29a   :  { %v6140_v49 = vpop.f32.mrf.mxu1 }
 0x29f   :  { %1817 = vperm.xlu1 %4099, %v4122_v1   ;;  %v1750_v48 = vpop.permute.xlu2 %1749 }
 0x2a0   :  { %v1873_v0 = vmul.f32 %v1750_v48, %v1617_v12  ;;  %v2567_v48 = vunpack.c.l.b16 %v1580_v36 }
 0x2a1   :  { %v2145_v53 = vpop.f32.mrf.mxu2  ;;  %v2167_v16 = vpop.f32.mrf.mxu3 }
 0x2a2   :  { %v6128_v43 = vadd.f32 %v6025_v40, %v1873_v0  ;;  %v2123_v26 = vpop.f32.mrf.mxu1 }
 0x2a4   :  { %v2610_v19 = vmul.f32 %v6128_v43, %v6128_v43 }
 0x2a6   :  { %v2642_v10 = vmul.f32 %v2610_v19, %v6128_v43 }
 0x2a7   :  { %1821 = vperm.xlu1 %4099, %v4125_v3   ;;  %v1790_v40 = vpop.permute.xlu2 %1789 }
 0x2a8   :  { %v2674_v1 = vmul.f32 0.044715, %v2642_v10  ;;  %v1615_v10 = vld [vmem:[%s6821_s1 + $0x1f] sm:$0x1] }
 0x2a9   :  { %v6150_v15 = vpop.f32.mrf.mxu2  ;;  %v6155_v27 = vpop.f32.mrf.mxu3 }
 0x2aa   :  { %v2706_v60 = vadd.f32 %v2674_v1, %v6128_v43 }
 0x2ac   :  { %v2738_v0 = vmul.f32 0.7978846, %v2706_v60  ;;  %v2643_v60 = vmul.f32 %v2611_v55, %v6159_v20 }
 0x2ae   :  { %4137 = vtanh.f32 %v2738_v0 }
 0x2af   :  { %1825 = vperm.xlu1 %4099, %v4127_v45   ;;  %v2589_v45 = vunpack.c.l.b16 %v1582_v24 }
 0x2b1   :  { %v2233_v36 = vpop.f32.mrf.mxu2  ;;  %v2255_v1 = vpop.f32.mrf.mxu3 }
 0x2b7   :  { %1861 = vperm.xlu1 %4099, %v4129_v51  }
 0x2b9   :  { %v4085_v29 = vpop.permute.xlu0 %4084 }
 0x2ba   :  { %v4087_v34 = vunpack.i.h.bf16 %v4085_v29  ;;  %v4086_v38 = vunpack.i.l.bf16 %v4085_v29  ;;  %v1766_v29 = vpop.permute.xlu2 %1765 }
 0x2bb   :  { %v1877_v14 = vmul.f32 %v1766_v29, %v1621_v33  ;;  %v2675_v33 = vmul.f32 0.044715, %v2643_v60 }
 0x2bc   :  { %v1451_v37 = vsel %vm1387_vm9, 0.0, %v4087_v34  ;;  %v1449_v3 = vsel %vm1387_vm9, 0.0, %v4086_v38  ;;  %v4229_v38 = vld [vmem:[%s6821_s1 + $0x3] sm:$0x1] }
 0x2bd   :  { %v1583_v42 = vpack.c.bf16 %v1451_v37, %v1451_v37  ;;  %v1581_v18 = vpack.c.bf16 %v1449_v3, %v1449_v3  ;;  %v4138_v37 = vpop.eup %4137  ;;  %v6182_v3 = vpop.f32.mrf.mxu0  ;;  %v2707_v55 = vadd.f32 %v2675_v33, %v6159_v20 }
 0x2be   :  { %v2802_v54 = vadd.f32 1.0, %v4138_v37 }
 0x2bf   :  { %v2590_v12 = vunpack.c.l.b16 %v1583_v42  ;;  %v2568_v51 = vunpack.c.l.b16 %v1581_v18  ;;  %1837 = vperm.xlu1 %4099, %v4131_v22   ;;  %v1619_v22 = vunpack.c.l.bf16 %v4229_v38  ;;  %v6184_v42 = vpop.f32.mrf.mxu1  ;;  %v4097_v38 = vunpack.i.h.bf16 %v6096_v59 }
 0x2c0   :  { %v2834_v0 = vmul.f32 0.5, %v2802_v54 }
 0x2c1   :  { %v2569_v53 = vpack.c.b16 %v2568_v51, %v2567_v48  ;;  %v2591_v16 = vpack.c.b16 %v2590_v12, %v2589_v45  ;;  %v1746_v58 = vpop.permute.xlu0 %1745  ;;  %v1627_v48 = vunpack.c.l.bf16 %v5770_v56 }
 0x2c2   :  { %v1872_v19 = vmul.f32 %v1746_v58, %v1616_v50  ;;  %v6195_v26 = vpop.permute.xlu2 %1801  ;;  %v4230_v58 = vld [vmem:[%s6821_s1 + $0x4] sm:$0x1] }
 0x2c3   :  { %2581 = vmatpush.bf16.msra.mxu2 %v2569_v53  ;;  %2603 = vmatpush.bf16.msra.mxu3 %v2591_v16  ;;  %v1883_v12 = vmul.f32 %v1790_v40, %v1627_v48  ;;  %v6200_v16 = vpop.f32.mrf.mxu2 }
 0x2c4   :  { %v6168_v24 = vadd.f32 %v6023_v11, %v1872_v19  ;;  %v6180_v11 = vadd.f32 %v6107_v9, %v1877_v14  ;;  %v1620_v19 = vunpack.c.l.bf16 %v4230_v58  ;;  %v2866_v14 = vmul.f32 %v2834_v0, %v6128_v43 }
 0x2c5   :  { %v6198_v53 = vadd.f32 %v6117_v32, %v1883_v12  ;;  %v2189_v32 = vpop.f32.mrf.mxu0 }
 0x2c6   :  { %3552 = vmatmul.msk.bf16.vlgmr.msra.gmra.mxu2 %vm1910_vm10, %v1614_v7  ;;  %3553 = vmatmul.msk.bf16.vlgmr.msra.gmra.mxu3 %vm1910_vm10, %v1615_v10  ;;  %v2609_v34 = vmul.f32 %v6168_v24, %v6168_v24  ;;  %v2614_v51 = vmul.f32 %v6180_v11, %v6180_v11  ;;  %v2898_v54 = vpack.c.bf16 %v2866_v14, %v2866_v14 }
 0x2c7   :  { %v2211_v10 = vpop.f32.mrf.mxu1 }
 0x2c8   :  { %v2641_v18 = vmul.f32 %v2609_v34, %v6168_v24  ;;  %v6207_v29 = vpop.f32.mrf.mxu3  ;;  %v2646_v7 = vmul.f32 %v2614_v51, %v6180_v11 }
 0x2c9   :  { %v1758_v45 = vpop.permute.xlu0 %1757 }
 0x2ca   :  { %v2673_v44 = vmul.f32 0.044715, %v2641_v18  ;;  %v1875_v50 = vmul.f32 %v1758_v45, %v1619_v22  ;;  %v2678_v37 = vmul.f32 0.044715, %v2646_v7  ;;  %v4096_v18 = vunpack.i.l.bf16 %v6096_v59 }
 0x2cb   :  { %v2739_v45 = vmul.f32 0.7978846, %v2707_v55  ;;  %v2321_v43 = vpop.f32.mrf.mxu2 }
 0x2cc   :  { %v2705_v9 = vadd.f32 %v2673_v44, %v6168_v24  ;;  %v6193_v4 = vadd.f32 %v6071_v63, %v1875_v50  ;;  %v2620_v63 = vmul.f32 %v6198_v53, %v6198_v53  ;;  %v1447_v50 = vsel %vm1387_vm9, 0.0, %v4097_v38 }
 0x2cd   :  { %v2710_v59 = vadd.f32 %v2678_v37, %v6180_v11  ;;  %v1579_v58 = vpack.c.bf16 %v1447_v50, %v1447_v50 }
 0x2ce   :  { %v2737_v56 = vmul.f32 0.7978846, %v2705_v9  ;;  %v2612_v40 = vmul.f32 %v6193_v4, %v6193_v4  ;;  %v2652_v22 = vmul.f32 %v2620_v63, %v6198_v53  ;;  %v6224_v9 = vpop.permute.xlu2 %1809 }
 0x2d0   :  { %4139 = vtanh.f32 %v2737_v56  ;;  %v2644_v36 = vmul.f32 %v2612_v40, %v6193_v4  ;;  %v2684_v12 = vmul.f32 0.044715, %v2652_v22  ;;  %v2343_v0 = vpop.f32.mrf.mxu3  ;;  %v1445_v56 = vsel %vm1387_vm9, 0.0, %v4096_v18 }
 0x2d1   :  { %v1762_v34 = vpop.permute.xlu0 %1761  ;;  %4141 = vtanh.f32 %v2739_v45  ;;  %v2742_v22 = vmul.f32 0.7978846, %v2710_v59 }
 0x2d2   :  { %v1876_v1 = vmul.f32 %v1762_v34, %v1620_v19  ;;  %v2676_v48 = vmul.f32 0.044715, %v2644_v36  ;;  %v2716_v10 = vadd.f32 %v2684_v12, %v6198_v53  ;;  %v1577_v34 = vpack.c.bf16 %v1445_v56, %v1445_v56 }
 0x2d3   :  { %4143 = vtanh.f32 %v2742_v22 }
 0x2d4   :  { %v6219_v60 = vadd.f32 %v6105_v62, %v1876_v1  ;;  %v2962_v62 = vunpack.c.l.b16 %v2898_v54  ;;  %v2708_v63 = vadd.f32 %v2676_v48, %v6193_v4  ;;  %v2524_v59 = vunpack.c.l.b16 %v1577_v34 }
 0x2d6   :  { %v4140_v44 = vpop.eup %4139  ;;  %v2613_v51 = vmul.f32 %v6219_v60, %v6219_v60  ;;  %v2993_v1 = vrot.slane %v2962_v62, 7  ;;  %v2740_v48 = vmul.f32 0.7978846, %v2708_v63 }
 0x2d7   :  { %v2801_v33 = vadd.f32 1.0, %v4140_v44  ;;  %v4142_v0 = vpop.eup %4141 }
 0x2d8   :  { %v2645_v40 = vmul.f32 %v2613_v51, %v6219_v60  ;;  %v1624_v51 = vunpack.c.l.bf16 %v5821_v30  ;;  %4145 = vtanh.f32 %v2740_v48 }
 0x2d9   :  { %v2833_v19 = vmul.f32 0.5, %v2801_v33  ;;  %v4090_v7 = vpop.permute.xlu1 %4089  ;;  %v1798_v32 = vpop.permute.xlu0 %1797  ;;  %v2546_v33 = vunpack.c.l.b16 %v1579_v58 }
 0x2da   :  { %v4092_v14 = vunpack.i.h.bf16 %v4090_v7  ;;  %v4091_v55 = vunpack.i.l.bf16 %v4090_v7  ;;  %v2677_v36 = vmul.f32 0.044715, %v2645_v40  ;;  %v6242_v7 = vpop.permute.xlu2 %1849  ;;  %v4144_v48 = vpop.eup %4143 }
 0x2db   :  { %v2865_v38 = vmul.f32 %v2833_v19, %v6168_v24  ;;  %v2748_v24 = vmul.f32 0.7978846, %v2716_v10 }
 0x2dc   :  { %v1057_v37 = vsel %vm998_vm6, 0.0, %v4092_v14  ;;  %v1055_v18 = vsel %vm998_vm6, 0.0, %v4091_v55  ;;  %v2709_v54 = vadd.f32 %v2677_v36, %v6219_v60 }
 0x2dd   :  { %v2897_v45 = vpack.c.bf16 %v2865_v38, %v2865_v38  ;;  %v1125_v43 = vsel %vm5449_vm8, %v1057_v37, %v5947_v57  ;;  %v1123_v44 = vsel %vm5449_vm8, %v1055_v18, %v5942_v35  ;;  %v1630_v35 = vunpack.c.l.bf16 %v5835_v47  ;;  %v6260_v47 = vld [vmem:[%s6821_s1 + $0x1c] sm:$0x1]  ;;  %v6265_v18 = vld [vmem:[%s6821_s1 + $0x1d] sm:$0x1] }
 0x2de   :  { %v1578_v50 = vpack.c.bf16 %v1125_v43, %v1125_v43  ;;  %v1576_v12 = vpack.c.bf16 %v1123_v44, %v1123_v44  ;;  %v2741_v63 = vmul.f32 0.7978846, %v2709_v54  ;;  %4147 = vtanh.f32 %v2748_v24  ;;  %v4232_v44 = vld [vmem:[%s6821_s1 + $0xa] sm:$0x1] }
 0x2df   :  { %v2961_v56 = vunpack.c.l.b16 %v2897_v45  ;;  %v2803_v38 = vadd.f32 1.0, %v4142_v0  ;;  %v1886_v37 = vmul.f32 %v6195_v26, %v1630_v35  ;;  %v1632_v26 = vunpack.c.l.bf16 %v5925_v2 }
 0x2e0   :  { %v2545_v40 = vunpack.c.l.b16 %v1578_v50  ;;  %v2523_v19 = vunpack.c.l.b16 %v1576_v12  ;;  %4149 = vtanh.f32 %v2741_v63  ;;  %v1626_v24 = vunpack.c.l.bf16 %v4232_v44  ;;  %v4146_v50 = vpop.eup %4145 }
 0x2e1   :  { %v3069_v57 = vrot.slane %v2961_v56, 1  ;;  %v6245_v14 = vsel %vm2994_vm11, %v2993_v1, %v2961_v56  ;;  %v1778_v17 = vpop.permute.xlu1 %1777  ;;  %v1774_v10 = vpop.permute.xlu0 %1773  ;;  %v6270_v54 = vadd.f32 %v6150_v15, %v1886_v37  ;;  %v1888_v2 = vmul.f32 %v6224_v9, %v1632_v26 }
 0x2e2   :  { %v1880_v30 = vmul.f32 %v1778_v17, %v1624_v51  ;;  %v2525_v58 = vpack.c.b16 %v2524_v59, %v2523_v19  ;;  %v2547_v55 = vpack.c.b16 %v2546_v33, %v2545_v40  ;;  %v2275_v36 = vpop.f32.mrf.mxu0  ;;  %v6248_v34 = vpop.f32.mrf.mxu1  ;;  %v2835_v12 = vmul.f32 0.5, %v2803_v38 }
 0x2e3   :  { %v6251_v22 = vsel %vm2994_vm11, %v2962_v62, %v3069_v57  ;;  %v1629_v62 = vunpack.c.l.bf16 %v5862_v39  ;;  %v2623_v0 = vmul.f32 %v6270_v54, %v6270_v54  ;;  %v6288_v33 = vadd.f32 %v2275_v36, %v1888_v2 }
 0x2e4   :  { %v6255_v1 = vadd.f32 %v6138_v5, %v1880_v30  ;;  %2537 = vmatpush.bf16.msra.mxu0 %v2525_v58  ;;  %2559 = vmatpush.bf16.msra.mxu1 %v2547_v55  ;;  %v4231_v5 = vld [vmem:[%s6821_s1 + $0x7] sm:$0x1]  ;;  %v4148_v15 = vpop.eup %4147  ;;  %v2804_v17 = vadd.f32 1.0, %v4146_v50  ;;  %v2806_v30 = vadd.f32 1.0, %v4144_v48  ;;  %v2867_v36 = vmul.f32 %v2835_v12, %v6159_v20 }
 0x2e5   :  { %v1623_v45 = vunpack.c.l.bf16 %v4231_v5  ;;  %v1885_v39 = vmul.f32 %v1798_v32, %v1629_v62  ;;  %v2812_v35 = vadd.f32 1.0, %v4148_v15  ;;  %v2625_v58 = vmul.f32 %v6288_v33, %v6288_v33 }
 0x2e6   :  { %v2617_v43 = vmul.f32 %v6255_v1, %v6255_v1  ;;  %v4150_v56 = vpop.eup %4149  ;;  %v1625_v20 = vunpack.c.l.bf16 %v5826_v8  ;;  %v2899_v2 = vpack.c.bf16 %v2867_v36, %v2867_v36 }
 0x2e7   :  { %3550 = vmatmul.msk.bf16.vlgmr.msra.gmra.mxu0 %vm1910_vm10, %v6260_v47  ;;  %3551 = vmatmul.msk.bf16.vlgmr.msra.gmra.mxu1 %vm1910_vm10, %v6265_v18  ;;  %v6291_v32 = vadd.f32 %v6184_v42, %v1885_v39  ;;  %v1879_v9 = vmul.f32 %v1774_v10, %v1623_v45  ;;  %v2655_v42 = vmul.f32 %v2623_v0, %v6270_v54  ;;  %v6300_v10 = vpop.permute.xlu2 %1845  ;;  %v2805_v37 = vadd.f32 1.0, %v4150_v56 }
 0x2e8   :  { %v2649_v51 = vmul.f32 %v2617_v43, %v6255_v1  ;;  %v2657_v26 = vmul.f32 %v2625_v58, %v6288_v33  ;;  %v2836_v43 = vmul.f32 0.5, %v2804_v17  ;;  %v2844_v44 = vmul.f32 0.5, %v2812_v35 }
 0x2e9   :  { %v1786_v59 = vpop.permute.xlu1 %1785  ;;  %v6295_v55 = vpop.permute.xlu0 %1841  ;;  %v2622_v62 = vmul.f32 %v6291_v32, %v6291_v32  ;;  %v6306_v5 = vadd.f32 %v6100_v41, %v1879_v9  ;;  %v2687_v50 = vmul.f32 0.044715, %v2655_v42  ;;  %v2837_v15 = vmul.f32 0.5, %v2805_v37 }
 0x2ea   :  { %v2681_v40 = vmul.f32 0.044715, %v2649_v51  ;;  %v1882_v19 = vmul.f32 %v1786_v59, %v1626_v24  ;;  %v2277_v63 = vpop.f32.mrf.mxu0  ;;  %v2299_v57 = vpop.f32.mrf.mxu1  ;;  %v2838_v24 = vmul.f32 0.5, %v2806_v30  ;;  %v2689_v39 = vmul.f32 0.044715, %v2657_v26 }
 0x2eb   :  { %v2654_v12 = vmul.f32 %v2622_v62, %v6291_v32  ;;  %v2616_v41 = vmul.f32 %v6306_v5, %v6306_v5  ;;  %v2868_v59 = vmul.f32 %v2836_v43, %v6193_v4  ;;  %v2876_v9 = vmul.f32 %v2844_v44, %v6198_v53 }
 0x2ec   :  { %v2713_v38 = vadd.f32 %v2681_v40, %v6255_v1  ;;  %v6309_v48 = vadd.f32 %v6115_v61, %v1882_v19  ;;  %v2721_v8 = vadd.f32 %v2689_v39, %v6288_v33  ;;  %v2870_v56 = vmul.f32 %v2838_v24, %v6180_v11 }
 0x2ed   :  { %v1633_v19 = vunpack.c.l.bf16 %v5930_v28  ;;  %v6324_v63 = vunpack.c.l.b16 %v2899_v2  ;;  %v2719_v57 = vadd.f32 %v2687_v50, %v6270_v54  ;;  %v2869_v4 = vmul.f32 %v2837_v15, %v6219_v60 }
 0x2ee   :  { %v2745_v45 = vmul.f32 0.7978846, %v2713_v38  ;;  %v2619_v61 = vmul.f32 %v6309_v48, %v6309_v48  ;;  %v2753_v35 = vmul.f32 0.7978846, %v2721_v8  ;;  %v2686_v53 = vmul.f32 0.044715, %v2654_v12 }
 0x2ef   :  { %v2648_v11 = vmul.f32 %v2616_v41, %v6306_v5  ;;  %v6338_v37 = vpop.permute.xlu2 %1857  ;;  %v2900_v62 = vpack.c.bf16 %v2868_v59, %v2868_v59  ;;  %v2908_v26 = vpack.c.bf16 %v2876_v9, %v2876_v9  ;;  %v2996_v60 = vrot.slane %v6324_v63, 6 }
 0x2f0   :  { %4151 = vtanh.f32 %v2745_v45  ;;  %v2651_v28 = vmul.f32 %v2619_v61, %v6309_v48  ;;  %v2902_v45 = vpack.c.bf16 %v2870_v56, %v2870_v56  ;;  %v2901_v39 = vpack.c.bf16 %v2869_v4, %v2869_v4 }
 0x2f1   :  { %v1782_v51 = vpop.permute.xlu1 %1781  ;;  %v1814_v58 = vpop.permute.xlu0 %1813  ;;  %4153 = vtanh.f32 %v2753_v35  ;;  %v2718_v50 = vadd.f32 %v2686_v53, %v6291_v32  ;;  %v3071_v8 = vrot.slane %v6324_v63, 7  ;;  %v6353_v59 = vunpack.c.l.b16 %v2900_v62 }
 0x2f2   :  { %v1881_v0 = vmul.f32 %v1782_v51, %v1625_v20  ;;  %v1889_v36 = vmul.f32 %v1814_v58, %v1633_v19  ;;  %v2751_v20 = vmul.f32 0.7978846, %v2719_v57  ;;  %v2683_v51 = vmul.f32 0.044715, %v2651_v28 }
 0x2f3   :  { %v6321_v40 = vpop.f32.mrf.mxu0  ;;  %v6330_v30 = vpop.f32.mrf.mxu1  ;;  %v6357_v9 = vunpack.c.l.b16 %v2902_v45  ;;  %v1642_v35 = vunpack.c.l.bf16 %v6033_v31  ;;  %v6364_v53 = vunpack.c.l.b16 %v2901_v39  ;;  %v3073_v39 = vrot.slane %v6353_v59, 6 }
 0x2f4   :  { %v6328_v17 = vadd.f32 %v6140_v49, %v1881_v0  ;;  %v1628_v49 = vunpack.c.l.bf16 %v5857_v21  ;;  %v6345_v24 = vadd.f32 %v6248_v34, %v1889_v36  ;;  %v2680_v21 = vmul.f32 0.044715, %v2648_v11 }
 0x2f5   :  { %v6355_v34 = vunpack.c.l.b16 %v2908_v26  ;;  %4155 = vtanh.f32 %v2751_v20  ;;  %v2750_v36 = vmul.f32 0.7978846, %v2718_v50  ;;  %v2715_v28 = vadd.f32 %v2683_v51, %v6309_v48 }
 0x2f6   :  { %v4152_v38 = vpop.eup %4151  ;;  %v2618_v42 = vmul.f32 %v6328_v17, %v6328_v17  ;;  %v2626_v0 = vmul.f32 %v6345_v24, %v6345_v24 }
 0x2f7   :  { %v2809_v2 = vadd.f32 1.0, %v4152_v38  ;;  %v4154_v19 = vpop.eup %4153  ;;  %v2712_v38 = vadd.f32 %v2680_v21, %v6306_v5 }
 0x2f8   :  { %v2650_v43 = vmul.f32 %v2618_v42, %v6328_v17  ;;  %v6342_v44 = vpop.f32.mrf.mxu2  ;;  %v6348_v12 = vpop.f32.mrf.mxu3  ;;  %v2658_v31 = vmul.f32 %v2626_v0, %v6345_v24  ;;  %v2817_v20 = vadd.f32 1.0, %v4154_v19 }
 0x2f9   :  { %v1794_v15 = vpop.permute.xlu1 %1793  ;;  %v2841_v11 = vmul.f32 0.5, %v2809_v2  ;;  %v6372_v26 = vpop.permute.xlu0 %1853  ;;  %v3087_v2 = vrot.slane %v6355_v34, 6 }
 0x2fa   :  { %v2682_v41 = vmul.f32 0.044715, %v2650_v43  ;;  %v1884_v61 = vmul.f32 %v1794_v15, %v1628_v49  ;;  %v4233_v49 = vld [vmem:[%s6821_s1 + $0x6] sm:$0x1]  ;;  %v1638_v43 = vunpack.c.l.bf16 %v5984_v13  ;;  %v1834_v15 = vpop.permute.xlu2 %1833  ;;  %v3002_v13 = vrot.slane %v6364_v53, 4 }
 0x2fb   :  { %v2365_v56 = vpop.f32.mrf.mxu0  ;;  %v2387_v4 = vpop.f32.mrf.mxu1  ;;  %v1622_v62 = vunpack.c.l.bf16 %v4233_v49  ;;  %v2873_v51 = vmul.f32 %v2841_v11, %v6255_v1  ;;  %v2690_v49 = vmul.f32 0.044715, %v2658_v31  ;;  %v2849_v45 = vmul.f32 0.5, %v2817_v20 }
 0x2fc   :  { %v2714_v57 = vadd.f32 %v2682_v41, %v6328_v17  ;;  %v6362_v58 = vadd.f32 %v6182_v3, %v1884_v61  ;;  %v2744_v41 = vmul.f32 0.7978846, %v2712_v38  ;;  %v1898_v61 = vmul.f32 %v6242_v7, %v1642_v35  ;;  %v4156_v19 = vpop.eup %4155  ;;  %v4234_v35 = vld [vmem:[%s6821_s1 + $0xf] sm:$0x1] }
 0x2fd   :  { %v1894_v3 = vmul.f32 %v1834_v15, %v1638_v43  ;;  %v2722_v7 = vadd.f32 %v2690_v49, %v6345_v24  ;;  %v2905_v38 = vpack.c.bf16 %v2873_v51, %v2873_v51  ;;  %v2881_v15 = vmul.f32 %v2849_v45, %v6288_v33 }
 0x2fe   :  { %v2746_v42 = vmul.f32 0.7978846, %v2714_v57  ;;  %v2621_v50 = vmul.f32 %v6362_v58, %v6362_v58  ;;  %v2747_v57 = vmul.f32 0.7978846, %v2715_v28  ;;  %v2815_v28 = vadd.f32 1.0, %v4156_v19 }
 0x2ff   :  { %v2754_v20 = vmul.f32 0.7978846, %v2722_v7  ;;  %v6401_v51 = vadd.f32 %v6342_v44, %v1894_v3 }
 0x300   :  { %4157 = vtanh.f32 %v2746_v42  ;;  %v2409_v21 = vpop.f32.mrf.mxu2  ;;  %v2431_v56 = vpop.f32.mrf.mxu3  ;;  %v3075_v42 = vrot.slane %v6364_v53, 5  ;;  %v2653_v1 = vmul.f32 %v2621_v50, %v6362_v58  ;;  %v2847_v49 = vmul.f32 0.5, %v2815_v28 }
 0x301   :  { %4159 = vtanh.f32 %v2750_v36  ;;  %v1770_v0 = vpop.permute.xlu1 %1769  ;;  %v1640_v21 = vunpack.c.l.bf16 %v6076_v25  ;;  %v1631_v36 = vunpack.c.l.bf16 %v4234_v35  ;;  %v1830_v19 = vpop.permute.xlu0 %1829 }
 0x302   :  { %v1878_v4 = vmul.f32 %v1770_v0, %v1622_v62  ;;  %4161 = vtanh.f32 %v2744_v41  ;;  %v1641_v62 = vunpack.c.l.bf16 %v6081_v52  ;;  %v2685_v41 = vmul.f32 0.044715, %v2653_v1 }
 0x303   :  { %4163 = vtanh.f32 %v2747_v57  ;;  %v1896_v0 = vmul.f32 %v6295_v55, %v1640_v21  ;;  %v1637_v57 = vunpack.c.l.bf16 %v6003_v23  ;;  %v4235_v23 = vld [vmem:[%s6821_s1 + $0x12] sm:$0x1] }
 0x304   :  { %v6388_v11 = vadd.f32 %v6098_v6, %v1878_v4  ;;  %v1643_v6 = vunpack.c.l.bf16 %v6041_v46  ;;  %4165 = vtanh.f32 %v2754_v20  ;;  %v2969_v4 = vunpack.c.l.b16 %v2905_v38 }
 0x305   :  { %v1897_v7 = vmul.f32 %v6300_v10, %v1641_v62  ;;  %v1634_v38 = vunpack.c.l.bf16 %v4235_v23  ;;  %v2717_v28 = vadd.f32 %v2685_v41, %v6362_v58 }
 0x306   :  { %v4158_v31 = vpop.eup %4157  ;;  %v2615_v25 = vmul.f32 %v6388_v11, %v6388_v11  ;;  %v3083_v20 = vrot.slane %v2969_v4, 1 }
 0x307   :  { %v4160_v43 = vpop.eup %4159  ;;  %v2810_v50 = vadd.f32 1.0, %v4158_v31  ;;  %v2913_v31 = vpack.c.bf16 %v2881_v15, %v2881_v15 }
 0x308   :  { %v2647_v52 = vmul.f32 %v2615_v25, %v6388_v11  ;;  %v2495_v56 = vpop.f32.mrf.mxu2  ;;  %v2517_v33 = vpop.f32.mrf.mxu3  ;;  %v2814_v45 = vadd.f32 1.0, %v4160_v43  ;;  %v2631_v25 = vmul.f32 %v6401_v51, %v6401_v51 }
 0x309   :  { %v2842_v46 = vmul.f32 0.5, %v2810_v50  ;;  %v1806_v35 = vpop.permute.xlu1 %1805  ;;  %v6406_v44 = vadd.f32 %v2495_v56, %v1898_v61  ;;  %v4162_v3 = vpop.eup %4161  ;;  %v1899_v50 = vmul.f32 %v6372_v26, %v1643_v6  ;;  %v2977_v23 = vunpack.c.l.b16 %v2913_v31 }
 0x30a   :  { %v2679_v55 = vmul.f32 0.044715, %v2647_v52  ;;  %v1887_v21 = vmul.f32 %v1806_v35, %v1631_v36  ;;  %v4164_v10 = vpop.eup %4163  ;;  %v1893_v36 = vmul.f32 %v1830_v19, %v1637_v57  ;;  %v2846_v52 = vmul.f32 0.5, %v2814_v45 }
 0x30b   :  { %v2874_v1 = vmul.f32 %v2842_v46, %v6328_v17  ;;  %v6420_v17 = vmul.f32 %v2847_v49, %v6270_v54  ;;  %v4166_v15 = vpop.eup %4165  ;;  %v2808_v56 = vadd.f32 1.0, %v4162_v3  ;;  %v2811_v35 = vadd.f32 1.0, %v4164_v10 }
 0x30c   :  { %v2711_v62 = vadd.f32 %v2679_v55, %v6388_v11  ;;  %v6417_v61 = vadd.f32 %v6155_v27, %v1887_v21  ;;  %v2818_v27 = vadd.f32 1.0, %v4166_v15  ;;  %v2749_v21 = vmul.f32 0.7978846, %v2717_v28 }
 0x30d   :  { %v2906_v43 = vpack.c.bf16 %v2874_v1, %v2874_v1  ;;  %v2663_v54 = vmul.f32 %v2631_v25, %v6401_v51  ;;  %v6428_v57 = vadd.f32 %v6330_v30, %v1893_v36  ;;  %v2635_v31 = vmul.f32 %v6406_v44, %v6406_v44 }
 0x30e   :  { %v2743_v46 = vmul.f32 0.7978846, %v2711_v62  ;;  %v2624_v41 = vmul.f32 %v6417_v61, %v6417_v61  ;;  %v2850_v45 = vmul.f32 0.5, %v2818_v27  ;;  %v6435_v25 = vadd.f32 %v2517_v33, %v1899_v50 }
 0x30f   :  { %v2970_v55 = vunpack.c.l.b16 %v2906_v43 }
 0x310   :  { %v2656_v19 = vmul.f32 %v2624_v41, %v6417_v61  ;;  %v2497_v26 = vpop.f32.mrf.mxu2  ;;  %4167 = vtanh.f32 %v2743_v46  ;;  %v2519_v1 = vpop.f32.mrf.mxu3  ;;  %v2882_v36 = vmul.f32 %v2850_v45, %v6345_v24  ;;  %v3097_v46 = vrot.slane %v2977_v23, 1 }
 0x311   :  { %v3014_v6 = vrot.slane %v2970_v55, 7  ;;  %v6431_v49 = vsel %vm2994_vm11, %v2970_v55, %v3083_v20  ;;  %v1818_v3 = vpop.permute.xlu1 %1817  ;;  %4169 = vtanh.f32 %v2749_v21  ;;  %v2630_v24 = vmul.f32 %v6428_v57, %v6428_v57 }
 0x312   :  { %v2688_v10 = vmul.f32 0.044715, %v2656_v19  ;;  %v1890_v28 = vmul.f32 %v1818_v3, %v1634_v38  ;;  %v2451_v62 = vpop.f32.mrf.mxu0  ;;  %v2473_v43 = vpop.f32.mrf.mxu1  ;;  %v2914_v38 = vpack.c.bf16 %v2882_v36, %v2882_v36  ;;  %v2667_v19 = vmul.f32 %v2635_v31, %v6406_v44 }
 0x313   :  { %v6438_v30 = vsel %vm2994_vm11, %v3014_v6, %v2969_v4  ;;  %v6441_v20 = vadd.f32 %v2451_v62, %v1896_v0  ;;  %v6443_v15 = vadd.f32 %v2473_v43, %v1897_v7  ;;  %v2911_v0 = vpack.c.bf16 %v6420_v17, %v6420_v17 }
 0x314   :  { %v2720_v41 = vadd.f32 %v2688_v10, %v6417_v61  ;;  %v6447_v55 = vadd.f32 %v6200_v16, %v1890_v28  ;;  %v6458_v7 = vmul.f32 %v2846_v52, %v6291_v32  ;;  %v2978_v21 = vunpack.c.l.b16 %v2914_v38 }
 0x315   :  { %v2633_v33 = vmul.f32 %v6441_v20, %v6441_v20  ;;  %v2634_v4 = vmul.f32 %v6443_v15, %v6443_v15  ;;  %v2636_v6 = vmul.f32 %v6435_v25, %v6435_v25  ;;  %v2843_v45 = vmul.f32 0.5, %v2811_v35 }
 0x316   :  { %v2752_v50 = vmul.f32 0.7978846, %v2720_v41  ;;  %v2627_v16 = vmul.f32 %v6447_v55, %v6447_v55  ;;  %v4168_v27 = vpop.eup %4167  ;;  %v2840_v3 = vmul.f32 0.5, %v2808_v56  ;;  %v3028_v52 = vrot.slane %v2978_v21, 7 }
 0x317   :  { %v2665_v26 = vmul.f32 %v2633_v33, %v6441_v20  ;;  %v2666_v32 = vmul.f32 %v2634_v4, %v6443_v15  ;;  %v6469_v1 = vsel %vm2994_vm11, %v2978_v21, %v3097_v46  ;;  %v2695_v10 = vmul.f32 0.044715, %v2663_v54  ;;  %v4170_v31 = vpop.eup %4169 }
 0x318   :  { %v2659_v17 = vmul.f32 %v2627_v16, %v6447_v55  ;;  %v2662_v28 = vmul.f32 %v2630_v24, %v6428_v57  ;;  %v2807_v43 = vadd.f32 1.0, %v4168_v27  ;;  %4171 = vtanh.f32 %v2752_v50  ;;  %v4236_v50 = vld [vmem:[%s6821_s1 + $0x13] sm:$0x1] }
 0x319   :  { %v1822_v62 = vpop.permute.xlu1 %1821  ;;  %v2697_v41 = vmul.f32 0.044715, %v2665_v26  ;;  %v6473_v56 = vsel %vm2994_vm11, %v3028_v52, %v2977_v23  ;;  %v2699_v33 = vmul.f32 0.044715, %v2667_v19  ;;  %v2698_v4 = vmul.f32 0.044715, %v2666_v32 }
 0x31a   :  { %v2691_v36 = vmul.f32 0.044715, %v2659_v17  ;;  %v2453_v38 = vpop.f32.mrf.mxu0  ;;  %v2475_v35 = vpop.f32.mrf.mxu1  ;;  %v2668_v16 = vmul.f32 %v2636_v6, %v6435_v25  ;;  %v2875_v46 = vmul.f32 %v2843_v45, %v6309_v48  ;;  %v1635_v27 = vunpack.c.l.bf16 %v4236_v50  ;;  %v4237_v48 = vld [vmem:[%s6821_s1 + $0x14] sm:$0x1] }
 0x31b   :  { %v2729_v24 = vadd.f32 %v2697_v41, %v6441_v20  ;;  %v2813_v21 = vadd.f32 1.0, %v4170_v31  ;;  %v2727_v26 = vadd.f32 %v2695_v10, %v6401_v51  ;;  %v2730_v23 = vadd.f32 %v2698_v4, %v6443_v15 }
 0x31c   :  { %v2723_v54 = vadd.f32 %v2691_v36, %v6447_v55  ;;  %v2694_v19 = vmul.f32 0.044715, %v2662_v28  ;;  %v6484_v17 = vunpack.c.l.b16 %v2911_v0  ;;  %v2839_v6 = vmul.f32 0.5, %v2807_v43 }
 0x31d   :  { %v2761_v32 = vmul.f32 0.7978846, %v2729_v24  ;;  %v1636_v45 = vunpack.c.l.bf16 %v4237_v48  ;;  %v6490_v52 = vmul.f32 %v2840_v3, %v6306_v5  ;;  %v2731_v36 = vadd.f32 %v2699_v33, %v6406_v44 }
 0x31e   :  { %v2762_v31 = vmul.f32 0.7978846, %v2730_v23  ;;  %v2700_v41 = vmul.f32 0.044715, %v2668_v16  ;;  %v4172_v10 = vpop.eup %4171  ;;  %v2907_v38 = vpack.c.bf16 %v2875_v46, %v2875_v46  ;;  %v2910_v0 = vpack.c.bf16 %v6458_v7, %v6458_v7 }
 0x31f   :  { %v2755_v28 = vmul.f32 0.7978846, %v2723_v54  ;;  %v1891_v43 = vmul.f32 %v1822_v62, %v1635_v27  ;;  %v2845_v35 = vmul.f32 0.5, %v2813_v21  ;;  %v2759_v4 = vmul.f32 0.7978846, %v2727_v26 }
 0x320   :  { %4173 = vtanh.f32 %v2761_v32  ;;  %v2726_v24 = vadd.f32 %v2694_v19, %v6428_v57  ;;  %v2871_v5 = vmul.f32 %v2839_v6, %v6388_v11  ;;  %v2904_v16 = vpack.c.bf16 %v6490_v52, %v6490_v52 }
 0x321   :  { %v1826_v50 = vpop.permute.xlu1 %1825  ;;  %4175 = vtanh.f32 %v2762_v31  ;;  %v6498_v3 = vadd.f32 %v6207_v29, %v1891_v43  ;;  %v2816_v46 = vadd.f32 1.0, %v4172_v10  ;;  %v2763_v23 = vmul.f32 0.7978846, %v2731_v36 }
 0x322   :  { %v1892_v33 = vmul.f32 %v1826_v50, %v1636_v45  ;;  %v2732_v62 = vadd.f32 %v2700_v41, %v6435_v25  ;;  %v6503_v54 = vunpack.c.l.b16 %v2907_v38  ;;  %4177 = vtanh.f32 %v2755_v28 }
 0x323   :  { %v2628_v27 = vmul.f32 %v6498_v3, %v6498_v3  ;;  %v2877_v29 = vmul.f32 %v2845_v35, %v6362_v58  ;;  %4179 = vtanh.f32 %v2759_v4  ;;  %v2758_v21 = vmul.f32 0.7978846, %v2726_v24 }
 0x324   :  { %v6508_v11 = vadd.f32 %v6321_v40, %v1892_v33  ;;  %v2903_v26 = vpack.c.bf16 %v2871_v5, %v2871_v5  ;;  %v2848_v48 = vmul.f32 0.5, %v2816_v46  ;;  %4181 = vtanh.f32 %v2763_v23 }
 0x325   :  { %v2660_v19 = vmul.f32 %v2628_v27, %v6498_v3  ;;  %v2764_v45 = vmul.f32 0.7978846, %v2732_v62  ;;  %v3072_v31 = vsel %vm2997_vm12, %v3071_v8, %v6251_v22  ;;  %v2909_v41 = vpack.c.bf16 %v2877_v29, %v2877_v29 }
 0x326   :  { %v2629_v6 = vmul.f32 %v6508_v11, %v6508_v11  ;;  %v4174_v32 = vpop.eup %4173  ;;  %4183 = vtanh.f32 %v2758_v21  ;;  %v3074_v38 = vsel %vm3000_vm13, %v3073_v39, %v3072_v31  ;;  %v6522_v43 = vunpack.c.l.b16 %v2903_v26 }
 0x327   :  { %v4176_v52 = vpop.eup %4175  ;;  %v2825_v40 = vadd.f32 1.0, %v4174_v32  ;;  %v2692_v36 = vmul.f32 0.044715, %v2660_v19  ;;  %v2880_v5 = vmul.f32 %v2848_v48, %v6417_v61  ;;  %4185 = vtanh.f32 %v2764_v45 }
 0x328   :  { %v2661_v58 = vmul.f32 %v2629_v6, %v6508_v11  ;;  %v2826_v10 = vadd.f32 1.0, %v4176_v52  ;;  %v4178_v28 = vpop.eup %4177  ;;  %v3076_v22 = vsel %vm3003_vm14, %v3075_v42, %v3074_v38  ;;  %v6534_v21 = vunpack.c.l.b16 %v2904_v16 }
 0x329   :  { %v2857_v35 = vmul.f32 0.5, %v2825_v40  ;;  %v2724_v4 = vadd.f32 %v2692_v36, %v6498_v3  ;;  %v4180_v50 = vpop.eup %4179  ;;  %v6531_v23 = vpop.permute.xlu1 %1861  ;;  %v2819_v27 = vadd.f32 1.0, %v4178_v28  ;;  %v3077_v61 = vrot.slane %v6357_v9, 4 }
 0x32a   :  { %v2693_v24 = vmul.f32 0.044715, %v2661_v58  ;;  %v2858_v33 = vmul.f32 0.5, %v2826_v10  ;;  %v4182_v62 = vpop.eup %4181  ;;  %v6537_v26 = vunpack.c.l.b16 %v2909_v41  ;;  %v2912_v6 = vpack.c.bf16 %v2880_v5, %v2880_v5 }
 0x32b   :  { %v2889_v8 = vmul.f32 %v2857_v35, %v6441_v20  ;;  %v2756_v46 = vmul.f32 0.7978846, %v2724_v4  ;;  %v3078_v48 = vsel %vm3006_vm15, %v3077_v61, %v3076_v22  ;;  %v6544_v52 = vunpack.c.l.b16 %v2910_v0 }
 0x32c   :  { %v2725_v39 = vadd.f32 %v2693_v24, %v6508_v11  ;;  %v2890_v29 = vmul.f32 %v2858_v33, %v6443_v15  ;;  %v4184_v20 = vpop.eup %4183  ;;  %v3079_v15 = vrot.slane %v6522_v43, 3  ;;  %v2851_v40 = vmul.f32 0.5, %v2819_v27 }
 0x32d   :  { %v2921_v19 = vpack.c.bf16 %v2889_v8, %v2889_v8  ;;  %4187 = vtanh.f32 %v2756_v46  ;;  %v4186_v16 = vpop.eup %4185  ;;  %v3081_v58 = vrot.slane %v6534_v21, 2  ;;  %v3085_v31 = vrot.slane %v6503_v54, 7 }
 0x32e   :  { %v2757_v42 = vmul.f32 0.7978846, %v2725_v39  ;;  %v2922_v32 = vpack.c.bf16 %v2890_v29, %v2890_v29  ;;  %v2823_v41 = vadd.f32 1.0, %v4180_v50  ;;  %v3080_v38 = vsel %vm3009_vm0, %v3079_v15, %v3078_v48 }
 0x32f   :  { %v2985_v45 = vunpack.c.l.b16 %v2921_v19  ;;  %v3089_v28 = vrot.slane %v6537_v26, 5  ;;  %v3082_v4 = vsel %vm3012_vm1, %v3081_v58, %v3080_v38  ;;  %v6551_v24 = vunpack.c.l.b16 %v2912_v6 }
 0x330   :  { %4189 = vtanh.f32 %v2757_v42  ;;  %v2986_v36 = vunpack.c.l.b16 %v2922_v32  ;;  %v2827_v0 = vadd.f32 1.0, %v4182_v62  ;;  %v2822_v33 = vadd.f32 1.0, %v4184_v20  ;;  %v4238_v32 = vld [vmem:[%s6821_s1 + $0x17] sm:$0x1] }
 0x331   :  { %v3111_v10 = vrot.slane %v2985_v45, 1  ;;  %v3125_v22 = vpack.c.b16 %v3082_v4, %v3082_v4  ;;  %v2883_v8 = vmul.f32 %v2851_v40, %v6447_v55  ;;  %v2828_v46 = vadd.f32 1.0, %v4186_v16  ;;  %v1838_v42 = vpop.permute.xlu1 %1837 }
 0x332   :  { %v3042_v35 = vrot.slane %v2986_v36, 7  ;;  %v3086_v29 = vsel %vm2997_vm12, %v3085_v31, %v6431_v49  ;;  %v3091_v62 = vrot.slane %v6544_v52, 4  ;;  %v3093_v61 = vrot.slane %v6484_v17, 3 }
 0x333   :  { %v4188_v7 = vpop.eup %4187  ;;  %v6554_v5 = vsel %vm2994_vm11, %v2986_v36, %v3111_v10  ;;  %3129 = vrot.lane.b32.xlu0 %v3125_v22, %s4246_s24  ;;  %v3095_v19 = vrot.slane %v6551_v24, 2  ;;  %v3088_v6 = vsel %vm3000_vm13, %v3087_v2, %v3086_v29  ;;  %v1639_v48 = vunpack.c.l.bf16 %v4238_v32 }
 0x334   :  { %v6558_v50 = vsel %vm2994_vm11, %v3042_v35, %v2985_v45  ;;  %v2820_v39 = vadd.f32 1.0, %v4188_v7  ;;  %v2855_v45 = vmul.f32 0.5, %v2823_v41  ;;  %v2854_v49 = vmul.f32 0.5, %v2822_v33 }
 0x335   :  { %v3090_v15 = vsel %vm3003_vm14, %v3089_v28, %v3088_v6  ;;  %v2998_v16 = vsel %vm2997_vm12, %v2996_v60, %v6245_v14  ;;  %v1895_v2 = vmul.f32 %v1838_v42, %v1639_v48  ;;  %v2859_v31 = vmul.f32 0.5, %v2827_v0 }
 0x336   :  { %v4190_v27 = vpop.eup %4189  ;;  %v2852_v55 = vmul.f32 0.5, %v2820_v39  ;;  %v3092_v58 = vsel %vm3006_vm15, %v3091_v62, %v3090_v15  ;;  %v2860_v10 = vmul.f32 0.5, %v2828_v46  ;;  %v6993_v41 = vrot.slane %v6353_v59, 5 }
 0x337   :  { %v2821_v20 = vadd.f32 1.0, %v4190_v27  ;;  %v3094_v38 = vsel %vm3009_vm0, %v3093_v61, %v3092_v58  ;;  %v2915_v28 = vpack.c.bf16 %v2883_v8, %v2883_v8  ;;  %v6586_v14 = vadd.f32 %v6348_v12, %v1895_v2 }
 0x338   :  { %v2884_v40 = vmul.f32 %v2852_v55, %v6498_v3  ;;  %v3001_v35 = vsel %vm3000_vm13, %v6993_v41, %v2998_v16  ;;  %v3096_v63 = vsel %vm3012_vm1, %v3095_v19, %v3094_v38  ;;  %v2886_v60 = vmul.f32 %v2854_v49, %v6428_v57 }
 0x339   :  { %v2853_v36 = vmul.f32 0.5, %v2821_v20  ;;  %v3126_v7 = vpack.c.b16 %v3096_v63, %v3096_v63  ;;  %v3004_v0 = vsel %vm3003_vm14, %v3002_v13, %v3001_v35  ;;  %v2887_v59 = vmul.f32 %v2855_v45, %v6401_v51  ;;  %v1870_v63 = vpop.permute.xlu2 %1869 }
 0x33a   :  { %v2916_v3 = vpack.c.bf16 %v2884_v40, %v2884_v40  ;;  %v2632_v22 = vmul.f32 %v6586_v14, %v6586_v14  ;;  %v2891_v12 = vmul.f32 %v2859_v31, %v6406_v44  ;;  %v2892_v57 = vmul.f32 %v2860_v10, %v6435_v25 }
 0x33b   :  { %v2885_v4 = vmul.f32 %v2853_v36, %v6508_v11  ;;  %v6994_v11 = vrot.slane %v6357_v9, 3  ;;  %3131 = vrot.lane.b32.xlu1 %v3126_v7, %s4246_s24  ;;  %v6601_v46 = vunpack.c.l.b16 %v2915_v28  ;;  %v2918_v13 = vpack.c.bf16 %v2886_v60, %v2886_v60  ;;  %v1866_v28 = vpop.permute.xlu0 %1865 }
 0x33c   :  { %v2664_v53 = vmul.f32 %v2632_v22, %v6586_v14  ;;  %v6604_v51 = vunpack.c.l.b16 %v2916_v3  ;;  %v2919_v39 = vpack.c.bf16 %v2887_v59, %v2887_v59  ;;  %v2923_v9 = vpack.c.bf16 %v2891_v12, %v2891_v12 }
 0x33d   :  { %v2917_v33 = vpack.c.bf16 %v2885_v4, %v2885_v4  ;;  %v3007_v8 = vsel %vm3006_vm15, %v6994_v11, %v3004_v0  ;;  %v2924_v62 = vpack.c.bf16 %v2892_v57, %v2892_v57  ;;  %v3016_v61 = vrot.slane %v6503_v54, 6 }
 0x33e   :  { %v2696_v29 = vmul.f32 0.044715, %v2664_v53  ;;  %v3099_v44 = vrot.slane %v6601_v46, 7  ;;  %v3018_v19 = vrot.slane %v6355_v34, 5  ;;  %v6612_v42 = vunpack.c.l.b16 %v2918_v13  ;;  %v4239_v34 = vld [vmem:[%s6821_s1 + $0x1e] sm:$0x1] }
 0x33f   :  { %v6606_v27 = vunpack.c.l.b16 %v2917_v33  ;;  %v3101_v55 = vrot.slane %v6604_v51, 6  ;;  %v3020_v20 = vrot.slane %v6537_v26, 4  ;;  %v6616_v6 = vunpack.c.l.b16 %v2919_v39 }
 0x340   :  { %v2728_v25 = vadd.f32 %v2696_v29, %v6586_v14  ;;  %v3022_v45 = vrot.slane %v6544_v52, 3  ;;  %v6620_v54 = vunpack.c.l.b16 %v2923_v9  ;;  %v6622_v49 = vunpack.c.l.b16 %v2924_v62 }
 0x341   :  { %v3103_v32 = vrot.slane %v6606_v27, 5  ;;  %v1646_v15 = vunpack.c.l.bf16 %v4239_v34  ;;  %v3100_v26 = vsel %vm2997_vm12, %v3099_v44, %v6469_v1  ;;  %v3017_v16 = vsel %vm2997_vm12, %v3016_v61, %v6438_v30  ;;  %v4240_v30 = vld [vmem:[%s6821_s1 + $0x1f] sm:$0x1] }
 0x342   :  { %v2760_v48 = vmul.f32 0.7978846, %v2728_v25  ;;  %v3102_v40 = vsel %vm3000_vm13, %v3101_v55, %v3100_v26  ;;  %v3105_v52 = vrot.slane %v6612_v42, 4  ;;  %v3008_v36 = vrot.slane %v6522_v43, 2 }
 0x343   :  { %v3019_v58 = vsel %vm3000_vm13, %v3018_v19, %v3017_v16  ;;  %v3104_v10 = vsel %vm3003_vm14, %v3103_v32, %v3102_v40  ;;  %v3107_v38 = vrot.slane %v6616_v6, 3  ;;  %v3024_v41 = vrot.slane %v6484_v17, 2 }
 0x344   :  { %4191 = vtanh.f32 %v2760_v48  ;;  %v3021_v1 = vsel %vm3003_vm14, %v3020_v20, %v3019_v58  ;;  %v1647_v35 = vunpack.c.l.bf16 %v4240_v30  ;;  %v3106_v43 = vsel %vm3006_vm15, %v3105_v52, %v3104_v10 }
 0x345   :  { %v3023_v4 = vsel %vm3006_vm15, %v3022_v45, %v3021_v1  ;;  %v3108_v60 = vsel %vm3009_vm0, %v3107_v38, %v3106_v43  ;;  %v3011_v3 = vrot.slane %v6534_v21, 1  ;;  %v3113_v17 = vrot.slane %v6620_v54, 7 }
 0x346   :  { %v3025_v7 = vsel %vm3009_vm0, %v3024_v41, %v3023_v4  ;;  %v3010_v0 = vsel %vm3009_vm0, %v3008_v36, %v3007_v8  ;;  %v3115_v33 = vrot.slane %v6622_v49, 6  ;;  %v1902_v22 = vmul.f32 %v1866_v28, %v1646_v15 }
 0x347   :  { %v3013_v11 = vsel %vm3012_vm1, %v3011_v3, %v3010_v0  ;;  %v1903_v12 = vmul.f32 %v1870_v63, %v1647_v35  ;;  %v3114_v53 = vsel %vm2997_vm12, %v3113_v17, %v6554_v5  ;;  %v3026_v44 = vrot.slane %v6551_v24, 1 }
 0x348   :  { %v6656_v21 = vsel %vm3000_vm13, %v3115_v33, %v3114_v53  ;;  %v3056_v39 = vpack.c.b16 %v3013_v11, %v3013_v11  ;;  %v3044_v34 = vrot.slane %v6620_v54, 6  ;;  %v3046_v26 = vrot.slane %v6622_v49, 5 }
 0x349   :  { %v2583_v2 = vpop.f32.mrf.mxu2  ;;  %v2605_v31 = vpop.f32.mrf.mxu3  ;;  %v3027_v55 = vsel %vm3012_vm1, %v3026_v44, %v3025_v7  ;;  %v1644_v54 = vunpack.c.l.bf16 %v6260_v47  ;;  %v3034_v4 = vrot.slane %v6606_v27, 4  ;;  %v3038_v17 = vrot.slane %v6616_v6, 2 }
 0x34a   :  { %v4192_v59 = vpop.eup %4191  ;;  %v6653_v13 = vadd.f32 %v2583_v2, %v1902_v22  ;;  %v6658_v8 = vadd.f32 %v2605_v31, %v1903_v12  ;;  %3065 = vst.msk [vmem:[#allocation4] sm:$0xf] %vm3064_vm2, %v3056_v39  ;;  %v3057_v20 = vpack.c.b16 %v3027_v55, %v3027_v55  ;;  %v3045_v58 = vsel %vm2997_vm12, %v3044_v34, %v6558_v50 }
 0x34b   :  { %v2824_v57 = vadd.f32 1.0, %v4192_v59  ;;  %v1645_v2 = vunpack.c.l.bf16 %v6265_v18  ;;  %v3032_v31 = vrot.slane %v6604_v51, 5 }
 0x34c   :  { %v2639_v5 = vmul.f32 %v6653_v13, %v6653_v13  ;;  %v2640_v19 = vmul.f32 %v6658_v8, %v6658_v8  ;;  %3066 = vst.msk [vmem:[#allocation4 + $0x4] sm:$0xf] %vm3064_vm2, %v3057_v20 }
 0x34d   :  { %v2856_v29 = vmul.f32 0.5, %v2824_v57  ;;  %v1901_v38 = vmul.f32 %v6531_v23, %v1645_v2 }
 0x34e   :  { %v2671_v48 = vmul.f32 %v2639_v5, %v6653_v13  ;;  %v2672_v24 = vmul.f32 %v2640_v19, %v6658_v8 }
 0x34f   :  { %v2888_v61 = vmul.f32 %v2856_v29, %v6586_v14  ;;  %v3030_v14 = vrot.slane %v6601_v46, 6  ;;  %v6684_v46 = vsel %vm3000_vm13, %v3046_v26, %v3045_v58 }
 0x350   :  { %v2703_v16 = vmul.f32 0.044715, %v2671_v48  ;;  %v2704_v52 = vmul.f32 0.044715, %v2672_v24 }
 0x351   :  { %v2585_v9 = vpop.f32.mrf.mxu2  ;;  %v2607_v62 = vpop.f32.mrf.mxu3  ;;  %v2920_v25 = vpack.c.bf16 %v2888_v61, %v2888_v61  ;;  %v3031_v36 = vsel %vm2997_vm12, %v3030_v14, %v6473_v56  ;;  %v1900_v56 = vmul.f32 %v6338_v37, %v1644_v54  ;;  %v3036_v37 = vrot.slane %v6612_v42, 3 }
 0x352   :  { %v2735_v49 = vadd.f32 %v2703_v16, %v6653_v13  ;;  %v2736_v10 = vadd.f32 %v2704_v52, %v6658_v8  ;;  %v3033_v35 = vsel %vm3000_vm13, %v3032_v31, %v3031_v36 }
 0x353   :  { %v6668_v32 = vunpack.c.l.b16 %v2920_v25  ;;  %v3035_v0 = vsel %vm3003_vm14, %v3034_v4, %v3033_v35 }
 0x354   :  { %v2767_v50 = vmul.f32 0.7978846, %v2735_v49  ;;  %v2768_v41 = vmul.f32 0.7978846, %v2736_v10  ;;  %v3037_v11 = vsel %vm3006_vm15, %v3036_v37, %v3035_v0  ;;  %v3590_v37 = vld [vmem:[%s6823_s5] sm:$0xff] }
 0x355   :  { %v3109_v45 = vrot.slane %v6668_v32, 2  ;;  %v3039_v27 = vsel %vm3009_vm0, %v3038_v17, %v3037_v11  ;;  %v3040_v55 = vrot.slane %v6668_v32, 1 }
 0x356   :  { %4193 = vtanh.f32 %v2767_v50 }
 0x357   :  { %v3110_v15 = vsel %vm3012_vm1, %v3109_v45, %v3108_v60  ;;  %4195 = vtanh.f32 %v2768_v41  ;;  %v3041_v24 = vsel %vm3012_vm1, %v3040_v55, %v3039_v27 }
 0x358   :  { %v3127_v40 = vpack.c.b16 %v3110_v15, %v3110_v15  ;;  %v3058_v15 = vpack.c.b16 %v3041_v24, %v3041_v24 }
 0x35a   :  { %3133 = vrot.lane.b32.xlu2 %v3127_v40, %s4246_s24  ;;  %3067 = vst.msk [vmem:[#allocation4 + $0x8] sm:$0xf] %vm3064_vm2, %v3058_v15 }
 0x35c   :  { %v4194_v59 = vpop.eup %4193 }
 0x35d   :  { %v4196_v12 = vpop.eup %4195  ;;  %v2831_v39 = vadd.f32 1.0, %v4194_v59 }
 0x35e   :  { %v2832_v42 = vadd.f32 1.0, %v4196_v12 }
 0x35f   :  { %v2863_v29 = vmul.f32 0.5, %v2831_v39  ;;  %v4134_v39 = vld [vmem:[%s6826_s7] ss:$0 sm:$0xff] }
 0x360   :  { %v2864_v9 = vmul.f32 0.5, %v2832_v42 }
 0x361   :  { %v2895_v61 = vmul.f32 %v2863_v29, %v6653_v13 }
 0x362   :  { %v2896_v5 = vmul.f32 %v2864_v9, %v6658_v8 }
 0x363   :  { %v2927_v48 = vpack.c.bf16 %v2895_v61, %v2895_v61 }
 0x364   :  { %v2539_v1 = vpop.f32.mrf.mxu0  ;;  %v2561_v30 = vpop.f32.mrf.mxu1  ;;  %v2928_v45 = vpack.c.bf16 %v2896_v5, %v2896_v5 }
 0x365   :  { %v2540_v28 = vadd.f32 %v2539_v1, %v1900_v56  ;;  %v2562_v47 = vadd.f32 %v2561_v30, %v1901_v38  ;;  %v2991_v13 = vunpack.c.l.b16 %v2927_v48 }
 0x366   :  { %v2992_v52 = vunpack.c.l.b16 %v2928_v45 }
 0x367   :  { %v2637_v18 = vmul.f32 %v2540_v28, %v2540_v28  ;;  %v2638_v43 = vmul.f32 %v2562_v47, %v2562_v47  ;;  %v3121_v54 = vrot.slane %v2991_v13, 3  ;;  %v3052_v41 = vrot.slane %v2991_v13, 2 }
 0x368   :  { %v3123_v49 = vrot.slane %v2992_v52, 2 }
 0x369   :  { %v2669_v51 = vmul.f32 %v2637_v18, %v2540_v28  ;;  %v2670_v63 = vmul.f32 %v2638_v43, %v2562_v47 }
 0x36b   :  { %v2701_v60 = vmul.f32 0.044715, %v2669_v51  ;;  %v2702_v23 = vmul.f32 0.044715, %v2670_v63  ;;  %v3589_v63 = vld [vmem:[%s6824_s4 + $0x8] sm:$0xff] }
 0x36c   :  { %v2541_v3 = vpop.f32.mrf.mxu0  ;;  %v2563_v7 = vpop.f32.mrf.mxu1  ;;  %3211 = vmatpush.bf16.msrb.mxu0 %v3589_v63 }
 0x36d   :  { %v2733_v33 = vadd.f32 %v2701_v60, %v2540_v28  ;;  %v2734_v22 = vadd.f32 %v2702_v23, %v2562_v47  ;;  %v3588_v3 = vld [vmem:[%s6824_s4] sm:$0xff]  ;;  %v4247_v7 = vmov 0.0  }
 0x36e   :  { %45 = vst.msk [vmem:[#allocation3] sm:$0xff] %vm40_vm4, %v4247_v7 }
 0x36f   :  { %v2765_v57 = vmul.f32 0.7978846, %v2733_v33  ;;  %v2766_v53 = vmul.f32 0.7978846, %v2734_v22  ;;  %41 = vst.msk [vmem:[#allocation2] sm:$0xff] %vm40_vm4, %v4247_v7 }
 0x370   :  { %3212 = vmatpush.bf16.msrb.mxu0 %v3588_v3  ;;  %42 = vst.msk [vmem:[#allocation2 + $0x8] sm:$0xff] %vm40_vm4, %v4247_v7 }
 0x371   :  { %4197 = vtanh.f32 %v2765_v57  ;;  %43 = vst.msk [vmem:[#allocation2 + $0x10] sm:$0xff] %vm40_vm4, %v4247_v7 }
 0x372   :  { %4199 = vtanh.f32 %v2766_v53  ;;  %44 = vst.msk [vmem:[#allocation2 + $0x18] sm:$0xff] %vm40_vm4, %v4247_v7 }
 0x373   :  { %46 = vst.msk [vmem:[#allocation3 + $0x8] sm:$0xff] %vm40_vm4, %v4247_v7 }
 0x374   :  { %47 = vst.msk [vmem:[#allocation3 + $0x10] sm:$0xff] %vm40_vm4, %v4247_v7 }
 0x375   :  { %48 = vst.msk [vmem:[#allocation3 + $0x18] sm:$0xff] %vm40_vm4, %v4247_v7  ;;  %v3232_v59 = vld [vmem:[#allocation3] sm:$0xff] }
 0x376   :  { %v3150_v33 = vld [vmem:[#allocation2] sm:$0xff] }
 0x377   :  { %v4198_v62 = vpop.eup %4197  ;;  %v3151_v53 = vld [vmem:[#allocation2 + $0x8] sm:$0xff] }
 0x378   :  { %v4200_v6 = vpop.eup %4199  ;;  %v2829_v44 = vadd.f32 1.0, %v4198_v62 }
 0x379   :  { %v2830_v25 = vadd.f32 1.0, %v4200_v6 }
 0x37a   :  { %v2861_v19 = vmul.f32 0.5, %v2829_v44  ;;  %v3233_v57 = vld [vmem:[#allocation3 + $0x8] sm:$0xff] }
 0x37b   :  { %v2862_v20 = vmul.f32 0.5, %v2830_v25  ;;  %v3234_v5 = vld [vmem:[#allocation3 + $0x10] sm:$0xff] }
 0x37c   :  { %v2893_v14 = vmul.f32 %v2861_v19, %v2540_v28  ;;  %v3152_v25 = vld [vmem:[#allocation2 + $0x10] sm:$0xff]  ;;  %v3235_v15 = vld [vmem:[#allocation3 + $0x18] sm:$0xff] }
 0x37d   :  { %v2894_v34 = vmul.f32 %v2862_v20, %v2562_v47 }
 0x37e   :  { %v2925_v26 = vpack.c.bf16 %v2893_v14, %v2893_v14 }
 0x37f   :  { %v2926_v16 = vpack.c.bf16 %v2894_v34, %v2894_v34 }
 0x380   :  { %v2989_v40 = vunpack.c.l.b16 %v2925_v26  ;;  %v3153_v26 = vld [vmem:[#allocation2 + $0x18] sm:$0xff] }
 0x381   :  { %v2990_v8 = vunpack.c.l.b16 %v2926_v16 }
 0x382   :  { %v3117_v36 = vrot.slane %v2989_v40, 5  ;;  %v3048_v38 = vrot.slane %v2989_v40, 4 }
 0x383   :  { %v3119_v58 = vrot.slane %v2990_v8, 4  ;;  %v3050_v50 = vrot.slane %v2990_v8, 3 }
 0x384   :  { %v3118_v32 = vsel %vm3003_vm14, %v3117_v36, %v6656_v21  ;;  %v3049_v1 = vsel %vm3003_vm14, %v3048_v38, %v6684_v46  ;;  %v3054_v21 = vrot.slane %v2992_v52, 1  ;;  %v3591_v46 = vld [vmem:[%s6823_s5 + $0x8] sm:$0xff] }
 0x385   :  { %v3120_v2 = vsel %vm3006_vm15, %v3119_v58, %v3118_v32  ;;  %v3051_v30 = vsel %vm3006_vm15, %v3050_v50, %v3049_v1  ;;  %3258 = vmatpush.bf16.msrb.mxu1 %v3591_v46 }
 0x386   :  { %v3122_v31 = vsel %vm3009_vm0, %v3121_v54, %v3120_v2  ;;  %v3053_v35 = vsel %vm3009_vm0, %v3052_v41, %v3051_v30 }
 0x387   :  { %v3124_v10 = vsel %vm3012_vm1, %v3123_v49, %v3122_v31  ;;  %v3055_v28 = vsel %vm3012_vm1, %v3054_v21, %v3053_v35  ;;  %v3601_v21 = vld [vmem:[%s6827_s0] sm:$0xff]  }
 0x388   :  { %v3128_v56 = vpack.c.b16 %v3124_v10, %v3124_v10  ;;  %v3059_v47 = vpack.c.b16 %v3055_v28, %v3055_v28  ;;  %v3602_v46 = vunpack.c.l.bf16 %v3601_v21 }
 0x389   :  { %3259 = vmatpush.bf16.msrb.mxu1 %v3590_v37 }
 0x38a   :  { %3135 = vrot.lane.b32.xlu0 %v3128_v56, %s4246_s24  ;;  %3068 = vst.msk [vmem:[#allocation4 + $0xc] sm:$0xf] %vm3064_vm2, %v3059_v47  ;;  %v6759_v56 = vld [vmem:[%s6825_s6] ss:$0 sm:$0xff] }
 0x3a5   :  { %v3130_v18 = vpop.permute.xlu0 %3129 }
 0x3a6   :  { %3142 = vst.msk [vmem:[#allocation4] sm:$0xf] %vm3141_vm3, %v3130_v18 }
 0x3ad   :  { %v3132_v43 = vpop.permute.xlu1 %3131 }
 0x3ae   :  { %3143 = vst.msk [vmem:[#allocation4 + $0x4] sm:$0xf] %vm3141_vm3, %v3132_v43 }
 0x3b4   :  { %v3134_v4 = vpop.permute.xlu2 %3133 }
 0x3b5   :  { %v3586_v51 = vld [vmem:[#allocation4] sm:$0xff]  ;;  %3144 = vst.msk [vmem:[#allocation4 + $0x8] sm:$0xf] %vm3141_vm3, %v3134_v4 }
 0x3b6   :  { %3170 = vxpose.xlu1.c.b16.start [1/2] (short) (narrow) %v3586_v51, 32 }
 0x3fc   :  { %v3136_v60 = vpop.permute.xlu0 %3135 }
 0x3fd   :  { %3145 = vst.msk [vmem:[#allocation4 + $0xc] sm:$0xf] %vm3141_vm3, %v3136_v60 }
 0x404   :  { %v3587_v23 = vld [vmem:[#allocation4 + $0x8] sm:$0xff] }
 0x405   :  { %3171 = vxpose.xlu1.c.b16.end [2/2] (short) (narrow) %v3587_v23, 32 }
 0x4a1   :  { %v3178_v17 = vpop.trf.xlu1 }
 0x4a2   :  { %3580 = vmatmul.msk.bf16.vlgmr.msrb.gmra.mxu1 %vm40_vm4, %v3178_v17  ;;  %3570 = vmatmul.msk.bf16.vlgmr.msrb.gmra.mxu0 %vm40_vm4, %v3178_v17 }
 0x4b1   :  { %v3179_v0 = vpop.trf.xlu1 }
 0x4b2   :  { %3581 = vmatmul.msk.bf16.gmra.mxu1 %vm40_vm4, %v3179_v0  ;;  %3571 = vmatmul.msk.bf16.gmra.mxu0 %vm40_vm4, %v3179_v0 }
 0x51f   :  { %v3261_v22 = vpop.f32.mrf.mxu1  ;;  %v3214_v11 = vpop.f32.mrf.mxu0 }
 0x520   :  { %v3271_v12 = vadd.f32 %v3261_v22, %v3232_v59  ;;  %v3224_v27 = vadd.f32 %v3214_v11, %v3150_v33 }
 0x522   :  { %3275 = vst.msk [vmem:[#allocation3] sm:$0xff] %vm40_vm4, %v3271_v12 }
 0x523   :  { %3228 = vst.msk [vmem:[#allocation2] sm:$0xff] %vm40_vm4, %v3224_v27 }
 0x527   :  { %v3263_v42 = vpop.f32.mrf.mxu1  ;;  %v3216_v29 = vpop.f32.mrf.mxu0 }
 0x528   :  { %v3272_v9 = vadd.f32 %v3263_v42, %v3233_v57  ;;  %v3225_v62 = vadd.f32 %v3216_v29, %v3151_v53 }
 0x529   :  { %v3294_v6 = vld [vmem:[#allocation3] sm:$0xff] }
 0x52a   :  { %3276 = vst.msk [vmem:[#allocation3 + $0x8] sm:$0xff] %vm40_vm4, %v3272_v9  ;;  %v3302_v61 = vadd.f32 %v4134_v39, %v3294_v6  ;;  %v3282_v41 = vld [vmem:[#allocation2] sm:$0xff] }
 0x52b   :  { %3229 = vst.msk [vmem:[#allocation2 + $0x8] sm:$0xff] %vm40_vm4, %v3225_v62  ;;  %v3290_v4 = vadd.f32 %v6759_v56, %v3282_v41 }
 0x52c   :  { %v3582_v44 = vmul.f32 -1.442695, %v3302_v61 }
 0x52e   :  { %4201 = vpow2.f32 %v3582_v44 }
 0x52f   :  { %v3266_v19 = vpop.f32.mrf.mxu1  ;;  %v3219_v55 = vpop.f32.mrf.mxu0 }
 0x530   :  { %v3273_v20 = vadd.f32 %v3266_v19, %v3234_v5  ;;  %v3226_v48 = vadd.f32 %v3219_v55, %v3152_v25 }
 0x531   :  { %v3295_v14 = vld [vmem:[#allocation3 + $0x8] sm:$0xff] }
 0x532   :  { %3277 = vst.msk [vmem:[#allocation3 + $0x10] sm:$0xff] %vm40_vm4, %v3273_v20  ;;  %v3303_v24 = vadd.f32 %v4134_v39, %v3295_v14  ;;  %v3283_v22 = vld [vmem:[#allocation2 + $0x8] sm:$0xff] }
 0x533   :  { %3230 = vst.msk [vmem:[#allocation2 + $0x10] sm:$0xff] %vm40_vm4, %v3226_v48  ;;  %v3291_v29 = vadd.f32 %v6759_v56, %v3283_v22  ;;  %v3609_v20 = vld [vmem:[%s6827_s0 + $0x8] sm:$0xff]  }
 0x534   :  { %v4202_v45 = vpop.eup %4201  ;;  %v3583_v34 = vmul.f32 -1.442695, %v3303_v24  ;;  %v3607_v41 = vunpack.c.h.bf16 %v3609_v20 }
 0x535   :  { %v3318_v16 = vadd.f32 1.0, %v4202_v45 }
 0x536   :  { %4203 = vpow2.f32 %v3583_v34 }
 0x537   :  { %v3268_v13 = vpop.f32.mrf.mxu1  ;;  %v3221_v40 = vpop.f32.mrf.mxu0  ;;  %4205 = vrcp.f32 %v3318_v16  ;;  %v3333_v38 = vand.u32 2147483648, %v3318_v16  ;;  %v3331_v30 = vand.u32 2147483647, %v3318_v16  ;;  %vm3327_vm6 = vweird.f32 %v3318_v16 }
 0x538   :  { %v3274_v52 = vadd.f32 %v3268_v13, %v3235_v15  ;;  %v3227_v8 = vadd.f32 %v3221_v40, %v3153_v26  ;;  %v3606_v15 = vunpack.c.l.bf16 %v3609_v20 }
 0x539   :  { %v3296_v36 = vld [vmem:[#allocation3 + $0x10] sm:$0xff]  ;;  %v3334_v51 = vor.u32 1.1754944e-38, %v3333_v38  ;;  %vm3332_vm8 = vcmp.eq.f32.partialorder %v3331_v30, 8.507059e+37 }
 0x53a   :  { %3278 = vst.msk [vmem:[#allocation3 + $0x18] sm:$0xff] %vm40_vm4, %v3274_v52  ;;  %v3304_v58 = vadd.f32 %v4134_v39, %v3296_v36  ;;  %v3284_v48 = vld [vmem:[#allocation2 + $0x10] sm:$0xff] }
 0x53b   :  { %3231 = vst.msk [vmem:[#allocation2 + $0x18] sm:$0xff] %vm40_vm4, %v3227_v8  ;;  %v3292_v26 = vadd.f32 %v6759_v56, %v3284_v48 }
 0x53c   :  { %v4204_v32 = vpop.eup %4203  ;;  %v3584_v54 = vmul.f32 -1.442695, %v3304_v58 }
 0x53d   :  { %v4206_v2 = vpop.eup %4205  ;;  %v3319_v49 = vadd.f32 1.0, %v4204_v32 }
 0x53e   :  { %v3323_v31 = vmul.f32 %v4206_v2, %v3318_v16  ;;  %4207 = vpow2.f32 %v3584_v54  ;;  %vm3328_vm5 = vweird.f32 %v4206_v2 }
 0x53f   :  { %4209 = vrcp.f32 %v3319_v49  ;;  %vm3329_vm7 = vmor %vm3327_vm6, %vm3328_vm5  ;;  %v3348_v17 = vand.u32 2147483648, %v3319_v49  ;;  %v3346_v33 = vand.u32 2147483647, %v3319_v49  ;;  %vm3342_vm10 = vweird.f32 %v3319_v49 }
 0x540   :  { %v3324_v10 = vsub.f32 1.0, %v3323_v31 }
 0x541   :  { %v3297_v50 = vld [vmem:[#allocation3 + $0x18] sm:$0xff]  ;;  %v3349_v53 = vor.u32 1.1754944e-38, %v3348_v17  ;;  %vm3347_vm12 = vcmp.eq.f32.partialorder %v3346_v33, 8.507059e+37 }
 0x542   :  { %v3325_v1 = vmul.f32 %v4206_v2, %v3324_v10  ;;  %v3305_v35 = vadd.f32 %v4134_v39, %v3297_v50  ;;  %v3603_v39 = vunpack.c.h.bf16 %v3601_v21 }
 0x544   :  { %v4208_v28 = vpop.eup %4207  ;;  %v3326_v47 = vadd.f32 %v4206_v2, %v3325_v1  ;;  %v3585_v18 = vmul.f32 -1.442695, %v3305_v35 }
 0x545   :  { %v4210_v43 = vpop.eup %4209  ;;  %v3320_v63 = vadd.f32 1.0, %v4208_v28  ;;  %v4248_v28 = vmov 32.0  }
 0x546   :  { %v3330_v37 = vsel %vm3329_vm7, %v4206_v2, %v3326_v47  ;;  %v3338_v60 = vmul.f32 %v4210_v43, %v3319_v49  ;;  %4211 = vpow2.f32 %v3585_v18  ;;  %vm3343_vm9 = vweird.f32 %v4210_v43  ;;  %v3285_v2 = vld [vmem:[#allocation2 + $0x18] sm:$0xff] }
 0x547   :  { %v3335_v23 = vsel %vm3332_vm8, %v3334_v51, %v3330_v37  ;;  %4213 = vrcp.f32 %v3320_v63  ;;  %vm3344_vm11 = vmor %vm3342_vm10, %vm3343_vm9  ;;  %v3363_v5 = vand.u32 2147483648, %v3320_v63  ;;  %v3361_v55 = vand.u32 2147483647, %v3320_v63 }
 0x548   :  { %v3382_v3 = vmul.f32 %v3335_v23, %v3290_v4  ;;  %v3339_v7 = vsub.f32 1.0, %v3338_v60  ;;  %vm3357_vm14 = vweird.f32 %v3320_v63  ;;  %v3293_v38 = vadd.f32 %v6759_v56, %v3285_v2 }
 0x549   :  { %v3364_v34 = vor.u32 1.1754944e-38, %v3363_v5  ;;  %vm3362_vm0 = vcmp.eq.f32.partialorder %v3361_v55, 8.507059e+37  ;;  %vm3513_vm10 = vcmask 257024  }
 0x54a   :  { %v6765_v0 = vadd.f32 %v3602_v46, %v3382_v3  ;;  %v3340_v59 = vmul.f32 %v4210_v43, %v3339_v7 }
 0x54c   :  { %v4212_v11 = vpop.eup %4211  ;;  %v3398_v12 = vsel %vm40_vm4, %v6765_v0, 0.0  ;;  %v3341_v27 = vadd.f32 %v4210_v43, %v3340_v59 }
 0x54d   :  { %v4214_v57 = vpop.eup %4213  ;;  %3399 = vadd.xlane.f32.xlu2 %v3398_v12  ;;  %v3321_v42 = vadd.f32 1.0, %v4212_v11 }
 0x54e   :  { %v3345_v9 = vsel %vm3344_vm11, %v4210_v43, %v3341_v27  ;;  %v3353_v62 = vmul.f32 %v4214_v57, %v3320_v63  ;;  %vm3358_vm13 = vweird.f32 %v4214_v57 }
 0x54f   :  { %v3350_v6 = vsel %vm3347_vm12, %v3349_v53, %v3345_v9  ;;  %4215 = vrcp.f32 %v3321_v42  ;;  %vm3359_vm15 = vmor %vm3357_vm14, %vm3358_vm13  ;;  %v3378_v36 = vand.u32 2147483648, %v3321_v42  ;;  %v3376_v54 = vand.u32 2147483647, %v3321_v42 }
 0x550   :  { %v3383_v61 = vmul.f32 %v3350_v6, %v3291_v29  ;;  %v3354_v44 = vsub.f32 1.0, %v3353_v62  ;;  %vm3372_vm2 = vweird.f32 %v3321_v42  ;;  %4217 = vrcp.f32 %v4248_v28 }
 0x551   :  { %v3379_v10 = vor.u32 1.1754944e-38, %v3378_v36  ;;  %vm3377_vm5 = vcmp.eq.f32.partialorder %v3376_v54, 8.507059e+37 }
 0x552   :  { %v3395_v25 = vadd.f32 %v3603_v39, %v3383_v61  ;;  %v3355_v19 = vmul.f32 %v4214_v57, %v3354_v44 }
 0x554   :  { %v3401_v14 = vsel %vm40_vm4, %v3395_v25, 0.0  ;;  %v3356_v24 = vadd.f32 %v4214_v57, %v3355_v19 }
 0x555   :  { %v4216_v45 = vpop.eup %4215  ;;  %3402 = vadd.xlane.f32.xlu0 %v3401_v14 }
 0x556   :  { %v3360_v16 = vsel %vm3359_vm15, %v4214_v57, %v3356_v24  ;;  %v3368_v13 = vmul.f32 %v4216_v45, %v3321_v42  ;;  %vm3373_vm1 = vweird.f32 %v4216_v45  ;;  %v4218_v47 = vpop.eup %4217 }
 0x557   :  { %v3365_v40 = vsel %vm3362_vm0, %v3364_v34, %v3360_v16  ;;  %vm3374_vm3 = vmor %vm3372_vm2, %vm3373_vm1  ;;  %v3411_v18 = vmul.f32 32.0, %v4218_v47  ;;  %vm3415_vm6 = vweird.f32 %v4218_v47  ;;  %v4135_v16 = vld [vmem:[%s6828_s8] ss:$0 sm:$0xff] }
 0x558   :  { %v3384_v52 = vmul.f32 %v3365_v40, %v3292_v26  ;;  %v3369_v8 = vsub.f32 1.0, %v3368_v13 }
 0x559   :  { %v3412_v43 = vsub.f32 1.0, %v3411_v18 }
 0x55a   :  { %v3396_v58 = vadd.f32 %v3606_v15, %v3384_v52  ;;  %v3370_v32 = vmul.f32 %v4216_v45, %v3369_v8  ;;  %v4136_v52 = vld [vmem:[%s6829_s9] ss:$0 sm:$0xff] }
 0x55b   :  { %v3413_v4 = vmul.f32 %v4218_v47, %v3412_v43 }
 0x55c   :  { %v3404_v49 = vsel %vm40_vm4, %v3396_v58, 0.0  ;;  %v3371_v31 = vadd.f32 %v4216_v45, %v3370_v32 }
 0x55d   :  { %3405 = vadd.xlane.f32.xlu2 %v3404_v49  ;;  %v3414_v51 = vadd.f32 %v4218_v47, %v3413_v4 }
 0x55e   :  { %v3375_v50 = vsel %vm3374_vm3, %v4216_v45, %v3371_v31 }
 0x55f   :  { %v3380_v1 = vsel %vm3377_vm5, %v3379_v10, %v3375_v50  ;;  %v3416_v46 = vsel %vm3415_vm6, %v4218_v47, %v3414_v51 }
 0x560   :  { %v3385_v30 = vmul.f32 %v3380_v1, %v3293_v38 }
 0x562   :  { %v3397_v21 = vadd.f32 %v3607_v41, %v3385_v30 }
 0x564   :  { %v3407_v35 = vsel %vm40_vm4, %v3397_v21, 0.0 }
 0x565   :  { %3408 = vadd.xlane.f32.xlu2 %v3407_v35 }
 0x5c0   :  { %v3400_v63 = vpop.xlane.xlu2 %3399 }
 0x5c1   :  { %v3417_v56 = vmul.f32 %v3416_v46, %v3400_v63 }
 0x5c3   :  { %v3421_v37 = vsub.f32 %v6765_v0, %v3417_v56 }
 0x5c5   :  { %v3425_v60 = vmul.f32 %v3421_v37, %v3421_v37 }
 0x5c7   :  { %v3429_v23 = vsel %vm40_vm4, %v3425_v60, 0.0 }
 0x5c8   :  { %v3403_v3 = vpop.xlane.xlu0 %3402  ;;  %3430 = vadd.xlane.f32.xlu0 %v3429_v23 }
 0x5c9   :  { %v3418_v7 = vmul.f32 %v3416_v46, %v3403_v3 }
 0x5cb   :  { %v6780_v17 = vsub.f32 %v3395_v25, %v3418_v7 }
 0x5cd   :  { %v3426_v59 = vmul.f32 %v6780_v17, %v6780_v17 }
 0x5cf   :  { %v3432_v33 = vsel %vm40_vm4, %v3426_v59, 0.0 }
 0x5d0   :  { %3433 = vadd.xlane.f32.xlu2 %v3432_v33  ;;  %v3406_v22 = vpop.xlane.xlu2 %3405 }
 0x5d1   :  { %v3419_v11 = vmul.f32 %v3416_v46, %v3406_v22 }
 0x5d3   :  { %v6785_v12 = vsub.f32 %v3396_v58, %v3419_v11 }
 0x5d5   :  { %v3427_v0 = vmul.f32 %v6785_v12, %v6785_v12 }
 0x5d7   :  { %v3435_v27 = vsel %vm40_vm4, %v3427_v0, 0.0 }
 0x5d8   :  { %3436 = vadd.xlane.f32.xlu0 %v3435_v27  ;;  %v3409_v57 = vpop.xlane.xlu2 %3408 }
 0x5d9   :  { %v3420_v53 = vmul.f32 %v3416_v46, %v3409_v57 }
 0x5db   :  { %v6790_v39 = vsub.f32 %v3397_v21, %v3420_v53 }
 0x5dd   :  { %v3428_v42 = vmul.f32 %v6790_v39, %v6790_v39 }
 0x5df   :  { %v3438_v29 = vsel %vm40_vm4, %v3428_v42, 0.0 }
 0x5e0   :  { %3439 = vadd.xlane.f32.xlu2 %v3438_v29 }
 0x63b   :  { %v3431_v9 = vpop.xlane.xlu0 %3430 }
 0x63c   :  { %v3441_v62 = vmul.f32 %v3431_v9, %v3416_v46 }
 0x63e   :  { %v3445_v6 = vadd.f32 1e-05, %v3441_v62 }
 0x640   :  { %4219 = vrsqrt.f32 %v3445_v6  ;;  %vm3455_vm4 = vweird.f32 %v3445_v6 }
 0x643   :  { %v3434_v61 = vpop.xlane.xlu2 %3433 }
 0x644   :  { %v3442_v44 = vmul.f32 %v3434_v61, %v3416_v46 }
 0x646   :  { %v4220_v5 = vpop.eup %4219  ;;  %v3446_v25 = vadd.f32 1e-05, %v3442_v44 }
 0x647   :  { %v3450_v19 = vmul.f32 %v4220_v5, %v3445_v6  ;;  %vm3456_vm7 = vweird.f32 %v4220_v5 }
 0x648   :  { %4221 = vrsqrt.f32 %v3446_v25  ;;  %vm3457_vm8 = vmor %vm3455_vm4, %vm3456_vm7  ;;  %vm3465_vm11 = vweird.f32 %v3446_v25 }
 0x649   :  { %v3451_v55 = vmul.f32 %v4220_v5, %v3450_v19 }
 0x64b   :  { %v3452_v20 = vmul.f32 0.5, %v3451_v55  ;;  %v3437_v48 = vpop.xlane.xlu0 %3436 }
 0x64c   :  { %v3443_v14 = vmul.f32 %v3437_v48, %v3416_v46 }
 0x64d   :  { %v3453_v24 = vsub.f32 1.5, %v3452_v20 }
 0x64e   :  { %v4222_v45 = vpop.eup %4221  ;;  %v3447_v34 = vadd.f32 1e-05, %v3443_v14 }
 0x64f   :  { %v3454_v15 = vmul.f32 %v4220_v5, %v3453_v24  ;;  %v3460_v26 = vmul.f32 %v4222_v45, %v3446_v25  ;;  %vm3466_vm9 = vweird.f32 %v4222_v45 }
 0x650   :  { %4223 = vrsqrt.f32 %v3447_v34  ;;  %vm3467_vm12 = vmor %vm3465_vm11, %vm3466_vm9  ;;  %vm3475_vm14 = vweird.f32 %v3447_v34 }
 0x651   :  { %v3458_v13 = vsel %vm3457_vm8, %v4220_v5, %v3454_v15  ;;  %v3461_v40 = vmul.f32 %v4222_v45, %v3460_v26 }
 0x652   :  { %v3489_v8 = vmul.f32 %v3458_v13, %v3421_v37 }
 0x653   :  { %v3462_v36 = vmul.f32 0.5, %v3461_v40  ;;  %v3440_v58 = vpop.xlane.xlu2 %3439 }
 0x654   :  { %v3497_v32 = vmul.f32 %v4135_v16, %v3489_v8  ;;  %v3444_v54 = vmul.f32 %v3440_v58, %v3416_v46 }
 0x655   :  { %v3463_v2 = vsub.f32 1.5, %v3462_v36 }
 0x656   :  { %v4224_v49 = vpop.eup %4223  ;;  %v3505_v31 = vadd.f32 %v4136_v52, %v3497_v32  ;;  %v3448_v10 = vadd.f32 1e-05, %v3444_v54 }
 0x657   :  { %v3464_v38 = vmul.f32 %v4222_v45, %v3463_v2  ;;  %v3470_v50 = vmul.f32 %v4224_v49, %v3447_v34  ;;  %vm3476_vm13 = vweird.f32 %v4224_v49 }
 0x658   :  { %v3509_v41 = vpack.c.bf16 %v3505_v31, %v3505_v31  ;;  %4225 = vrsqrt.f32 %v3448_v10  ;;  %vm3477_vm15 = vmor %vm3475_vm14, %vm3476_vm13  ;;  %vm3485_vm1 = vweird.f32 %v3448_v10 }
 0x659   :  { %v3468_v1 = vsel %vm3467_vm12, %v4222_v45, %v3464_v38  ;;  %v3471_v30 = vmul.f32 %v4224_v49, %v3470_v50 }
 0x65a   :  { %3514 = vst.msk [vmem:[%s6830_s10] sm:$0xf] %vm3513_vm10, %v3509_v41  ;;  %v3490_v21 = vmul.f32 %v3468_v1, %v6780_v17 }
 0x65b   :  { %v3472_v35 = vmul.f32 0.5, %v3471_v30 }
 0x65c   :  { %v3498_v28 = vmul.f32 %v4135_v16, %v3490_v21 }
 0x65d   :  { %v3473_v47 = vsub.f32 1.5, %v3472_v35 }
 0x65e   :  { %v4226_v18 = vpop.eup %4225  ;;  %v3506_v43 = vadd.f32 %v4136_v52, %v3498_v28 }
 0x65f   :  { %v3474_v4 = vmul.f32 %v4224_v49, %v3473_v47  ;;  %v3480_v51 = vmul.f32 %v4226_v18, %v3448_v10  ;;  %vm3486_vm0 = vweird.f32 %v4226_v18 }
 0x660   :  { %v3510_v46 = vpack.c.bf16 %v3506_v43, %v3506_v43  ;;  %vm3487_vm2 = vmor %vm3485_vm1, %vm3486_vm0 }
 0x661   :  { %v3478_v63 = vsel %vm3477_vm15, %v4224_v49, %v3474_v4  ;;  %v3481_v56 = vmul.f32 %v4226_v18, %v3480_v51 }
 0x662   :  { %3515 = vst.msk [vmem:[%s6830_s10 + $0x4] sm:$0xf] %vm3513_vm10, %v3510_v46  ;;  %v3491_v37 = vmul.f32 %v3478_v63, %v6785_v12 }
 0x663   :  { %v3482_v60 = vmul.f32 0.5, %v3481_v56 }
 0x664   :  { %v3499_v23 = vmul.f32 %v4135_v16, %v3491_v37 }
 0x665   :  { %v3483_v3 = vsub.f32 1.5, %v3482_v60 }
 0x666   :  { %v3507_v7 = vadd.f32 %v4136_v52, %v3499_v23 }
 0x667   :  { %v3484_v17 = vmul.f32 %v4226_v18, %v3483_v3 }
 0x668   :  { %v3511_v59 = vpack.c.bf16 %v3507_v7, %v3507_v7 }
 0x669   :  { %v3488_v33 = vsel %vm3487_vm2, %v4226_v18, %v3484_v17 }
 0x66a   :  { %3516 = vst.msk [vmem:[%s6830_s10 + $0x8] sm:$0xf] %vm3513_vm10, %v3511_v59  ;;  %v3492_v22 = vmul.f32 %v3488_v33, %v6790_v39 }
 0x66c   :  { %v3500_v11 = vmul.f32 %v4135_v16, %v3492_v22 }
 0x66e   :  { %v3508_v0 = vadd.f32 %v4136_v52, %v3500_v11 }
 0x670   :  { %v3512_v12 = vpack.c.bf16 %v3508_v0, %v3508_v0 }
 0x672   :  { %3517 = vst.msk [vmem:[%s6830_s10 + $0xc] sm:$0xf] %vm3513_vm10, %v3512_v12 }

</bundles_post_ra>
